<compile_context>
chip_gen: v5e
topology: v5e:2x2
jax: 0.10.0
libtpu: 0.0.40
codegen_flags: <defaults>
</compile_context>

<pallas_src>
import numpy as np
import jax
import jax.numpy as jnp
from jax import lax
from jax.experimental import pallas as pl
from jax.experimental.pallas import tpu as pltpu

# --- small, module-consistent sizes -----------------------------------------
FILTER_LENGTH = 256                    # (module default is 1024; kept small)
N_OVERLAP = 4
HOP_LENGTH = FILTER_LENGTH // N_OVERLAP
WIN_LENGTH = FILTER_LENGTH
CUTOFF = FILTER_LENGTH // 2 + 1        # 129
CPAD = 256                             # cutoff zero-padded to a multiple of 128
TM = 256                               # frame-rows per grid step (MXU-sized)


# --- STFT basis construction (deterministic, host-side) ----------------------
def _hann_periodic(win_length):
    n = np.arange(win_length)
    return 0.5 - 0.5 * np.cos(2.0 * np.pi * n / win_length)


def make_stft_basis(filter_length, hop_length, win_length, cpad):
    scale = filter_length / hop_length
    fourier_basis = np.fft.fft(np.eye(filter_length))
    cutoff = filter_length // 2 + 1
    fb = np.vstack([np.real(fourier_basis[:cutoff]),
                    np.imag(fourier_basis[:cutoff])])            # (2*cutoff, L)
    inv = np.linalg.pinv(scale * fb).T                           # (2*cutoff, L)
    win = _hann_periodic(win_length)
    lpad = (filter_length - win_length) // 2
    win = np.pad(win, (lpad, filter_length - win_length - lpad))
    fwd = fb * win[None, :]
    inv = inv * win[None, :]
    L = filter_length
    # forward basis, fused:  [real | imag]  ->  (L, 2*cpad), zero-padded bins
    fwd_r = np.zeros((L, cpad), np.float32); fwd_r[:, :cutoff] = fwd[:cutoff].T
    fwd_i = np.zeros((L, cpad), np.float32); fwd_i[:, :cutoff] = fwd[cutoff:].T
    fwd_fused = np.concatenate([fwd_r, fwd_i], axis=1)           # (L, 2*cpad)
    # inverse basis, fused:  stacked [real ; imag]  ->  (2*cpad, L), zero rows
    inv_r = np.zeros((cpad, L), np.float32); inv_r[:cutoff] = inv[:cutoff]
    inv_i = np.zeros((cpad, L), np.float32); inv_i[:cutoff] = inv[cutoff:]
    inv_fused = np.concatenate([inv_r, inv_i], axis=0)           # (2*cpad, L)
    return fwd_fused, inv_fused, win.astype(np.float32)


def window_sumsquare(win_padded, n_frames, hop_length, n_fft):
    n = n_fft + hop_length * (n_frames - 1)
    x = np.zeros(n, dtype=np.float32)
    win_sq = win_padded.astype(np.float64) ** 2
    for i in range(n_frames):
        s = i * hop_length
        x[s:min(n, s + n_fft)] += win_sq[:max(0, min(n_fft, n - s))]
    return x


# --- Pallas kernel: STFT -> denoise -> inverse synthesis frames --------------
def denoiser_kernel(strength_ref, frames_ref, fwd_ref, inv_ref, bias_ref, out_ref):
    x = frames_ref[...]                                              # (TM, L) bf16
    # forward STFT: one fused bf16 matmul -> [real | imag], f32 accumulate
    tr = jnp.dot(x, fwd_ref[...], preferred_element_type=jnp.float32)  # (TM, 2*CPAD)
    real = tr[:, :CPAD]
    imag = tr[:, CPAD:]
    sq = real * real + imag * imag
    inv_mag = jnp.where(sq > 0.0, lax.rsqrt(sq), 0.0)   # EUP rsqrt; 0 when mag==0
    mag = sq * inv_mag
    s = strength_ref[0]
    # ratio = clamp(mag - bias*strength, 0) / mag  (exactly 0 where mag == 0;
    # padded bins have mag == 0 and bias == 0 so they contribute exactly 0)
    ratio = jnp.maximum(mag - bias_ref[...] * s, 0.0) * inv_mag       # (TM, CPAD)
    rec = (tr * jnp.concatenate([ratio, ratio], axis=1)).astype(jnp.bfloat16)
    # inverse synthesis: one fused bf16 matmul with stacked [inv_r ; inv_i]
    out_ref[...] = jnp.dot(rec, inv_ref[...], preferred_element_type=jnp.float32)


def _denoise_frames_pallas(frames, fwd_fused, inv_fused, bias2d, strength):
    n_rows, L = frames.shape
    assert n_rows % TM == 0
    grid = (n_rows // TM,)
    # NOTE: if an xprof trace ever shows exposed DMA on the frames input, add
    # pipeline_mode=pl.Buffered(3) to the frames BlockSpec (bases stay resident).
    return pl.pallas_call(
        denoiser_kernel,
        out_shape=jax.ShapeDtypeStruct((n_rows, L), jnp.float32),
        grid=grid,
        in_specs=[
            pl.BlockSpec(memory_space=pltpu.MemorySpace.SMEM),   # strength scalar
            pl.BlockSpec((TM, L), lambda i: (i, 0)),             # frames (bf16)
            pl.BlockSpec((L, 2 * CPAD), lambda i: (0, 0)),       # fused fwd basis
            pl.BlockSpec((2 * CPAD, L), lambda i: (0, 0)),       # fused inv basis
            pl.BlockSpec((1, CPAD), lambda i: (0, 0)),           # bias spectrum
        ],
        out_specs=pl.BlockSpec((TM, L), lambda i: (i, 0)),
        compiler_params=pltpu.CompilerParams(dimension_semantics=("parallel",)),
    )(strength, frames, fwd_fused, inv_fused, bias2d)


# --- Denoiser module (JAX wrapper) -------------------------------------------
class DenoiserPallas:
    def __init__(self, bias_spec, filter_length=FILTER_LENGTH,
                 n_overlap=N_OVERLAP, win_length=WIN_LENGTH):
        assert filter_length == FILTER_LENGTH and win_length == WIN_LENGTH
        self.filter_length = filter_length
        self.hop_length = filter_length // n_overlap
        self.cutoff = filter_length // 2 + 1
        fwd_fused, inv_fused, win = make_stft_basis(
            filter_length, self.hop_length, win_length, CPAD)
        # bf16 bases -> native bf16 MXU path on v5e/v6e/v7x (f32 accumulate)
        self.fwd_fused = jnp.asarray(fwd_fused, jnp.bfloat16)
        self.inv_fused = jnp.asarray(inv_fused, jnp.bfloat16)
        self.win = win
        # TODO(synk): bias_spec in the original comes from waveglow.infer(zeros);
        # here it is supplied as a deterministic synthetic magnitude spectrum.
        bias = np.zeros((1, CPAD), np.float32)
        bias[0, :self.cutoff] = np.asarray(bias_spec, np.float32).reshape(-1)
        self.bias2d = jnp.asarray(bias)                           # (1, CPAD)

    def __call__(self, audio, strength=0.1):
        L, hop = self.filter_length, self.hop_length
        B, T = audio.shape
        pad = L // 2
        padded = jnp.pad(audio.astype(jnp.float32), ((0, 0), (pad, pad)),
                         mode="reflect")
        n_frames = (padded.shape[1] - L) // hop + 1
        span = n_frames * hop

        # framing without a gather: L % hop == 0, so each frame is the concat of
        # L//hop contiguous hop-sized chunks taken at shifted offsets.
        # TODO(synk): next step is to DMA the padded audio directly inside the
        # kernel (overlapping windows via manual make_async_copy) to avoid
        # materializing the 4x-duplicated frames array in HBM at all.
        frames = jnp.concatenate(
            [padded[:, k * hop:k * hop + span].reshape(B, n_frames, hop)
             for k in range(L // hop)], axis=2).reshape(B * n_frames, L)
        n_rows = B * n_frames
        n_pad = (-n_rows) % TM
        frames_p = jnp.pad(frames, ((0, n_pad), (0, 0))).astype(jnp.bfloat16)

        syn = _denoise_frames_pallas(
            frames_p, self.fwd_fused, self.inv_fused, self.bias2d,
            jnp.asarray([strength], jnp.float32))
        syn = syn[:n_rows].reshape(B, n_frames, L)

        # overlap-add (conv_transpose1d with stride=hop) via L//hop shifted adds
        out_len = (n_frames - 1) * hop + L
        ola = jnp.zeros((B, out_len), jnp.float32)
        for k in range(L // hop):
            chunk = syn[:, :, k * hop:(k + 1) * hop].reshape(B, span)
            ola = ola.at[:, k * hop:k * hop + span].add(chunk)

        # window-sum correction, scaling, trimming (matches STFT.inverse)
        wss = jnp.asarray(window_sumsquare(self.win, n_frames, hop, L))
        tiny = np.finfo(np.float32).tiny
        nz = wss > tiny
        ola = jnp.where(nz[None, :], ola / jnp.where(nz, wss, 1.0)[None, :], ola)
        ola = ola * (float(L) / hop)
        audio_denoised = ola[:, pad:-pad]
        return audio_denoised[:, None, :]                         # (B, 1, T)


# --- numpy (float64) reference of the exact same forward semantics -----------
def reference_forward(audio, bias_spec, strength):
    L, hop, cutoff = FILTER_LENGTH, HOP_LENGTH, CUTOFF
    scale = L / hop
    fourier_basis = np.fft.fft(np.eye(L))
    fb = np.vstack([np.real(fourier_basis[:cutoff]),
                    np.imag(fourier_basis[:cutoff])])
    inv = np.linalg.pinv(scale * fb).T
    win = _hann_periodic(WIN_LENGTH)
    lpad = (L - WIN_LENGTH) // 2
    win = np.pad(win, (lpad, L - WIN_LENGTH - lpad))
    fwd = fb * win[None, :]
    invw = inv * win[None, :]

    B, T = audio.shape
    pad = L // 2
    padded = np.pad(audio, ((0, 0), (pad, pad)), mode="reflect")
    n_frames = (padded.shape[1] - L) // hop + 1
    frames = np.stack([padded[:, t * hop:t * hop + L] for t in range(n_frames)],
                      axis=1)                                     # (B, nf, L)
    trans = np.einsum("bnl,cl->bcn", frames, fwd)                 # (B, 2c, nf)
    real, imag = trans[:, :cutoff], trans[:, cutoff:]
    mag = np.sqrt(real ** 2 + imag ** 2)
    phase = np.arctan2(imag, real)
    mag_dn = np.maximum(mag - bias_spec * strength, 0.0)
    rec = np.concatenate([mag_dn * np.cos(phase), mag_dn * np.sin(phase)], axis=1)
    out_len = (n_frames - 1) * hop + L
    ola = np.zeros((B, out_len))
    for t in range(n_frames):
        ola[:, t * hop:t * hop + L] += np.einsum("bc,cl->bl", rec[:, :, t], invw)
    wss = window_sumsquare(win.astype(np.float32), n_frames, hop, L)
    nzi = wss > np.finfo(np.float32).tiny
    ola[:, nzi] /= wss[nzi]
    ola *= float(L) / hop
    return ola[:, pad:-pad][:, None, :]


if __name__ == "__main__":
    key = jax.random.PRNGKey(0)
    k1, k2 = jax.random.split(key)
    # T chosen so n_frames = 384 per batch -> 768 frame rows -> 3 full TM=256
    # grid steps (no pad rows, >=2 steps so both v7x TensorCores get work).
    B, T = 2, 24512
    audio = jax.random.normal(k1, (B, T), dtype=jnp.float32)
    # deterministic synthetic non-negative bias magnitude spectrum (1, cutoff, 1)
    bias_spec = jnp.abs(jax.random.normal(k2, (1, CUTOFF, 1), dtype=jnp.float32)) * 0.05

    denoiser = DenoiserPallas(bias_spec)
    out = denoiser(audio, strength=0.1)
    out = jax.block_until_ready(out)

    ref = reference_forward(np.asarray(audio, np.float64),
                            np.asarray(bias_spec, np.float64), 0.1)
    err = float(np.max(np.abs(np.asarray(out, np.float64) - ref)))
    assert out.shape == (B, 1, T), out.shape
    assert np.isfinite(np.asarray(out)).all()
    assert err < 5e-2, f"max abs err vs reference: {err}"
    print("KERNEL_OK")
</pallas_src>

<mosaic_0001>
module attributes {stable_mosaic.version = 11 : i64} {
  func.func @denoiser_kernel(%arg0: i32, %arg1: memref<1xf32, #tpu.memory_space<smem>>, %arg2: memref<256x256xbf16, #tpu.memory_space<vmem>>, %arg3: memref<256x512xbf16, #tpu.memory_space<vmem>>, %arg4: memref<512x256xbf16, #tpu.memory_space<vmem>>, %arg5: memref<1x256xf32, #tpu.memory_space<vmem>>, %arg6: memref<256x256xf32, #tpu.memory_space<vmem>>) attributes {dimension_semantics = [#tpu.dimension_semantics<parallel>], iteration_bounds = array<i64: 3>, scalar_prefetch = 0 : i64, scratch_operands = 0 : i64, tpu.core_type = #tpu.core_type<tc>, window_params = [{transform_indices = @transform_0, window_bounds = array<i64: 1>}, {transform_indices = @transform_1, window_bounds = array<i64: 256, 256>}, {pipeline_mode = #tpu.pipeline_mode<synchronous>, transform_indices = @transform_2, window_bounds = array<i64: 256, 512>}, {pipeline_mode = #tpu.pipeline_mode<synchronous>, transform_indices = @transform_3, window_bounds = array<i64: 512, 256>}, {pipeline_mode = #tpu.pipeline_mode<synchronous>, transform_indices = @transform_4, window_bounds = array<i64: 1, 256>}, {transform_indices = @transform_5, window_bounds = array<i64: 256, 256>}]} {
    %c0 = arith.constant 0 : index
    %c0_0 = arith.constant 0 : index
    %0 = vector.load %arg2[%c0, %c0_0] : memref<256x256xbf16, #tpu.memory_space<vmem>>, vector<256x256xbf16>
    %c0_1 = arith.constant 0 : index
    %c0_2 = arith.constant 0 : index
    %1 = vector.load %arg3[%c0_1, %c0_2] : memref<256x512xbf16, #tpu.memory_space<vmem>>, vector<256x512xbf16>
    %cst = arith.constant dense<0.000000e+00> : vector<256x512xf32>
    %2 = tpu.matmul %0, %1, %cst {dimension_numbers = #tpu.dot_dimension_numbers<[1], [0], [0], [1], [0, 0, 1, 1], [], []>} : vector<256x256xbf16>, vector<256x512xbf16>, vector<256x512xf32> -> vector<256x512xf32>
    %3 = vector.extract_strided_slice %2 {offsets = [0, 0], sizes = [256, 256], strides = [1, 1]} : vector<256x512xf32> to vector<256x256xf32>
    %4 = vector.extract_strided_slice %2 {offsets = [0, 256], sizes = [256, 256], strides = [1, 1]} : vector<256x512xf32> to vector<256x256xf32>
    %5 = arith.mulf %3, %3 : vector<256x256xf32>
    %6 = arith.mulf %4, %4 : vector<256x256xf32>
    %7 = arith.addf %5, %6 : vector<256x256xf32>
    %cst_3 = arith.constant 0.000000e+00 : f32
    %8 = vector.broadcast %cst_3 : f32 to vector<256x256xf32>
    %9 = arith.cmpf ogt, %7, %8 : vector<256x256xf32>
    %10 = math.rsqrt %7 : vector<256x256xf32>
    %cst_4 = arith.constant 0.000000e+00 : f32
    %11 = vector.broadcast %cst_4 : f32 to vector<256x256xf32>
    %12 = arith.select %9, %10, %11 : vector<256x256xi1>, vector<256x256xf32>
    %13 = arith.mulf %7, %12 : vector<256x256xf32>
    %c0_5 = arith.constant 0 : index
    %14 = memref.load %arg1[%c0_5] : memref<1xf32, #tpu.memory_space<smem>>
    %c0_6 = arith.constant 0 : index
    %c0_7 = arith.constant 0 : index
    %15 = vector.load %arg5[%c0_6, %c0_7] : memref<1x256xf32, #tpu.memory_space<vmem>>, vector<1x256xf32>
    %16 = vector.broadcast %14 : f32 to vector<1x256xf32>
    %17 = arith.mulf %15, %16 : vector<1x256xf32>
    %18 = vector.broadcast %17 : vector<1x256xf32> to vector<256x256xf32>
    %19 = arith.subf %13, %18 : vector<256x256xf32>
    %cst_8 = arith.constant 0.000000e+00 : f32
    %20 = vector.broadcast %cst_8 : f32 to vector<256x256xf32>
    %21 = arith.maximumf %19, %20 : vector<256x256xf32>
    %22 = arith.mulf %21, %12 : vector<256x256xf32>
    %23 = tpu.concatenate %22, %22 in 1 : vector<256x256xf32>, vector<256x256xf32> -> vector<256x512xf32>
    %24 = arith.mulf %2, %23 : vector<256x512xf32>
    %25 = arith.truncf %24 : vector<256x512xf32> to vector<256x512xbf16>
    %c0_9 = arith.constant 0 : index
    %c0_10 = arith.constant 0 : index
    %26 = vector.load %arg4[%c0_9, %c0_10] : memref<512x256xbf16, #tpu.memory_space<vmem>>, vector<512x256xbf16>
    %cst_11 = arith.constant dense<0.000000e+00> : vector<256x256xf32>
    %27 = tpu.matmul %25, %26, %cst_11 {dimension_numbers = #tpu.dot_dimension_numbers<[1], [0], [0], [1], [0, 0, 1, 1], [], []>} : vector<256x512xbf16>, vector<512x256xbf16>, vector<256x256xf32> -> vector<256x256xf32>
    %c0_12 = arith.constant 0 : index
    %c0_13 = arith.constant 0 : index
    %28 = vector.load %arg6[%c0_12, %c0_13] : memref<256x256xf32, #tpu.memory_space<vmem>>, vector<256x256xf32>
    tpu.vector_store %arg6[%c0_12, %c0_13], %27 {strides = array<i32>} : memref<256x256xf32, #tpu.memory_space<vmem>>, vector<256x256xf32>,
    return
  }
  func.func @transform_0(%arg0: i32) -> i32 {
    %c0_i32 = arith.constant 0 : i32
    %c0_i32_0 = arith.constant 0 : i32
    return %c0_i32 : i32
  }
  func.func @transform_1(%arg0: i32) -> (i32, i32) {
    %c0_i32 = arith.constant 0 : i32
    %c0_i32_0 = arith.constant 0 : i32
    return %arg0, %c0_i32 : i32, i32
  }
  func.func @transform_2(%arg0: i32) -> (i32, i32) {
    %c0_i32 = arith.constant 0 : i32
    %c0_i32_0 = arith.constant 0 : i32
    %c0_i32_1 = arith.constant 0 : i32
    return %c0_i32, %c0_i32_0 : i32, i32
  }
  func.func @transform_3(%arg0: i32) -> (i32, i32) {
    %c0_i32 = arith.constant 0 : i32
    %c0_i32_0 = arith.constant 0 : i32
    %c0_i32_1 = arith.constant 0 : i32
    return %c0_i32, %c0_i32_0 : i32, i32
  }
  func.func @transform_4(%arg0: i32) -> (i32, i32) {
    %c0_i32 = arith.constant 0 : i32
    %c0_i32_0 = arith.constant 0 : i32
    %c0_i32_1 = arith.constant 0 : i32
    return %c0_i32, %c0_i32_0 : i32, i32
  }
  func.func @transform_5(%arg0: i32) -> (i32, i32) {
    %c0_i32 = arith.constant 0 : i32
    %c0_i32_0 = arith.constant 0 : i32
    return %arg0, %c0_i32 : i32, i32
  }
}

</mosaic_0001>

<bundles_post_ra>
// kernel: tpu_custom_call.1
= control target key start
LH: loop header
LB: loop body
LE: loop exit
PB: predicated region body
PF: predicated region fallthrough
CT: control target
= control target key end

     0   :  { %s8990_s0 = inlined_call_operand.<no memory space> [shape: f32[1], index: 0, kind: input, shape index: {}]   ;;  %s8991_s1 = inlined_call_operand.hbm [shape: bf16[768,256], index: 1, kind: input, shape index: {}]   ;;  %s8992_s2 = inlined_call_operand.hbm [shape: bf16[256,512], index: 2, kind: input, shape index: {}]   ;;  %s8993_s3 = inlined_call_operand.hbm [shape: bf16[512,256], index: 3, kind: input, shape index: {}]   ;;  %s8994_s4 = inlined_call_operand.vmem [shape: f32[1,256], index: 4, kind: input, shape index: {}]   ;;  %s8995_s5 = inlined_call_operand.hbm [shape: f32[768,256], index: 5, kind: output, shape index: {}]  }
   0x1   :  { %10 = sst [smem:[#allocation2]] %s8990_s0 }
   0x2   :  { %11 = vsyncpa [#allocation4], 0 }
   0x3   :  { %13 = vsyncpa [#allocation4 + $0x1], 0 }
   0x4   :  { %14 = vsyncpa [#allocation7], 0 }
   0x5   :  { %15 = vsyncpa [#allocation5], 0 }
   0x6   :  { %17 = vsyncpa [#allocation5 + $0x1], 0  ;;  %s5484_s20 = smov 0   ;;  %s5486_s21 = smov 0  }
   0x7   :  { %s5488_s22 = smov 0   ;;  %s5490_s23 = smov 0  }
   0x8 LB: > { %s5505_s0 = sadd.s32 4294967295, %s5441_s23   ;;  %s4256_s24 = sadd.s32 4294967294, %s5441_s23   ;;  %s5441_s23 = sphi %s5490_s23, %s9682_s23   ;;  %s5437_s22 = sphi %s5488_s22, %s9681_s22   ;;  %s5433_s21 = sphi %s5486_s21, %s9680_s21   ;;  %s5429_s20 = sphi %s5484_s20, %s9679_s20  }
   0x9   : > { %p64_p0 = scmp.ne.s32.totalorder %s5433_s21, %s5429_s20  ;;  %p65_p1 = scmp.eq.s32.totalorder %s5505_s0, 0 }
   0xa   : > { %p151_p2 = scmp.eq.s32.totalorder %s5505_s0, 2  ;;  %p157_p3 = scmp.eq.s32.totalorder %s4256_s24, 2 }
   0xb   : > { %p5514_p4 = por %p65_p1, %p64_p0  ;;  %p4257_p5 = scmp.ge.s32.totalorder %s5441_s23, 1 }
   0xc   : > { %p5519_p6 = por %p157_p3, %p64_p0  ;;  %p164_p7 = scmp.lt.s32.totalorder %s5441_s23, 4 }
   0xd   : > { %s178_s29 = sshll.u32 %s8992_s2, 4  ;;  %s5443_s6 = smov [#allocation6]   ;;  %s179_s29 = int_to_ptr.hbm [resolvable:$true] %s178_s29 }
   0xe   : > { %p5527_p8 = pnand %p4257_p5, %p164_p7  ;;  %s180_s7 = sshll.u32 %s5443_s6, 4  ;;  %s181_s7 = int_to_ptr.vmem [resolvable:$true] %s180_s7 }
   0xf   : > { %s192_s10 = sshll.u32 %s8993_s3, 4  ;;  %s5444_s11 = smov 256   ;;  %s193_s10 = int_to_ptr.hbm [resolvable:$true] %s192_s10 }
  0x10   : > { %p5092_p9 = pneg %p5527_p8  ;;  %s5445_s12 = smov 16  }
  0x11   : > { %s5446_s13 = smov [#allocation8]   ;;  %s5447_s15 = smov 128  }
  0x12   : > { %p5093_p10 = pnand %p5092_p9, %p65_p1  ;;  %s194_s14 = sshll.u32 %s5446_s13, 4  ;;  %s195_s14 = int_to_ptr.vmem [resolvable:$true] %s194_s14 }
  0x13   : > { %s5448_s16 = smov 8   ;;  %s5542_s17 = sadd.s32 1, %s5441_s23  }
  0x14   : > { %5095 = dma.hbm_to_vmem [thread:$0]  (!%p5093_p10), %s179_s29, 8192, %s181_s7, [#allocation7], %s5444_s11, %s5444_s11, %s5445_s12  }
  0x15   : > { %5098 = dma.hbm_to_vmem [thread:$0]  (!%p5093_p10), %s193_s10, 8192, %s195_s14, [#allocation7], %s5447_s15, %s5447_s15, %s5448_s16  }
  0x16   : > { %s48_s18 = ssub.s32 %s5441_s23, %s5542_s17  ;;  %s51_s19 = sadd.s32 1, %s5437_s22 }
  0x17   : > { %p49_p11 = scmp.eq.s32.totalorder %s48_s18, 0  ;;  %p58_p12 = scmp.ne.s32.totalorder %s5437_s22, %s5433_s21 }
  0x18   : > { %p59_p13 = scmp.eq.s32.totalorder %s5441_s23, 0  ;;  %p5109_p5 = scmp.lt.s32.totalorder %s5441_s23, 3 }
  0x19   : > { %s5551_s24 = scalar_select %p49_p11, %s5437_s22, %s51_s19  }
  0x1a   : > { %p60_p0 = por %p59_p13, %p58_p12  ;;  %p5555_p3 = por %p151_p2, %p58_p12 }
  0x1b   : > { %s211_s28 = sand.u32 1, %s5437_s22   ;;  %s4917_s6 = sshll.u32 %s5441_s23, 8 }
  0x1c   : > { %s4261_s29 = sshll.u32 %s211_s28, 8  ;;  %s221_s9 = scalar_lea.hbm %s8991_s1, %s4917_s6 }
  0x1d   : > { %s215_s10 = scalar_lea.vmem [#allocation3], %s4261_s29  ;;  %s222_s12 = sshll.u32 %s221_s9, 4  ;;  %s223_s12 = int_to_ptr.hbm [resolvable:$true] %s222_s12 }
  0x1e   : > { %s224_s11 = sshll.u32 %s215_s10, 4  ;;  %p5565_p7 = pnand %p5109_p5, %p60_p0  ;;  %s225_s11 = int_to_ptr.vmem [resolvable:$true] %s224_s11 }
  0x1f   : > { %s212_s14 = scalar_lea.sflag [#allocation4], %s211_s28  ;;  %s5341_s18 = sshra.s32 %s223_s12, 4  ;;  %s5342_s18 = int_to_ptr.hbm [resolvable:$true] %s5341_s18 }
  0x20   : > { %s5343_s19 = scalar_lea.hbm %s5342_s18, 256  ;;  %p5345_p9 = pneg %p5565_p7 }
  0x21   : > { %p5344_p2 = scmp.ne.s32.totalorder %s5342_s18, %s5343_s19  ;;  %s5348_s7 = scalar_lea.hbm %s8991_s1, 768 }
  0x22   : > { %p5349_p12 = scmp.lt.s32.totalorder %s5342_s18, %s8991_s1  ;;  %p5350_p13 = scmp.lt.s32.totalorder %s5348_s7, %s5343_s19 }
  0x23   : > { %p5346_p10 = pnand %p5345_p9, %p5344_p2 }
  0x24   : > { %p5351_p0 = por %p5350_p13, %p5349_p12 }
  0x25   : > { %p5347_p11 = pneg %p5346_p10 }
  0x27   : > { %p5352_p5 = pnand %p5351_p0, %p5347_p11 }
  0x29   : > { %5355 = shalt.err (!%p5352_p5)
}
  0x2a   : > { %5102 = dma.hbm_to_vmem [thread:$0]  (!%p5565_p7), %s223_s12, 4096, %s225_s11, %s212_s14, %s5447_s15, %s5447_s15, %s5448_s16  }
  0x2b   : > { %236 = sbr.rel (%p5527_p8) target bundleno = 1324 (0x52c), region = 40 }
  0x30   : > { %s5585_s28 = sand.u32 1, %s5433_s21  }
  0x31   : > { %s4266_s10 = sshll.u32 %s5585_s28, 8  ;;  %s239_s18 = scalar_lea.sflag [#allocation4], %s5585_s28 }
  0x32   : > { %s5589_s19 = scalar_lea.vmem [#allocation3], %s4266_s10 }
  0x33   : > { %5416 = dma.done.wait (%p5514_p4), %s239_s18, 4096  }
  0x34   : > { %5418 = vsyncadd (%p5514_p4), %s239_s18, 4294963200 }
  0x35   : > { %5420 = dma.done.wait (%p65_p1), [#allocation7], 16384  }
  0x36   : > { %5422 = vsyncadd (%p65_p1), [#allocation7], 4294950912  ;;  %v4512_v0 = vld [vmem:[#allocation6 + $0xe0] sm:$0xf]  ;;  %v4980_v1 = vld [vmem:[#allocation6 + $0xec] sm:$0xf0] }
  0x37   : > { %v4640_v2 = vld [vmem:[#allocation6 + $0x1e0] sm:$0xf]  ;;  %v4513_v3 = vor.u32 %v4980_v1, %v4512_v0  ;;  %v5012_v4 = vld [vmem:[#allocation6 + $0x1ec] sm:$0xf0]  ;;  %v4978_v5 = vld [vmem:[#allocation6 + $0xe4] sm:$0xf] }
  0x38   : > { %v4514_v6 = vld [vmem:[#allocation6 + $0xf0] sm:$0xf0]  ;;  %v4641_v7 = vor.u32 %v5012_v4, %v4640_v2  ;;  %v5010_v9 = vld [vmem:[#allocation6 + $0x1e4] sm:$0xf]  ;;  %v4496_v11 = vld [vmem:[#allocation6 + $0xc0] sm:$0xf] }
  0x39   : > { %v4517_v8 = vor.u32 %v4978_v5, %v4514_v6  ;;  %v4642_v10 = vld [vmem:[#allocation6 + $0x1f0] sm:$0xf0]  ;;  %858 = vmatpush.bf16.msra.mxu0 %v4513_v3  ;;  %v4976_v13 = vld [vmem:[#allocation6 + $0xcc] sm:$0xf0]  ;;  %v4624_v14 = vld [vmem:[#allocation6 + $0x1c0] sm:$0xf] }
  0x3a   : > { %v4645_v12 = vor.u32 %v5010_v9, %v4642_v10  ;;  %v5008_v15 = vld [vmem:[#allocation6 + $0x1cc] sm:$0xf0]  ;;  %947 = vmatpush.bf16.msra.mxu1 %v4641_v7  ;;  %v4497_v16 = vor.u32 %v4976_v13, %v4496_v11  ;;  %v4974_v18 = vld [vmem:[#allocation6 + $0xc4] sm:$0xf]  ;;  %v4498_v19 = vld [vmem:[#allocation6 + $0xd0] sm:$0xf0] }
  0x3b   : > { %1036 = vmatpush.bf16.msra.mxu2 %v4517_v8  ;;  %v4625_v17 = vor.u32 %v5008_v15, %v4624_v14  ;;  %v5006_v20 = vld [vmem:[#allocation6 + $0x1c4] sm:$0xf]  ;;  %v4501_v21 = vor.u32 %v4974_v18, %v4498_v19  ;;  %v4626_v22 = vld [vmem:[#allocation6 + $0x1d0] sm:$0xf0]  ;;  %v4480_v23 = vld [vmem:[#allocation6 + $0xa0] sm:$0xf] }
  0x3c   : > { %1125 = vmatpush.bf16.msra.mxu3 %v4645_v12  ;;  %v4972_v24 = vld [vmem:[#allocation6 + $0xac] sm:$0xf0]  ;;  %v4629_v25 = vor.u32 %v5006_v20, %v4626_v22  ;;  %v4608_v26 = vld [vmem:[#allocation6 + $0x1a0] sm:$0xf]  ;;  %v4970_v28 = vld [vmem:[#allocation6 + $0xa4] sm:$0xf] }
  0x3d   : > { %v5004_v27 = vld [vmem:[#allocation6 + $0x1ac] sm:$0xf0]  ;;  %859 = vmatpush.bf16.msra.mxu0 %v4497_v16  ;;  %v4481_v29 = vor.u32 %v4972_v24, %v4480_v23  ;;  %v4482_v30 = vld [vmem:[#allocation6 + $0xb0] sm:$0xf0]  ;;  %v5002_v31 = vld [vmem:[#allocation6 + $0x1a4] sm:$0xf] }
  0x3e   : > { %v4610_v32 = vld [vmem:[#allocation6 + $0x1b0] sm:$0xf0]  ;;  %948 = vmatpush.bf16.msra.mxu1 %v4625_v17  ;;  %v4609_v33 = vor.u32 %v5004_v27, %v4608_v26  ;;  %v4485_v34 = vor.u32 %v4970_v28, %v4482_v30  ;;  %v4464_v35 = vld [vmem:[#allocation6 + $0x80] sm:$0xf]  ;;  %v4968_v36 = vld [vmem:[#allocation6 + $0x8c] sm:$0xf0] }
  0x3f   : > { %1037 = vmatpush.bf16.msra.mxu2 %v4501_v21  ;;  %v4592_v37 = vld [vmem:[#allocation6 + $0x180] sm:$0xf]  ;;  %v4613_v38 = vor.u32 %v5002_v31, %v4610_v32  ;;  %v5000_v39 = vld [vmem:[#allocation6 + $0x18c] sm:$0xf0]  ;;  %v4966_v40 = vld [vmem:[#allocation6 + $0x84] sm:$0xf]  ;;  %v4465_v44 = vor.u32 %v4968_v36, %v4464_v35 }
  0x40   : > { %1126 = vmatpush.bf16.msra.mxu3 %v4629_v25  ;;  %v4466_v41 = vld [vmem:[#allocation6 + $0x90] sm:$0xf0]  ;;  %v4998_v42 = vld [vmem:[#allocation6 + $0x184] sm:$0xf]  ;;  %v4593_v45 = vor.u32 %v5000_v39, %v4592_v37  ;;  %v4448_v47 = vld [vmem:[#allocation6 + $0x60] sm:$0xf] }
  0x41   : > { %v4594_v43 = vld [vmem:[#allocation6 + $0x190] sm:$0xf0]  ;;  %860 = vmatpush.bf16.msra.mxu0 %v4481_v29  ;;  %v4469_v46 = vor.u32 %v4966_v40, %v4466_v41  ;;  %v4964_v48 = vld [vmem:[#allocation6 + $0x6c] sm:$0xf0]  ;;  %v4576_v49 = vld [vmem:[#allocation6 + $0x160] sm:$0xf] }
  0x42   : > { %949 = vmatpush.bf16.msra.mxu1 %v4609_v33  ;;  %v4597_v50 = vor.u32 %v4998_v42, %v4594_v43  ;;  %v4996_v51 = vld [vmem:[#allocation6 + $0x16c] sm:$0xf0]  ;;  %v4962_v52 = vld [vmem:[#allocation6 + $0x64] sm:$0xf]  ;;  %v4450_v53 = vld [vmem:[#allocation6 + $0x70] sm:$0xf0]  ;;  %v4449_v56 = vor.u32 %v4964_v48, %v4448_v47 }
  0x43   : > { %1038 = vmatpush.bf16.msra.mxu2 %v4485_v34  ;;  %v4994_v54 = vld [vmem:[#allocation6 + $0x164] sm:$0xf]  ;;  %v4578_v55 = vld [vmem:[#allocation6 + $0x170] sm:$0xf0]  ;;  %v4577_v57 = vor.u32 %v4996_v51, %v4576_v49  ;;  %v4453_v58 = vor.u32 %v4962_v52, %v4450_v53  ;;  %v4432_v59 = vld [vmem:[#allocation6 + $0x40] sm:$0xf] }
  0x44   : > { %1127 = vmatpush.bf16.msra.mxu3 %v4613_v38  ;;  %v4960_v60 = vld [vmem:[#allocation6 + $0x4c] sm:$0xf0]  ;;  %v4560_v61 = vld [vmem:[#allocation6 + $0x140] sm:$0xf]  ;;  %v4581_v62 = vor.u32 %v4994_v54, %v4578_v55  ;;  %v4958_v0 = vld [vmem:[#allocation6 + $0x44] sm:$0xf] }
  0x45   : > { %861 = vmatpush.bf16.msra.mxu0 %v4465_v44  ;;  %v4992_v63 = vld [vmem:[#allocation6 + $0x14c] sm:$0xf0]  ;;  %v4434_v1 = vld [vmem:[#allocation6 + $0x50] sm:$0xf0]  ;;  %v4990_v2 = vld [vmem:[#allocation6 + $0x144] sm:$0xf]  ;;  %v4433_v4 = vor.u32 %v4960_v60, %v4432_v59 }
  0x46   : > { %950 = vmatpush.bf16.msra.mxu1 %v4593_v45  ;;  %v4562_v3 = vld [vmem:[#allocation6 + $0x150] sm:$0xf0]  ;;  %v4561_v5 = vor.u32 %v4992_v63, %v4560_v61  ;;  %v4437_v6 = vor.u32 %v4958_v0, %v4434_v1  ;;  %v4416_v7 = vld [vmem:[#allocation6 + $0x20] sm:$0xf]  ;;  %v4956_v8 = vld [vmem:[#allocation6 + $0x2c] sm:$0xf0] }
  0x47   : > { %1039 = vmatpush.bf16.msra.mxu2 %v4469_v46  ;;  %v4544_v9 = vld [vmem:[#allocation6 + $0x120] sm:$0xf]  ;;  %v4565_v10 = vor.u32 %v4990_v2, %v4562_v3  ;;  %v4988_v11 = vld [vmem:[#allocation6 + $0x12c] sm:$0xf0]  ;;  %v4954_v12 = vld [vmem:[#allocation6 + $0x24] sm:$0xf]  ;;  %v4417_v16 = vor.u32 %v4956_v8, %v4416_v7 }
  0x48   : > { %1128 = vmatpush.bf16.msra.mxu3 %v4597_v50  ;;  %v4418_v13 = vld [vmem:[#allocation6 + $0x30] sm:$0xf0]  ;;  %v4986_v14 = vld [vmem:[#allocation6 + $0x124] sm:$0xf]  ;;  %v4400_v17 = vld [vmem:[#allocation6] sm:$0xf]  ;;  %v4545_v19 = vor.u32 %v4988_v11, %v4544_v9 }
  0x49   : > { %862 = vmatpush.bf16.msra.mxu0 %v4449_v56  ;;  %v4546_v15 = vld [vmem:[#allocation6 + $0x130] sm:$0xf0]  ;;  %v4952_v18 = vld [vmem:[#allocation6 + $0xc] sm:$0xf0]  ;;  %v4421_v20 = vor.u32 %v4954_v12, %v4418_v13  ;;  %v4528_v21 = vld [vmem:[#allocation6 + $0x100] sm:$0xf] }
  0x4a   : > { %951 = vmatpush.bf16.msra.mxu1 %v4577_v57  ;;  %v4984_v22 = vld [vmem:[#allocation6 + $0x10c] sm:$0xf0]  ;;  %v4950_v23 = vld [vmem:[#allocation6 + $0x4] sm:$0xf]  ;;  %v4549_v24 = vor.u32 %v4986_v14, %v4546_v15  ;;  %v4402_v25 = vld [vmem:[#allocation6 + $0x10] sm:$0xf0]  ;;  %v4401_v31 = vor.u32 %v4952_v18, %v4400_v17 }
  0x4b   : > { %1040 = vmatpush.bf16.msra.mxu2 %v4453_v58  ;;  %v4982_v26 = vld [vmem:[#allocation6 + $0x104] sm:$0xf]  ;;  %v4530_v27 = vld [vmem:[#allocation6 + $0x110] sm:$0xf0]  ;;  %v4272_v28 = vld [vmem:[%s5589_s19] sm:$0xf]  ;;  %v4529_v35 = vor.u32 %v4984_v22, %v4528_v21  ;;  %v4405_v36 = vor.u32 %v4950_v23, %v4402_v25 }
  0x4c   : > { %1129 = vmatpush.bf16.msra.mxu3 %v4581_v62  ;;  %v4979_v29 = vld [vmem:[#allocation6 + $0xec] sm:$0xf]  ;;  %v4522_v30 = vld [vmem:[#allocation6 + $0xf8] sm:$0xf0]  ;;  %v4919_v32 = vld [vmem:[%s5589_s19 + $0x4] sm:$0xf0]  ;;  %v4533_v39 = vor.u32 %v4982_v26, %v4530_v27 }
  0x4d   : > { %863 = vmatpush.bf16.msra.mxu0 %v4433_v4  ;;  %v5011_v33 = vld [vmem:[#allocation6 + $0x1ec] sm:$0xf]  ;;  %v4650_v34 = vld [vmem:[#allocation6 + $0x1f8] sm:$0xf0]  ;;  %v4918_v37 = vld [vmem:[%s5589_s19 + $0x4] sm:$0xf]  ;;  %v4525_v40 = vor.u32 %v4979_v29, %v4522_v30  ;;  %v5603_v43 = vor.u32 %v4919_v32, %v4272_v28 }
  0x4e   : > { %952 = vmatpush.bf16.msra.mxu1 %v4561_v5  ;;  %v4274_v38 = vld [vmem:[%s5589_s19 + $0x8] sm:$0xf0]  ;;  %v4520_v41 = vld [vmem:[#allocation6 + $0xe8] sm:$0xf]  ;;  %v4981_v42 = vld [vmem:[#allocation6 + $0xf4] sm:$0xf0]  ;;  %v4653_v44 = vor.u32 %v5011_v33, %v4650_v34 }
  0x4f   : > { %1041 = vmatpush.bf16.msra.mxu2 %v4437_v6  ;;  %v4648_v45 = vld [vmem:[#allocation6 + $0x1e8] sm:$0xf]  ;;  %v5013_v46 = vld [vmem:[#allocation6 + $0x1f4] sm:$0xf0]  ;;  %v5605_v47 = vor.u32 %v4918_v37, %v4274_v38  ;;  %v4521_v48 = vor.u32 %v4981_v42, %v4520_v41  ;;  %v4975_v50 = vld [vmem:[#allocation6 + $0xcc] sm:$0xf] }
  0x50   : > { %1130 = vmatpush.bf16.msra.mxu3 %v4565_v10  ;;  %v4649_v49 = vor.u32 %v5013_v46, %v4648_v45  ;;  %v4506_v51 = vld [vmem:[#allocation6 + $0xd8] sm:$0xf0]  ;;  %v5007_v52 = vld [vmem:[#allocation6 + $0x1cc] sm:$0xf]  ;;  %v4504_v55 = vld [vmem:[#allocation6 + $0xc8] sm:$0xf] }
  0x51   : > { %864 = vmatpush.bf16.msra.mxu0 %v4417_v16  ;;  %v4509_v53 = vor.u32 %v4975_v50, %v4506_v51  ;;  %v4634_v54 = vld [vmem:[#allocation6 + $0x1d8] sm:$0xf0]  ;;  %v4977_v56 = vld [vmem:[#allocation6 + $0xd4] sm:$0xf0]  ;;  %v4632_v59 = vld [vmem:[#allocation6 + $0x1c8] sm:$0xf] }
  0x52   : > { %953 = vmatpush.bf16.msra.mxu1 %v4545_v19  ;;  %v4637_v57 = vor.u32 %v5007_v52, %v4634_v54  ;;  %v4505_v58 = vor.u32 %v4977_v56, %v4504_v55  ;;  %v5009_v60 = vld [vmem:[#allocation6 + $0x1d4] sm:$0xf0]  ;;  %v4280_v62 = vld [vmem:[%s5589_s19 + $0x10] sm:$0xf]  ;;  %v4920_v0 = vld [vmem:[%s5589_s19 + $0x14] sm:$0xf] }
  0x53   : > { %1042 = vmatpush.bf16.msra.mxu2 %v4421_v20  ;;  %v4633_v61 = vor.u32 %v5009_v60, %v4632_v59  ;;  %v4921_v63 = vld [vmem:[%s5589_s19 + $0x14] sm:$0xf0]  ;;  %v4282_v1 = vld [vmem:[%s5589_s19 + $0x18] sm:$0xf0]  ;;  %v4288_v4 = vld [vmem:[%s5589_s19 + $0x20] sm:$0xf] }
  0x54   : > { %1131 = vmatpush.bf16.msra.mxu3 %v4549_v24  ;;  %v5615_v2 = vor.u32 %v4921_v63, %v4280_v62  ;;  %v5617_v3 = vor.u32 %v4920_v0, %v4282_v1  ;;  %v4923_v5 = vld [vmem:[%s5589_s19 + $0x24] sm:$0xf0]  ;;  %v4922_v6 = vld [vmem:[%s5589_s19 + $0x24] sm:$0xf]  ;;  %v4290_v7 = vld [vmem:[%s5589_s19 + $0x28] sm:$0xf0] }
  0x55   : > { %865 = vmatpush.bf16.msra.mxu0 %v4401_v31  ;;  %v5627_v8 = vor.u32 %v4923_v5, %v4288_v4  ;;  %v5629_v9 = vor.u32 %v4922_v6, %v4290_v7  ;;  %v4971_v10 = vld [vmem:[#allocation6 + $0xac] sm:$0xf]  ;;  %v4490_v11 = vld [vmem:[#allocation6 + $0xb8] sm:$0xf0]  ;;  %v4488_v15 = vld [vmem:[#allocation6 + $0xa8] sm:$0xf] }
  0x56   : > { %954 = vmatpush.bf16.msra.mxu1 %v4529_v35  ;;  %v5003_v12 = vld [vmem:[#allocation6 + $0x1ac] sm:$0xf]  ;;  %v4493_v13 = vor.u32 %v4971_v10, %v4490_v11  ;;  %v4618_v14 = vld [vmem:[#allocation6 + $0x1b8] sm:$0xf0]  ;;  %v4973_v16 = vld [vmem:[#allocation6 + $0xb4] sm:$0xf0] }
  0x57   : > { %1043 = vmatpush.bf16.msra.mxu2 %v4405_v36  ;;  %v4621_v17 = vor.u32 %v5003_v12, %v4618_v14  ;;  %v4489_v18 = vor.u32 %v4973_v16, %v4488_v15  ;;  %v4616_v19 = vld [vmem:[#allocation6 + $0x1a8] sm:$0xf]  ;;  %v5005_v20 = vld [vmem:[#allocation6 + $0x1b4] sm:$0xf0]  ;;  %v4296_v22 = vld [vmem:[%s5589_s19 + $0x30] sm:$0xf] }
  0x58   : > { %1132 = vmatpush.bf16.msra.mxu3 %v4533_v39  ;;  %866 = vmatmul.bf16.vlgmr.msra.gmra.mxu0 %v5603_v43  ;;  %v4617_v21 = vor.u32 %v5005_v20, %v4616_v19  ;;  %v4925_v23 = vld [vmem:[%s5589_s19 + $0x34] sm:$0xf0]  ;;  %v4924_v24 = vld [vmem:[%s5589_s19 + $0x34] sm:$0xf]  ;;  %v4298_v25 = vld [vmem:[%s5589_s19 + $0x38] sm:$0xf0] }
  0x59   : > { %955 = vmatmul.bf16.vlgmr.msra.gmra.mxu1 %v5605_v47  ;;  %1214 = vmatpush.bf16.msrb.mxu0 %v4521_v48  ;;  %v5639_v26 = vor.u32 %v4925_v23, %v4296_v22  ;;  %v5641_v27 = vor.u32 %v4924_v24, %v4298_v25  ;;  %v4304_v28 = vld [vmem:[%s5589_s19 + $0x40] sm:$0xf]  ;;  %v4927_v29 = vld [vmem:[%s5589_s19 + $0x44] sm:$0xf0]  ;;  %v4926_v30 = vld [vmem:[%s5589_s19 + $0x44] sm:$0xf] }
  0x5a   : > { %1044 = vmatmul.bf16.vlgmr.msra.gmra.mxu2 %v5603_v43  ;;  %1303 = vmatpush.bf16.msrb.mxu1 %v4649_v49  ;;  %v4306_v31 = vld [vmem:[%s5589_s19 + $0x48] sm:$0xf0]  ;;  %v5651_v32 = vor.u32 %v4927_v29, %v4304_v28  ;;  %v4474_v35 = vld [vmem:[#allocation6 + $0x98] sm:$0xf0]  ;;  %v4472_v39 = vld [vmem:[#allocation6 + $0x88] sm:$0xf] }
  0x5b   : > { %1392 = vmatpush.bf16.msrb.mxu2 %v4525_v40  ;;  %1133 = vmatmul.bf16.vlgmr.msra.gmra.mxu3 %v5605_v47  ;;  %v5653_v33 = vor.u32 %v4926_v30, %v4306_v31  ;;  %v4967_v34 = vld [vmem:[#allocation6 + $0x8c] sm:$0xf]  ;;  %v4602_v38 = vld [vmem:[#allocation6 + $0x198] sm:$0xf0]  ;;  %v4969_v40 = vld [vmem:[#allocation6 + $0x94] sm:$0xf0] }
  0x5c   : > { %1481 = vmatpush.bf16.msrb.mxu3 %v4653_v44  ;;  %v4999_v36 = vld [vmem:[#allocation6 + $0x18c] sm:$0xf]  ;;  %v4477_v37 = vor.u32 %v4967_v34, %v4474_v35  ;;  %v4473_v42 = vor.u32 %v4969_v40, %v4472_v39  ;;  %v4600_v44 = vld [vmem:[#allocation6 + $0x188] sm:$0xf]  ;;  %v5001_v45 = vld [vmem:[#allocation6 + $0x194] sm:$0xf0] }
  0x5d   : > { %1215 = vmatpush.bf16.msrb.mxu0 %v4505_v58  ;;  %v4605_v41 = vor.u32 %v4999_v36, %v4602_v38  ;;  %v4601_v46 = vor.u32 %v5001_v45, %v4600_v44  ;;  %v4312_v48 = vld [vmem:[%s5589_s19 + $0x50] sm:$0xf]  ;;  %v4929_v49 = vld [vmem:[%s5589_s19 + $0x54] sm:$0xf0]  ;;  %v4928_v50 = vld [vmem:[%s5589_s19 + $0x54] sm:$0xf] }
  0x5e   : > { %1304 = vmatpush.bf16.msrb.mxu1 %v4633_v61  ;;  %v4314_v51 = vld [vmem:[%s5589_s19 + $0x58] sm:$0xf0]  ;;  %v5663_v52 = vor.u32 %v4929_v49, %v4312_v48  ;;  %v4320_v54 = vld [vmem:[%s5589_s19 + $0x60] sm:$0xf]  ;;  %v4931_v55 = vld [vmem:[%s5589_s19 + $0x64] sm:$0xf0] }
  0x5f   : > { %1393 = vmatpush.bf16.msrb.mxu2 %v4509_v53  ;;  %v5665_v53 = vor.u32 %v4928_v50, %v4314_v51  ;;  %v4930_v56 = vld [vmem:[%s5589_s19 + $0x64] sm:$0xf]  ;;  %v5675_v58 = vor.u32 %v4931_v55, %v4320_v54  ;;  %v4963_v60 = vld [vmem:[#allocation6 + $0x6c] sm:$0xf]  ;;  %v4458_v61 = vld [vmem:[#allocation6 + $0x78] sm:$0xf0] }
  0x60   : > { %1482 = vmatpush.bf16.msrb.mxu3 %v4637_v57  ;;  %v4322_v57 = vld [vmem:[%s5589_s19 + $0x68] sm:$0xf0]  ;;  %v4461_v63 = vor.u32 %v4963_v60, %v4458_v61  ;;  %v4586_v0 = vld [vmem:[#allocation6 + $0x178] sm:$0xf0]  ;;  %v4456_v4 = vld [vmem:[#allocation6 + $0x68] sm:$0xf] }
  0x61   : > { %1216 = vmatpush.bf16.msrb.mxu0 %v4489_v18  ;;  %v5677_v59 = vor.u32 %v4930_v56, %v4322_v57  ;;  %v4995_v62 = vld [vmem:[#allocation6 + $0x16c] sm:$0xf]  ;;  %v4965_v5 = vld [vmem:[#allocation6 + $0x74] sm:$0xf0]  ;;  %v4584_v6 = vld [vmem:[#allocation6 + $0x168] sm:$0xf] }
  0x62   : > { %1305 = vmatpush.bf16.msrb.mxu1 %v4617_v21  ;;  %v4589_v1 = vor.u32 %v4995_v62, %v4586_v0  ;;  %v4328_v7 = vld [vmem:[%s5589_s19 + $0x70] sm:$0xf]  ;;  %v4933_v10 = vld [vmem:[%s5589_s19 + $0x74] sm:$0xf0]  ;;  %v4457_v11 = vor.u32 %v4965_v5, %v4456_v4  ;;  %v4330_v14 = vld [vmem:[%s5589_s19 + $0x78] sm:$0xf0] }
  0x63   : > { %1394 = vmatpush.bf16.msrb.mxu2 %v4493_v13  ;;  %v4997_v12 = vld [vmem:[#allocation6 + $0x174] sm:$0xf0]  ;;  %v4932_v13 = vld [vmem:[%s5589_s19 + $0x74] sm:$0xf]  ;;  %v5687_v16 = vor.u32 %v4933_v10, %v4328_v7  ;;  %v4336_v18 = vld [vmem:[%s5589_s19 + $0x80] sm:$0xf] }
  0x64   : > { %1483 = vmatpush.bf16.msrb.mxu3 %v4621_v17  ;;  %v4585_v15 = vor.u32 %v4997_v12, %v4584_v6  ;;  %v5689_v17 = vor.u32 %v4932_v13, %v4330_v14  ;;  %v4935_v19 = vld [vmem:[%s5589_s19 + $0x84] sm:$0xf0]  ;;  %v4934_v20 = vld [vmem:[%s5589_s19 + $0x84] sm:$0xf]  ;;  %v4338_v21 = vld [vmem:[%s5589_s19 + $0x88] sm:$0xf0] }
  0x65   : > { %1217 = vmatpush.bf16.msrb.mxu0 %v4473_v42  ;;  %v5699_v22 = vor.u32 %v4935_v19, %v4336_v18  ;;  %v5701_v24 = vor.u32 %v4934_v20, %v4338_v21  ;;  %v4959_v29 = vld [vmem:[#allocation6 + $0x4c] sm:$0xf]  ;;  %v4442_v30 = vld [vmem:[#allocation6 + $0x58] sm:$0xf0]  ;;  %v4440_v44 = vld [vmem:[#allocation6 + $0x48] sm:$0xf] }
  0x66   : > { %1306 = vmatpush.bf16.msrb.mxu1 %v4601_v46  ;;  %v4991_v31 = vld [vmem:[#allocation6 + $0x14c] sm:$0xf]  ;;  %v4445_v34 = vor.u32 %v4959_v29, %v4442_v30  ;;  %v4570_v35 = vld [vmem:[#allocation6 + $0x158] sm:$0xf0]  ;;  %v4961_v45 = vld [vmem:[#allocation6 + $0x54] sm:$0xf0] }
  0x67   : > { %1395 = vmatpush.bf16.msrb.mxu2 %v4477_v37  ;;  %v4573_v37 = vor.u32 %v4991_v31, %v4570_v35  ;;  %v4568_v46 = vld [vmem:[#allocation6 + $0x148] sm:$0xf]  ;;  %v4344_v48 = vld [vmem:[%s5589_s19 + $0x90] sm:$0xf]  ;;  %v4937_v49 = vld [vmem:[%s5589_s19 + $0x94] sm:$0xf0]  ;;  %v4441_v50 = vor.u32 %v4961_v45, %v4440_v44 }
  0x68   : > { %871 = vmatmul.bf16.gmra.mxu0 %v5615_v2  ;;  %1484 = vmatpush.bf16.msrb.mxu3 %v4605_v41  ;;  %v4993_v51 = vld [vmem:[#allocation6 + $0x154] sm:$0xf0]  ;;  %v4936_v54 = vld [vmem:[%s5589_s19 + $0x94] sm:$0xf]  ;;  %v4346_v55 = vld [vmem:[%s5589_s19 + $0x98] sm:$0xf0]  ;;  %v5717_v60 = vor.u32 %v4937_v49, %v4344_v48 }
  0x69   : > { %960 = vmatmul.bf16.gmra.mxu1 %v5617_v3  ;;  %1218 = vmatpush.bf16.msrb.mxu0 %v4457_v11  ;;  %v4569_v56 = vor.u32 %v4993_v51, %v4568_v46  ;;  %v4352_v13 = vld [vmem:[%s5589_s19 + $0xa0] sm:$0xf]  ;;  %v4939_v14 = vld [vmem:[%s5589_s19 + $0xa4] sm:$0xf0]  ;;  %v4354_v18 = vld [vmem:[%s5589_s19 + $0xa8] sm:$0xf0] }
  0x6a   : > { %1049 = vmatmul.bf16.gmra.mxu2 %v5615_v2  ;;  %1307 = vmatpush.bf16.msrb.mxu1 %v4585_v15  ;;  %9159 = vst [vmem:[#allocation13_spill] sm:$0xff] %v5717_v60  ;;  %v4938_v15 = vld [vmem:[%s5589_s19 + $0xa4] sm:$0xf]  ;;  %v5737_v20 = vor.u32 %v4939_v14, %v4352_v13  ;;  %v4426_v35 = vld [vmem:[#allocation6 + $0x38] sm:$0xf0]  ;;  %s5980_s25 = sld [smem:[#allocation2]] }
  0x6b   : > { %1138 = vmatmul.bf16.gmra.mxu3 %v5617_v3  ;;  %1396 = vmatpush.bf16.msrb.mxu2 %v4461_v63  ;;  %v5719_v63 = vor.u32 %v4936_v54, %v4346_v55  ;;  %v4957_v51 = vld [vmem:[#allocation6 + $0x34] sm:$0xf0]  ;;  %v4552_v54 = vld [vmem:[#allocation6 + $0x128] sm:$0xf]  ;;  %v4360_v55 = vld [vmem:[%s5589_s19 + $0xb0] sm:$0xf] }
  0x6c   : > { %1485 = vmatpush.bf16.msrb.mxu3 %v4589_v1  ;;  %9164 = vst [vmem:[#allocation18_spill] sm:$0xff] %v5737_v20  ;;  %s4269_s16 = sshll.u32 %s5585_s28, 9  ;;  %s5079_s12 = sshll.u32 %s5505_s0, 9 }
  0x6d   : > { %1219 = vmatpush.bf16.msrb.mxu0 %v4441_v50  ;;  %9160 = vst [vmem:[#allocation14_spill] sm:$0xff] %v5719_v63  ;;  %v4424_v50 = vld [vmem:[#allocation6 + $0x28] sm:$0xf]  ;;  %s8592_s11 = scalar_lea.vmem [#allocation9], %s4269_s16  ;;  %s4160_s6 = scalar_lea.hbm %s8995_s5, %s5079_s12 }
  0x6e   : > { %1308 = vmatpush.bf16.msrb.mxu1 %v4569_v56  ;;  %v4941_v56 = vld [vmem:[%s5589_s19 + $0xb4] sm:$0xf0]  ;;  %s4161_s29 = sshll.u32 %s8592_s11, 4  ;;  %s4163_s7 = sshll.u32 %s4160_s6, 4  ;;  %s4162_s29 = int_to_ptr.vmem [resolvable:$true] %s4161_s29  ;;  %s4164_s7 = int_to_ptr.hbm [resolvable:$true] %s4163_s7 }
  0x6f   : > { %1397 = vmatpush.bf16.msrb.mxu2 %v4445_v34  ;;  %v4955_v34 = vld [vmem:[#allocation6 + $0x2c] sm:$0xf]  ;;  %s4148_s0 = scalar_lea.sflag [#allocation5], %s5585_s28  ;;  %s5385_s8 = sshra.s32 %s4164_s7, 4  ;;  %s5386_s8 = int_to_ptr.hbm [resolvable:$true] %s5385_s8 }
  0x70   : > { %1486 = vmatpush.bf16.msrb.mxu3 %v4573_v37  ;;  %v4429_v37 = vor.u32 %v4955_v34, %v4426_v35  ;;  %s5387_s9 = scalar_lea.hbm %s5386_s8, 512  ;;  %p5392_p7 = scmp.lt.s32.totalorder %s5386_s8, %s8995_s5 }
  0x71   : > { %p5388_p1 = scmp.ne.s32.totalorder %s5386_s8, %s5387_s9 }
  0x73   : > { %1398 = vmatpush.bf16.msrb.mxu2 %v4429_v37  ;;  %v4368_v37 = vld [vmem:[%s5589_s19 + $0xc0] sm:$0xf]  ;;  %p5389_p4 = pnand %p5388_p1, %p5555_p3 }
  0x75   : > { %p5390_p8 = pneg %p5389_p4 }
  0x78   : > { %876 = vmatmul.bf16.gmra.mxu0 %v5627_v8 }
  0x79   : > { %965 = vmatmul.bf16.gmra.mxu1 %v5629_v9 }
  0x7a   : > { %1054 = vmatmul.bf16.gmra.mxu2 %v5627_v8 }
  0x7b   : > { %1143 = vmatmul.bf16.gmra.mxu3 %v5629_v9 }
  0x88   : > { %881 = vmatmul.bf16.gmra.mxu0 %v5639_v26 }
  0x89   : > { %970 = vmatmul.bf16.gmra.mxu1 %v5641_v27 }
  0x8a   : > { %1059 = vmatmul.bf16.gmra.mxu2 %v5639_v26 }
  0x8b   : > { %1148 = vmatmul.bf16.gmra.mxu3 %v5641_v27 }
  0x98   : > { %886 = vmatmul.bf16.gmra.mxu0 %v5651_v32 }
  0x99   : > { %975 = vmatmul.bf16.gmra.mxu1 %v5653_v33 }
  0x9a   : > { %1064 = vmatmul.bf16.gmra.mxu2 %v5651_v32 }
  0x9b   : > { %1153 = vmatmul.bf16.gmra.mxu3 %v5653_v33 }
  0xa8   : > { %891 = vmatmul.bf16.gmra.mxu0 %v5663_v52 }
  0xa9   : > { %980 = vmatmul.bf16.gmra.mxu1 %v5665_v53 }
  0xaa   : > { %1069 = vmatmul.bf16.gmra.mxu2 %v5663_v52 }
  0xab   : > { %1158 = vmatmul.bf16.gmra.mxu3 %v5665_v53 }
  0xb8   : > { %896 = vmatmul.bf16.gmra.mxu0 %v5675_v58 }
  0xb9   : > { %985 = vmatmul.bf16.gmra.mxu1 %v5677_v59 }
  0xba   : > { %1074 = vmatmul.bf16.gmra.mxu2 %v5675_v58 }
  0xbb   : > { %1163 = vmatmul.bf16.gmra.mxu3 %v5677_v59 }
  0xc8   : > { %901 = vmatmul.bf16.gmra.mxu0 %v5687_v16 }
  0xc9   : > { %990 = vmatmul.bf16.gmra.mxu1 %v5689_v17 }
  0xca   : > { %1079 = vmatmul.bf16.gmra.mxu2 %v5687_v16 }
  0xcb   : > { %1168 = vmatmul.bf16.gmra.mxu3 %v5689_v17 }
  0xd5   : > { %v867_v23 = vpop.f32.mrf.mxu0 }
  0xd6   : > { %v956_v25 = vpop.f32.mrf.mxu1 }
  0xd7   : > { %v5703_v28 = vadd.f32 %v956_v25, %v867_v23  ;;  %v5739_v25 = vor.u32 %v4938_v15, %v4354_v18 }
  0xd8   : > { %906 = vmatmul.bf16.gmra.mxu0 %v5699_v22 }
  0xd9   : > { %995 = vmatmul.bf16.gmra.mxu1 %v5701_v24  ;;  %9165 = vst [vmem:[#allocation19_spill] sm:$0xff] %v5739_v25 }
  0xda   : > { %1084 = vmatmul.bf16.gmra.mxu2 %v5699_v22 }
  0xdb   : > { %1173 = vmatmul.bf16.gmra.mxu3 %v5701_v24 }
  0xdd   : > { %v1045_v36 = vpop.f32.mrf.mxu2  ;;  %v869_v39 = vpop.f32.mrf.mxu0 }
  0xde   : > { %v1134_v38 = vpop.f32.mrf.mxu3  ;;  %v958_v41 = vpop.f32.mrf.mxu1 }
  0xdf   : > { %v5709_v40 = vadd.f32 %v1134_v38, %v1045_v36  ;;  %v5711_v42 = vadd.f32 %v958_v41, %v869_v39  ;;  %v4987_v36 = vld [vmem:[#allocation6 + $0x12c] sm:$0xf]  ;;  %v4554_v38 = vld [vmem:[#allocation6 + $0x138] sm:$0xf0] }
  0xe0   : > { %v4557_v41 = vor.u32 %v4987_v36, %v4554_v38  ;;  %v4943_v38 = vld [vmem:[%s5589_s19 + $0xc4] sm:$0xf0] }
  0xe2   : > { %1487 = vmatpush.bf16.msrb.mxu3 %v4557_v41  ;;  %v4370_v41 = vld [vmem:[%s5589_s19 + $0xc8] sm:$0xf0] }
  0xe5   : > { %v1047_v57 = vpop.f32.mrf.mxu2  ;;  %v872_v62 = vpop.f32.mrf.mxu0 }
  0xe6   : > { %v1136_v61 = vpop.f32.mrf.mxu3  ;;  %v961_v1 = vpop.f32.mrf.mxu1 }
  0xe7   : > { %v5721_v0 = vadd.f32 %v1136_v61, %v1047_v57  ;;  %v5723_v4 = vadd.f32 %v961_v1, %v872_v62  ;;  %v4425_v57 = vor.u32 %v4957_v51, %v4424_v50  ;;  %v4989_v61 = vld [vmem:[#allocation6 + $0x134] sm:$0xf0]  ;;  %v4940_v62 = vld [vmem:[%s5589_s19 + $0xb4] sm:$0xf]  ;;  %v4362_v1 = vld [vmem:[%s5589_s19 + $0xb8] sm:$0xf0] }
  0xe8   : > { %911 = vmatmul.bf16.gmra.mxu0 %v5717_v60  ;;  %v5759_v14 = vor.u32 %v4940_v62, %v4362_v1  ;;  %v4983_v62 = vld [vmem:[#allocation6 + $0x10c] sm:$0xf] }
  0xe9   : > { %9161 = vst [vmem:[#allocation15_spill] sm:$0xff] %v5723_v4  ;;  %1000 = vmatmul.bf16.gmra.mxu1 %v5719_v63  ;;  %1220 = vmatpush.bf16.msrb.mxu0 %v4425_v57  ;;  %v4951_v57 = vld [vmem:[#allocation6 + $0xc] sm:$0xf] }
  0xea   : > { %1089 = vmatmul.bf16.gmra.mxu2 %v5717_v60  ;;  %9171 = vst [vmem:[#allocation25_spill] sm:$0xff] %v5759_v14 }
  0xeb   : > { %1178 = vmatmul.bf16.gmra.mxu3 %v5719_v63 }
  0xed   : > { %v1050_v5 = vpop.f32.mrf.mxu2  ;;  %v874_v7 = vpop.f32.mrf.mxu0 }
  0xee   : > { %v1139_v6 = vpop.f32.mrf.mxu3  ;;  %v963_v11 = vpop.f32.mrf.mxu1 }
  0xef   : > { %v5729_v10 = vadd.f32 %v1139_v6, %v1050_v5  ;;  %v5731_v12 = vadd.f32 %v963_v11, %v874_v7  ;;  %v4553_v5 = vor.u32 %v4989_v61, %v4552_v54  ;;  %v5757_v7 = vor.u32 %v4941_v56, %v4360_v55  ;;  %v4410_v61 = vld [vmem:[#allocation6 + $0x18] sm:$0xf0] }
  0xf0   : > { %v4413_v1 = vor.u32 %v4951_v57, %v4410_v61 }
  0xf1   : > { %9162 = vst [vmem:[#allocation16_spill] sm:$0xff] %v5729_v10  ;;  %1309 = vmatpush.bf16.msrb.mxu1 %v4553_v5  ;;  %v4538_v5 = vld [vmem:[#allocation6 + $0x118] sm:$0xf0] }
  0xf2   : > { %9163 = vst [vmem:[#allocation17_spill] sm:$0xff] %v5731_v12  ;;  %1399 = vmatpush.bf16.msrb.mxu2 %v4413_v1 }
  0xf3   : > { %9170 = vst [vmem:[#allocation24_spill] sm:$0xff] %v5757_v7 }
  0xf5   : > { %v1052_v19 = vpop.f32.mrf.mxu2  ;;  %v877_v23 = vpop.f32.mrf.mxu0 }
  0xf6   : > { %v1141_v21 = vpop.f32.mrf.mxu3  ;;  %v966_v30 = vpop.f32.mrf.mxu1 }
  0xf7   : > { %v5741_v29 = vadd.f32 %v1141_v21, %v1052_v19  ;;  %v5743_v31 = vadd.f32 %v966_v30, %v877_v23 }
  0xf8   : > { %916 = vmatmul.bf16.gmra.mxu0 %v5737_v20 }
  0xf9   : > { %9166 = vst [vmem:[#allocation20_spill] sm:$0xff] %v5741_v29  ;;  %1005 = vmatmul.bf16.gmra.mxu1 %v5739_v25 }
  0xfa   : > { %9167 = vst [vmem:[#allocation21_spill] sm:$0xff] %v5743_v31  ;;  %1094 = vmatmul.bf16.gmra.mxu2 %v5737_v20  ;;  %v4394_v20 = vld [vmem:[%s5589_s19 + $0xf8] sm:$0xf0] }
  0xfb   : > { %1183 = vmatmul.bf16.gmra.mxu3 %v5739_v25  ;;  %v4948_v25 = vld [vmem:[%s5589_s19 + $0xf4] sm:$0xf] }
  0xfd   : > { %v1055_v39 = vpop.f32.mrf.mxu2  ;;  %v879_v45 = vpop.f32.mrf.mxu0 }
  0xfe   : > { %v1144_v44 = vpop.f32.mrf.mxu3  ;;  %v968_v48 = vpop.f32.mrf.mxu1 }
  0xff   : > { %v5749_v46 = vadd.f32 %v1144_v44, %v1055_v39  ;;  %v5751_v49 = vadd.f32 %v968_v48, %v879_v45  ;;  %v4942_v39 = vld [vmem:[%s5589_s19 + $0xc4] sm:$0xf]  ;;  %v5777_v45 = vor.u32 %v4943_v38, %v4368_v37  ;;  %v4953_v37 = vld [vmem:[#allocation6 + $0x14] sm:$0xf0]  ;;  %v4536_v38 = vld [vmem:[#allocation6 + $0x108] sm:$0xf] }
 0x100   : > { %v5779_v51 = vor.u32 %v4942_v39, %v4370_v41  ;;  %v4376_v39 = vld [vmem:[%s5589_s19 + $0xd0] sm:$0xf]  ;;  %v4945_v41 = vld [vmem:[%s5589_s19 + $0xd4] sm:$0xf0] }
 0x101   : > { %9168 = vst [vmem:[#allocation22_spill] sm:$0xff] %v5749_v46 }
 0x102   : > { %9169 = vst [vmem:[#allocation23_spill] sm:$0xff] %v5751_v49 }
 0x103   : > { %9176 = vst [vmem:[#allocation30_spill] sm:$0xff] %v5777_v45 }
 0x104   : > { %9177 = vst [vmem:[#allocation31_spill] sm:$0xff] %v5779_v51 }
 0x105   : > { %v1057_v6 = vpop.f32.mrf.mxu2  ;;  %v882_v13 = vpop.f32.mrf.mxu0 }
 0x106   : > { %v1146_v11 = vpop.f32.mrf.mxu3  ;;  %v971_v18 = vpop.f32.mrf.mxu1 }
 0x107   : > { %v5761_v15 = vadd.f32 %v1146_v11, %v1057_v6  ;;  %v5763_v19 = vadd.f32 %v971_v18, %v882_v13  ;;  %v4541_v11 = vor.u32 %v4983_v62, %v4538_v5  ;;  %v5797_v62 = vor.u32 %v4945_v41, %v4376_v39 }
 0x108   : > { %921 = vmatmul.bf16.gmra.mxu0 %v5757_v7 }
 0x109   : > { %9172 = vst [vmem:[#allocation26_spill] sm:$0xff] %v5761_v15  ;;  %1010 = vmatmul.bf16.gmra.mxu1 %v5759_v14  ;;  %1488 = vmatpush.bf16.msrb.mxu3 %v4541_v11 }
 0x10a   : > { %9173 = vst [vmem:[#allocation27_spill] sm:$0xff] %v5763_v19  ;;  %1099 = vmatmul.bf16.gmra.mxu2 %v5757_v7  ;;  %v4949_v7 = vld [vmem:[%s5589_s19 + $0xf4] sm:$0xf0] }
 0x10b   : > { %1188 = vmatmul.bf16.gmra.mxu3 %v5759_v14  ;;  %9182 = vst [vmem:[#allocation36_spill] sm:$0xff] %v5797_v62  ;;  %v4392_v14 = vld [vmem:[%s5589_s19 + $0xf0] sm:$0xf] }
 0x10c   : > { %v5837_v63 = vor.u32 %v4949_v7, %v4392_v14 }
 0x10d   : > { %v1060_v21 = vpop.f32.mrf.mxu2  ;;  %v884_v30 = vpop.f32.mrf.mxu0 }
 0x10e   : > { %v1149_v23 = vpop.f32.mrf.mxu3  ;;  %v973_v35 = vpop.f32.mrf.mxu1  ;;  %9194 = vst [vmem:[#allocation48_spill] sm:$0xff] %v5837_v63 }
 0x10f   : > { %v5769_v34 = vadd.f32 %v1149_v23, %v1060_v21  ;;  %v5771_v36 = vadd.f32 %v973_v35, %v884_v30  ;;  %v4408_v35 = vld [vmem:[#allocation6 + $0x8] sm:$0xf] }
 0x111   : > { %9174 = vst [vmem:[#allocation28_spill] sm:$0xff] %v5769_v34 }
 0x112   : > { %9175 = vst [vmem:[#allocation29_spill] sm:$0xff] %v5771_v36 }
 0x115   : > { %v1062_v44 = vpop.f32.mrf.mxu2  ;;  %v887_v50 = vpop.f32.mrf.mxu0 }
 0x116   : > { %v1151_v48 = vpop.f32.mrf.mxu3  ;;  %v976_v55 = vpop.f32.mrf.mxu1 }
 0x117   : > { %v5781_v54 = vadd.f32 %v1151_v48, %v1062_v44  ;;  %v5783_v56 = vadd.f32 %v976_v55, %v887_v50  ;;  %v4409_v44 = vor.u32 %v4953_v37, %v4408_v35  ;;  %v4985_v48 = vld [vmem:[#allocation6 + $0x114] sm:$0xf0]  ;;  %v4944_v50 = vld [vmem:[%s5589_s19 + $0xd4] sm:$0xf]  ;;  %v4378_v55 = vld [vmem:[%s5589_s19 + $0xd8] sm:$0xf0] }
 0x118   : > { %926 = vmatmul.bf16.gmra.mxu0 %v5777_v45  ;;  %v4537_v57 = vor.u32 %v4985_v48, %v4536_v38  ;;  %v4947_v48 = vld [vmem:[%s5589_s19 + $0xe4] sm:$0xf0] }
 0x119   : > { %9178 = vst [vmem:[#allocation32_spill] sm:$0xff] %v5781_v54  ;;  %1015 = vmatmul.bf16.gmra.mxu1 %v5779_v51  ;;  %1221 = vmatpush.bf16.msrb.mxu0 %v4409_v44  ;;  %v4384_v44 = vld [vmem:[%s5589_s19 + $0xe0] sm:$0xf] }
 0x11a   : > { %9179 = vst [vmem:[#allocation33_spill] sm:$0xff] %v5783_v56  ;;  %1104 = vmatmul.bf16.gmra.mxu2 %v5777_v45  ;;  %1310 = vmatpush.bf16.msrb.mxu1 %v4537_v57  ;;  %v4776_v45 = vld [vmem:[#allocation8 + $0xf0] sm:$0xf] }
 0x11b   : > { %1193 = vmatmul.bf16.gmra.mxu3 %v5779_v51 }
 0x11d   : > { %v1065_v6 = vpop.f32.mrf.mxu2  ;;  %v889_v18 = vpop.f32.mrf.mxu0 }
 0x11e   : > { %v1154_v13 = vpop.f32.mrf.mxu3  ;;  %v978_v23 = vpop.f32.mrf.mxu1 }
 0x11f   : > { %v5789_v21 = vadd.f32 %v1154_v13, %v1065_v6  ;;  %v5791_v30 = vadd.f32 %v978_v23, %v889_v18  ;;  %v5799_v6 = vor.u32 %v4944_v50, %v4378_v55  ;;  %v4946_v50 = vld [vmem:[%s5589_s19 + $0xe4] sm:$0xf]  ;;  %v4386_v55 = vld [vmem:[%s5589_s19 + $0xe8] sm:$0xf0]  ;;  %s5391_s19 = scalar_lea.hbm %s8995_s5, 1536 }
 0x120   : > { %p5393_p2 = scmp.lt.s32.totalorder %s5391_s19, %s5387_s9 }
 0x121   : > { %9180 = vst [vmem:[#allocation34_spill] sm:$0xff] %v5789_v21 }
 0x122   : > { %9181 = vst [vmem:[#allocation35_spill] sm:$0xff] %v5791_v30  ;;  %p5394_p9 = por %p5393_p2, %p5392_p7 }
 0x123   : > { %9183 = vst [vmem:[#allocation37_spill] sm:$0xff] %v5799_v6 }
 0x124   : > { %p5395_p10 = pnand %p5394_p9, %p5390_p8 }
 0x125   : > { %v1067_v61 = vpop.f32.mrf.mxu2  ;;  %v892_v5 = vpop.f32.mrf.mxu0 }
 0x126   : > { %v1156_v1 = vpop.f32.mrf.mxu3  ;;  %v981_v13 = vpop.f32.mrf.mxu1 }
 0x127   : > { %v5801_v11 = vadd.f32 %v1156_v1, %v1067_v61  ;;  %v5803_v18 = vadd.f32 %v981_v13, %v892_v5  ;;  %v5817_v61 = vor.u32 %v4947_v48, %v4384_v44  ;;  %v5819_v13 = vor.u32 %v4946_v50, %v4386_v55  ;;  %v5077_v44 = vld [vmem:[#allocation8 + $0x1f4] sm:$0xf0] }
 0x128   : > { %931 = vmatmul.bf16.gmra.mxu0 %v5797_v62 }
 0x129   : > { %9184 = vst [vmem:[#allocation38_spill] sm:$0xff] %v5801_v11  ;;  %1020 = vmatmul.bf16.gmra.mxu1 %v5799_v6 }
 0x12a   : > { %9185 = vst [vmem:[#allocation39_spill] sm:$0xff] %v5803_v18  ;;  %1109 = vmatmul.bf16.gmra.mxu2 %v5797_v62 }
 0x12b   : > { %1198 = vmatmul.bf16.gmra.mxu3 %v5799_v6  ;;  %9188 = vst [vmem:[#allocation42_spill] sm:$0xff] %v5817_v61 }
 0x12c   : > { %9189 = vst [vmem:[#allocation43_spill] sm:$0xff] %v5819_v13 }
 0x12d   : > { %v1070_v23 = vpop.f32.mrf.mxu2  ;;  %v894_v37 = vpop.f32.mrf.mxu0 }
 0x12e   : > { %v1159_v35 = vpop.f32.mrf.mxu3  ;;  %v983_v39 = vpop.f32.mrf.mxu1 }
 0x12f   : > { %v5809_v38 = vadd.f32 %v1159_v35, %v1070_v23  ;;  %v5811_v41 = vadd.f32 %v983_v39, %v894_v37  ;;  %v4840_v23 = vld [vmem:[#allocation8 + $0x170] sm:$0xf]  ;;  %v5061_v35 = vld [vmem:[#allocation8 + $0x174] sm:$0xf0] }
 0x130   : > { %v4904_v37 = vld [vmem:[#allocation8 + $0x1f0] sm:$0xf]  ;;  %v4841_v39 = vor.u32 %v5061_v35, %v4840_v23  ;;  %v5045_v35 = vld [vmem:[#allocation8 + $0xf4] sm:$0xf0] }
 0x131   : > { %9186 = vst [vmem:[#allocation40_spill] sm:$0xff] %v5809_v38  ;;  %v4905_v50 = vor.u32 %v5077_v44, %v4904_v37  ;;  %v4777_v37 = vor.u32 %v5045_v35, %v4776_v45 }
 0x132   : > { %9187 = vst [vmem:[#allocation41_spill] sm:$0xff] %v5811_v41  ;;  %3549 = vmatpush.bf16.msra.mxu2 %v4841_v39 }
 0x133   : > { %3638 = vmatpush.bf16.msra.mxu3 %v4905_v50  ;;  %3460 = vmatpush.bf16.msra.mxu1 %v4777_v37  ;;  %v5839_v50 = vor.u32 %v4948_v25, %v4394_v20 }
 0x135   : > { %v1072_v57 = vpop.f32.mrf.mxu2  ;;  %v897_v5 = vpop.f32.mrf.mxu0  ;;  %9195 = vst [vmem:[#allocation49_spill] sm:$0xff] %v5839_v50 }
 0x136   : > { %v1161_v1 = vpop.f32.mrf.mxu3  ;;  %v986_v62 = vpop.f32.mrf.mxu1 }
 0x137   : > { %v5821_v6 = vadd.f32 %v1161_v1, %v1072_v57  ;;  %v5823_v51 = vadd.f32 %v986_v62, %v897_v5 }
 0x138   : > { %936 = vmatmul.bf16.gmra.mxu0 %v5817_v61 }
 0x139   : > { %9190 = vst [vmem:[#allocation44_spill] sm:$0xff] %v5821_v6  ;;  %1025 = vmatmul.bf16.gmra.mxu1 %v5819_v13 }
 0x13a   : > { %9191 = vst [vmem:[#allocation45_spill] sm:$0xff] %v5823_v51  ;;  %1114 = vmatmul.bf16.gmra.mxu2 %v5817_v61  ;;  %v5029_v61 = vld [vmem:[#allocation8 + $0x74] sm:$0xf0] }
 0x13b   : > { %1203 = vmatmul.bf16.gmra.mxu3 %v5819_v13  ;;  %v4712_v13 = vld [vmem:[#allocation8 + $0x70] sm:$0xf] }
 0x13c   : > { %v4713_v23 = vor.u32 %v5029_v61, %v4712_v13 }
 0x13d   : > { %v1075_v48 = vpop.f32.mrf.mxu2  ;;  %v899_v55 = vpop.f32.mrf.mxu0 }
 0x13e   : > { %v1164_v62 = vpop.f32.mrf.mxu3  ;;  %v988_v1 = vpop.f32.mrf.mxu1  ;;  %3371 = vmatpush.bf16.msra.mxu0 %v4713_v23 }
 0x13f   : > { %v5829_v57 = vadd.f32 %v1164_v62, %v1075_v48  ;;  %v5831_v5 = vadd.f32 %v988_v1, %v899_v55 }
 0x141   : > { %9192 = vst [vmem:[#allocation46_spill] sm:$0xff] %v5829_v57 }
 0x142   : > { %9193 = vst [vmem:[#allocation47_spill] sm:$0xff] %v5831_v5 }
 0x145   : > { %v1077_v44 = vpop.f32.mrf.mxu2  ;;  %v902_v48 = vpop.f32.mrf.mxu0 }
 0x146   : > { %v1166_v39 = vpop.f32.mrf.mxu3  ;;  %v991_v55 = vpop.f32.mrf.mxu1 }
 0x147   : > { %v5841_v62 = vadd.f32 %v1166_v39, %v1077_v44  ;;  %v5843_v1 = vadd.f32 %v991_v55, %v902_v48  ;;  %v4832_v48 = vld [vmem:[#allocation8 + $0x160] sm:$0xf]  ;;  %v5059_v55 = vld [vmem:[#allocation8 + $0x164] sm:$0xf0] }
 0x148   : > { %941 = vmatmul.bf16.gmra.mxu0 %v5837_v63 }
 0x149   : > { %9196 = vst [vmem:[#allocation50_spill] sm:$0xff] %v5841_v62  ;;  %1030 = vmatmul.bf16.gmra.mxu1 %v5839_v50 }
 0x14a   : > { %9197 = vst [vmem:[#allocation51_spill] sm:$0xff] %v5843_v1  ;;  %1119 = vmatmul.bf16.gmra.mxu2 %v5837_v63 }
 0x14b   : > { %1208 = vmatmul.bf16.gmra.mxu3 %v5839_v50 }
 0x14d   : > { %v1080_v7 = vpop.f32.mrf.mxu2  ;;  %v904_v45 = vpop.f32.mrf.mxu0 }
 0x14e   : > { %v1169_v14 = vpop.f32.mrf.mxu3  ;;  %v993_v20 = vpop.f32.mrf.mxu1 }
 0x14f   : > { %v5849_v61 = vadd.f32 %v1169_v14, %v1080_v7  ;;  %v5851_v25 = vadd.f32 %v993_v20, %v904_v45  ;;  %v4896_v7 = vld [vmem:[#allocation8 + $0x1e0] sm:$0xf]  ;;  %v4833_v14 = vor.u32 %v5059_v55, %v4832_v48  ;;  %v5075_v45 = vld [vmem:[#allocation8 + $0x1e4] sm:$0xf0] }
 0x150   : > { %v4897_v50 = vor.u32 %v5075_v45, %v4896_v7 }
 0x151   : > { %9198 = vst [vmem:[#allocation52_spill] sm:$0xff] %v5849_v61  ;;  %3550 = vmatpush.bf16.msra.mxu2 %v4833_v14 }
 0x152   : > { %9199 = vst [vmem:[#allocation53_spill] sm:$0xff] %v5851_v25  ;;  %3639 = vmatpush.bf16.msra.mxu3 %v4897_v50  ;;  %v5043_v25 = vld [vmem:[#allocation8 + $0xe4] sm:$0xf0] }
 0x155   : > { %v1082_v13 = vpop.f32.mrf.mxu2  ;;  %v907_v35 = vpop.f32.mrf.mxu0 }
 0x156   : > { %v1171_v23 = vpop.f32.mrf.mxu3  ;;  %v996_v44 = vpop.f32.mrf.mxu1 }
 0x157   : > { %v5853_v37 = vadd.f32 %v1171_v23, %v1082_v13  ;;  %v5855_v39 = vadd.f32 %v996_v44, %v907_v35 }
 0x158   : > { %1222 = vmatmul.bf16.vlgmr.msrb.gmra.mxu0 %v5603_v43 }
 0x159   : > { %9200 = vst [vmem:[#allocation54_spill] sm:$0xff] %v5853_v37  ;;  %1311 = vmatmul.bf16.vlgmr.msrb.gmra.mxu1 %v5605_v47  ;;  %v4768_v37 = vld [vmem:[#allocation8 + $0xe0] sm:$0xf] }
 0x15a   : > { %9201 = vst [vmem:[#allocation55_spill] sm:$0xff] %v5855_v39  ;;  %1400 = vmatmul.bf16.vlgmr.msrb.gmra.mxu2 %v5603_v43  ;;  %v4704_v39 = vld [vmem:[#allocation8 + $0x60] sm:$0xf]  ;;  %v5027_v43 = vld [vmem:[#allocation8 + $0x64] sm:$0xf0]  ;;  %v4769_v60 = vor.u32 %v5043_v25, %v4768_v37 }
 0x15b   : > { %1489 = vmatmul.bf16.vlgmr.msrb.gmra.mxu3 %v5605_v47  ;;  %v4705_v47 = vor.u32 %v5027_v43, %v4704_v39 }
 0x15c   : > { %3461 = vmatpush.bf16.msra.mxu1 %v4769_v60 }
 0x15d   : > { %v1085_v20 = vpop.f32.mrf.mxu2  ;;  %v909_v23 = vpop.f32.mrf.mxu0  ;;  %3372 = vmatpush.bf16.msra.mxu0 %v4705_v47 }
 0x15e   : > { %v1174_v13 = vpop.f32.mrf.mxu3  ;;  %v998_v44 = vpop.f32.mrf.mxu1 }
 0x15f   : > { %v5861_v35 = vadd.f32 %v1174_v13, %v1085_v20  ;;  %v5863_v63 = vadd.f32 %v998_v44, %v909_v23 }
 0x161   : > { %9202 = vst [vmem:[#allocation56_spill] sm:$0xff] %v5861_v35 }
 0x162   : > { %9203 = vst [vmem:[#allocation57_spill] sm:$0xff] %v5863_v63 }
 0x165   : > { %v1087_v48 = vpop.f32.mrf.mxu2  ;;  %v912_v7 = vpop.f32.mrf.mxu0 }
 0x166   : > { %v1176_v55 = vpop.f32.mrf.mxu3  ;;  %v1001_v14 = vpop.f32.mrf.mxu1 }
 0x167   : > { %v5865_v45 = vadd.f32 %v1176_v55, %v1087_v48  ;;  %v5867_v20 = vadd.f32 %v1001_v14, %v912_v7  ;;  %v4888_v7 = vld [vmem:[#allocation8 + $0x1d0] sm:$0xf] }
 0x168   : > { %1227 = vmatmul.bf16.gmra.mxu0 %v5615_v2 }
 0x169   : > { %9204 = vst [vmem:[#allocation58_spill] sm:$0xff] %v5865_v45  ;;  %1316 = vmatmul.bf16.gmra.mxu1 %v5617_v3 }
 0x16a   : > { %9205 = vst [vmem:[#allocation59_spill] sm:$0xff] %v5867_v20  ;;  %1405 = vmatmul.bf16.gmra.mxu2 %v5615_v2  ;;  %v4824_v2 = vld [vmem:[#allocation8 + $0x150] sm:$0xf] }
 0x16b   : > { %1494 = vmatmul.bf16.gmra.mxu3 %v5617_v3  ;;  %v5057_v3 = vld [vmem:[#allocation8 + $0x154] sm:$0xf0] }
 0x16c   : > { %v4825_v14 = vor.u32 %v5057_v3, %v4824_v2 }
 0x16d   : > { %v1090_v50 = vpop.f32.mrf.mxu2  ;;  %v914_v37 = vpop.f32.mrf.mxu0 }
 0x16e   : > { %v1179_v25 = vpop.f32.mrf.mxu3  ;;  %v1003_v60 = vpop.f32.mrf.mxu1  ;;  %3551 = vmatpush.bf16.msra.mxu2 %v4825_v14 }
 0x16f   : > { %v5873_v39 = vadd.f32 %v1179_v25, %v1090_v50  ;;  %v5875_v13 = vadd.f32 %v1003_v60, %v914_v37  ;;  %v5073_v50 = vld [vmem:[#allocation8 + $0x1d4] sm:$0xf0] }
 0x170   : > { %v4889_v37 = vor.u32 %v5073_v50, %v4888_v7 }
 0x171   : > { %9206 = vst [vmem:[#allocation60_spill] sm:$0xff] %v5873_v39 }
 0x172   : > { %9207 = vst [vmem:[#allocation61_spill] sm:$0xff] %v5875_v13  ;;  %3640 = vmatpush.bf16.msra.mxu3 %v4889_v37  ;;  %v5041_v13 = vld [vmem:[#allocation8 + $0xd4] sm:$0xf0] }
 0x175   : > { %v1092_v23 = vpop.f32.mrf.mxu2  ;;  %v917_v43 = vpop.f32.mrf.mxu0 }
 0x176   : > { %v1181_v44 = vpop.f32.mrf.mxu3  ;;  %v1006_v48 = vpop.f32.mrf.mxu1 }
 0x177   : > { %v5877_v47 = vadd.f32 %v1181_v44, %v1092_v23  ;;  %v5879_v55 = vadd.f32 %v1006_v48, %v917_v43 }
 0x178   : > { %1232 = vmatmul.bf16.gmra.mxu0 %v5627_v8 }
 0x179   : > { %9208 = vst [vmem:[#allocation62_spill] sm:$0xff] %v5877_v47  ;;  %1321 = vmatmul.bf16.gmra.mxu1 %v5629_v9  ;;  %v4760_v47 = vld [vmem:[#allocation8 + $0xd0] sm:$0xf] }
 0x17a   : > { %9209 = vst [vmem:[#allocation63_spill] sm:$0xff] %v5879_v55  ;;  %1410 = vmatmul.bf16.gmra.mxu2 %v5627_v8  ;;  %v4696_v55 = vld [vmem:[#allocation8 + $0x50] sm:$0xf]  ;;  %v5025_v8 = vld [vmem:[#allocation8 + $0x54] sm:$0xf0]  ;;  %v4761_v39 = vor.u32 %v5041_v13, %v4760_v47 }
 0x17b   : > { %1499 = vmatmul.bf16.gmra.mxu3 %v5629_v9  ;;  %v4697_v9 = vor.u32 %v5025_v8, %v4696_v55 }
 0x17c   : > { %3462 = vmatpush.bf16.msra.mxu1 %v4761_v39 }
 0x17d   : > { %v1095_v25 = vpop.f32.mrf.mxu2  ;;  %v919_v23 = vpop.f32.mrf.mxu0  ;;  %3373 = vmatpush.bf16.msra.mxu0 %v4697_v9 }
 0x17e   : > { %v1184_v60 = vpop.f32.mrf.mxu3  ;;  %v1008_v43 = vpop.f32.mrf.mxu1 }
 0x17f   : > { %v5885_v44 = vadd.f32 %v1184_v60, %v1095_v25  ;;  %v5887_v48 = vadd.f32 %v1008_v43, %v919_v23 }
 0x181   : > { %9210 = vst [vmem:[#allocation64_spill] sm:$0xff] %v5885_v44 }
 0x182   : > { %9211 = vst [vmem:[#allocation65_spill] sm:$0xff] %v5887_v48 }
 0x185   : > { %v1097_v2 = vpop.f32.mrf.mxu2  ;;  %v922_v7 = vpop.f32.mrf.mxu0 }
 0x186   : > { %v1186_v3 = vpop.f32.mrf.mxu3  ;;  %v1011_v14 = vpop.f32.mrf.mxu1 }
 0x187   : > { %v5889_v50 = vadd.f32 %v1186_v3, %v1097_v2  ;;  %v5891_v25 = vadd.f32 %v1011_v14, %v922_v7  ;;  %v4880_v7 = vld [vmem:[#allocation8 + $0x1c0] sm:$0xf] }
 0x188   : > { %1237 = vmatmul.bf16.gmra.mxu0 %v5639_v26 }
 0x189   : > { %9212 = vst [vmem:[#allocation66_spill] sm:$0xff] %v5889_v50  ;;  %1326 = vmatmul.bf16.gmra.mxu1 %v5641_v27 }
 0x18a   : > { %9213 = vst [vmem:[#allocation67_spill] sm:$0xff] %v5891_v25  ;;  %1415 = vmatmul.bf16.gmra.mxu2 %v5639_v26  ;;  %v4816_v26 = vld [vmem:[#allocation8 + $0x140] sm:$0xf] }
 0x18b   : > { %1504 = vmatmul.bf16.gmra.mxu3 %v5641_v27  ;;  %v5055_v27 = vld [vmem:[#allocation8 + $0x144] sm:$0xf0] }
 0x18c   : > { %v4817_v14 = vor.u32 %v5055_v27, %v4816_v26 }
 0x18d   : > { %v1100_v55 = vpop.f32.mrf.mxu2  ;;  %v924_v47 = vpop.f32.mrf.mxu0 }
 0x18e   : > { %v1189_v13 = vpop.f32.mrf.mxu3  ;;  %v1013_v39 = vpop.f32.mrf.mxu1  ;;  %3552 = vmatpush.bf16.msra.mxu2 %v4817_v14 }
 0x18f   : > { %v5897_v37 = vadd.f32 %v1189_v13, %v1100_v55  ;;  %v5899_v60 = vadd.f32 %v1013_v39, %v924_v47  ;;  %v5071_v55 = vld [vmem:[#allocation8 + $0x1c4] sm:$0xf0] }
 0x190   : > { %v4881_v47 = vor.u32 %v5071_v55, %v4880_v7 }
 0x191   : > { %9214 = vst [vmem:[#allocation68_spill] sm:$0xff] %v5897_v37 }
 0x192   : > { %9215 = vst [vmem:[#allocation69_spill] sm:$0xff] %v5899_v60  ;;  %3641 = vmatpush.bf16.msra.mxu3 %v4881_v47  ;;  %v5039_v60 = vld [vmem:[#allocation8 + $0xc4] sm:$0xf0] }
 0x195   : > { %v1102_v23 = vpop.f32.mrf.mxu2  ;;  %v927_v8 = vpop.f32.mrf.mxu0 }
 0x196   : > { %v1191_v43 = vpop.f32.mrf.mxu3  ;;  %v1016_v2 = vpop.f32.mrf.mxu1 }
 0x197   : > { %v5901_v9 = vadd.f32 %v1191_v43, %v1102_v23  ;;  %v5903_v3 = vadd.f32 %v1016_v2, %v927_v8 }
 0x198   : > { %1242 = vmatmul.bf16.gmra.mxu0 %v5651_v32 }
 0x199   : > { %9216 = vst [vmem:[#allocation70_spill] sm:$0xff] %v5901_v9  ;;  %1331 = vmatmul.bf16.gmra.mxu1 %v5653_v33  ;;  %v4752_v9 = vld [vmem:[#allocation8 + $0xc0] sm:$0xf] }
 0x19a   : > { %9217 = vst [vmem:[#allocation71_spill] sm:$0xff] %v5903_v3  ;;  %1420 = vmatmul.bf16.gmra.mxu2 %v5651_v32  ;;  %v4688_v3 = vld [vmem:[#allocation8 + $0x40] sm:$0xf]  ;;  %v5023_v32 = vld [vmem:[#allocation8 + $0x44] sm:$0xf0]  ;;  %v4753_v37 = vor.u32 %v5039_v60, %v4752_v9 }
 0x19b   : > { %1509 = vmatmul.bf16.gmra.mxu3 %v5653_v33  ;;  %v4689_v33 = vor.u32 %v5023_v32, %v4688_v3 }
 0x19c   : > { %3463 = vmatpush.bf16.msra.mxu1 %v4753_v37 }
 0x19d   : > { %v1105_v13 = vpop.f32.mrf.mxu2  ;;  %v929_v23 = vpop.f32.mrf.mxu0  ;;  %3374 = vmatpush.bf16.msra.mxu0 %v4689_v33 }
 0x19e   : > { %v1194_v39 = vpop.f32.mrf.mxu3  ;;  %v1018_v8 = vpop.f32.mrf.mxu1 }
 0x19f   : > { %v5909_v43 = vadd.f32 %v1194_v39, %v1105_v13  ;;  %v5911_v2 = vadd.f32 %v1018_v8, %v929_v23 }
 0x1a1   : > { %9218 = vst [vmem:[#allocation72_spill] sm:$0xff] %v5909_v43 }
 0x1a2   : > { %9219 = vst [vmem:[#allocation73_spill] sm:$0xff] %v5911_v2 }
 0x1a5   : > { %v1107_v26 = vpop.f32.mrf.mxu2  ;;  %v932_v7 = vpop.f32.mrf.mxu0 }
 0x1a6   : > { %v1196_v27 = vpop.f32.mrf.mxu3  ;;  %v1021_v14 = vpop.f32.mrf.mxu1 }
 0x1a7   : > { %v5913_v55 = vadd.f32 %v1196_v27, %v1107_v26  ;;  %v5915_v13 = vadd.f32 %v1021_v14, %v932_v7 }
 0x1a8   : > { %1247 = vmatmul.bf16.gmra.mxu0 %v5663_v52 }
 0x1a9   : > { %9220 = vst [vmem:[#allocation74_spill] sm:$0xff] %v5913_v55  ;;  %1336 = vmatmul.bf16.gmra.mxu1 %v5665_v53 }
 0x1aa   : > { %9221 = vst [vmem:[#allocation75_spill] sm:$0xff] %v5915_v13  ;;  %1425 = vmatmul.bf16.gmra.mxu2 %v5663_v52 }
 0x1ab   : > { %1514 = vmatmul.bf16.gmra.mxu3 %v5665_v53 }
 0x1ad   : > { %v1110_v3 = vpop.f32.mrf.mxu2  ;;  %v934_v9 = vpop.f32.mrf.mxu0 }
 0x1ae   : > { %v1199_v60 = vpop.f32.mrf.mxu3  ;;  %v1023_v37 = vpop.f32.mrf.mxu1 }
 0x1af   : > { %v5921_v47 = vadd.f32 %v1199_v60, %v1110_v3  ;;  %v5923_v39 = vadd.f32 %v1023_v37, %v934_v9 }
 0x1b1   : > { %9222 = vst [vmem:[#allocation76_spill] sm:$0xff] %v5921_v47 }
 0x1b2   : > { %9223 = vst [vmem:[#allocation77_spill] sm:$0xff] %v5923_v39 }
 0x1b5   : > { %v1112_v23 = vpop.f32.mrf.mxu2  ;;  %v937_v32 = vpop.f32.mrf.mxu0 }
 0x1b6   : > { %v1201_v8 = vpop.f32.mrf.mxu3  ;;  %v1026_v26 = vpop.f32.mrf.mxu1 }
 0x1b7   : > { %v5925_v33 = vadd.f32 %v1201_v8, %v1112_v23  ;;  %v5927_v27 = vadd.f32 %v1026_v26, %v937_v32 }
 0x1b8   : > { %1252 = vmatmul.bf16.gmra.mxu0 %v5675_v58 }
 0x1b9   : > { %9224 = vst [vmem:[#allocation78_spill] sm:$0xff] %v5925_v33  ;;  %1341 = vmatmul.bf16.gmra.mxu1 %v5677_v59 }
 0x1ba   : > { %9225 = vst [vmem:[#allocation79_spill] sm:$0xff] %v5927_v27  ;;  %1430 = vmatmul.bf16.gmra.mxu2 %v5675_v58 }
 0x1bb   : > { %1519 = vmatmul.bf16.gmra.mxu3 %v5677_v59 }
 0x1bd   : > { %v1115_v52 = vpop.f32.mrf.mxu2  ;;  %v939_v7 = vpop.f32.mrf.mxu0 }
 0x1be   : > { %v1204_v53 = vpop.f32.mrf.mxu3  ;;  %v1028_v3 = vpop.f32.mrf.mxu1 }
 0x1bf   : > { %v5933_v14 = vadd.f32 %v1204_v53, %v1115_v52  ;;  %v5935_v60 = vadd.f32 %v1028_v3, %v939_v7 }
 0x1c1   : > { %9226 = vst [vmem:[#allocation80_spill] sm:$0xff] %v5933_v14  ;;  %v5037_v14 = vld [vmem:[#allocation8 + $0xb4] sm:$0xf0] }
 0x1c2   : > { %9227 = vst [vmem:[#allocation81_spill] sm:$0xff] %v5935_v60  ;;  %v4872_v60 = vld [vmem:[#allocation8 + $0x1b0] sm:$0xf] }
 0x1c5   : > { %v1117_v9 = vpop.f32.mrf.mxu2  ;;  %v942_v23 = vpop.f32.mrf.mxu0 }
 0x1c6   : > { %v1206_v37 = vpop.f32.mrf.mxu3  ;;  %v1031_v32 = vpop.f32.mrf.mxu1 }
 0x1c7   : > { %v5937_v8 = vadd.f32 %v1206_v37, %v1117_v9  ;;  %v5939_v26 = vadd.f32 %v1031_v32, %v942_v23 }
 0x1c8   : > { %1257 = vmatmul.bf16.gmra.mxu0 %v5687_v16 }
 0x1c9   : > { %9228 = vst [vmem:[#allocation82_spill] sm:$0xff] %v5937_v8  ;;  %1346 = vmatmul.bf16.gmra.mxu1 %v5689_v17 }
 0x1ca   : > { %9229 = vst [vmem:[#allocation83_spill] sm:$0xff] %v5939_v26  ;;  %1435 = vmatmul.bf16.gmra.mxu2 %v5687_v16  ;;  %v4808_v16 = vld [vmem:[#allocation8 + $0x130] sm:$0xf] }
 0x1cb   : > { %1524 = vmatmul.bf16.gmra.mxu3 %v5689_v17  ;;  %v5053_v17 = vld [vmem:[#allocation8 + $0x134] sm:$0xf0] }
 0x1cd   : > { %v1120_v58 = vpop.f32.mrf.mxu2  ;;  %v944_v52 = vpop.f32.mrf.mxu0 }
 0x1ce   : > { %v1209_v59 = vpop.f32.mrf.mxu3  ;;  %v1033_v7 = vpop.f32.mrf.mxu1 }
 0x1cf   : > { %v5945_v53 = vadd.f32 %v1209_v59, %v1120_v58  ;;  %v5947_v3 = vadd.f32 %v1033_v7, %v944_v52  ;;  %v1570_v58 = vmul.f32 %v5703_v28, %v5703_v28  ;;  %v4809_v52 = vor.u32 %v5053_v17, %v4808_v16  ;;  %v5069_v7 = vld [vmem:[#allocation8 + $0x1b4] sm:$0xf0] }
 0x1d0   : > { %v5970_v16 = vmul.f32 %v5721_v0, %v5721_v0 }
 0x1d1   : > { %9230 = vst [vmem:[#allocation84_spill] sm:$0xff] %v5945_v53  ;;  %3553 = vmatpush.bf16.msra.mxu2 %v4809_v52  ;;  %v5990_v52 = vmul.f32 %v5741_v29, %v5741_v29 }
 0x1d2   : > { %9231 = vst [vmem:[#allocation85_spill] sm:$0xff] %v5947_v3 }
 0x1d5   : > { %v1122_v9 = vpop.f32.mrf.mxu2  ;;  %v1223_v23 = vpop.f32.mrf.mxu0 }
 0x1d6   : > { %v1211_v37 = vpop.f32.mrf.mxu3  ;;  %v1312_v26 = vpop.f32.mrf.mxu1 }
 0x1d7   : > { %v5949_v32 = vadd.f32 %v1211_v37, %v1122_v9  ;;  %v5951_v8 = vadd.f32 %v1312_v26, %v1223_v23  ;;  %v4873_v26 = vor.u32 %v5069_v7, %v4872_v60  ;;  %v1571_v23 = vmul.f32 %v5709_v40, %v5709_v40 }
 0x1d8   : > { %1262 = vmatmul.bf16.gmra.mxu0 %v5699_v22  ;;  %v5978_v60 = vmul.f32 %v5729_v10, %v5729_v10  ;;  %v5994_v7 = vmul.f32 %v5743_v31, %v5743_v31  ;;  %v5021_v10 = vld [vmem:[#allocation8 + $0x34] sm:$0xf0]  ;;  %v6010_v31 = vmul.f32 %v5761_v15, %v5761_v15 }
 0x1d9   : > { %9232 = vst [vmem:[#allocation86_spill] sm:$0xff] %v5949_v32  ;;  %v1634_v59 = vmul.f32 %v5951_v8, %v5951_v8  ;;  %1351 = vmatmul.bf16.gmra.mxu1 %v5701_v24  ;;  %3642 = vmatpush.bf16.msra.mxu3 %v4873_v26  ;;  %v1572_v32 = vmul.f32 %v5711_v42, %v5711_v42  ;;  %v4680_v26 = vld [vmem:[#allocation8 + $0x30] sm:$0xf] }
 0x1da   : > { %1440 = vmatmul.bf16.gmra.mxu2 %v5699_v22 }
 0x1db   : > { %1529 = vmatmul.bf16.gmra.mxu3 %v5701_v24  ;;  %v5961_v9 = vadd.f32 %v1634_v59, %v1570_v58  ;;  %v5974_v24 = vmul.f32 %v5723_v4, %v5723_v4  ;;  %v5986_v59 = vmul.f32 %v5731_v12, %v5731_v12  ;;  %v4744_v4 = vld [vmem:[#allocation8 + $0xb0] sm:$0xf]  ;;  %v4681_v12 = vor.u32 %v5021_v10, %v4680_v26 }
 0x1dc   : > { %v6024_v10 = vmul.f32 %v5771_v36, %v5771_v36  ;;  %v6028_v26 = vmul.f32 %v5781_v54, %v5781_v54 }
 0x1dd   : > { %v1401_v37 = vpop.f32.mrf.mxu2  ;;  %5153 = vrsqrt.f32 %v5961_v9  ;;  %v1225_v22 = vpop.f32.mrf.mxu0  ;;  %3375 = vmatpush.bf16.msra.mxu0 %v4681_v12  ;;  %v6050_v12 = vmul.f32 %v5801_v11, %v5801_v11  ;;  %vm1832_vm1 = vweird.f32 %v5961_v9  ;;  %vm1762_vm3 = vcmp.gt.f32.partialorder %v5961_v9, 0.0 }
 0x1de   : > { %v1490_v3 = vpop.f32.mrf.mxu3  ;;  %v1314_v58 = vpop.f32.mrf.mxu1 }
 0x1df   : > { %v5982_v17 = vadd.f32 %v1490_v3, %v1401_v37  ;;  %v5996_v53 = vadd.f32 %v1314_v58, %v1225_v22  ;;  %v6000_v3 = vmul.f32 %v5749_v46, %v5749_v46  ;;  %v6004_v37 = vmul.f32 %v5751_v49, %v5751_v49  ;;  %9234 = vst [vmem:[#allocation88_spill] sm:$0xff] %v6050_v12  ;;  %v9262_v12 = vld [vmem:[#allocation62_spill] sm:$0xff] }
 0x1e0   : > { %v6014_v22 = vmul.f32 %v5763_v19, %v5763_v19  ;;  %v4745_v58 = vor.u32 %v5037_v14, %v4744_v4  ;;  %v6020_v49 = vmul.f32 %v5769_v34, %v5769_v34  ;;  %v6036_v4 = vmul.f32 %v5783_v56, %v5783_v56 }
 0x1e1   : > { %v1635_v29 = vmul.f32 %v5982_v17, %v5982_v17  ;;  %v1636_v46 = vmul.f32 %v5996_v53, %v5996_v53  ;;  %v6040_v14 = vmul.f32 %v5789_v21, %v5789_v21  ;;  %v6044_v34 = vmul.f32 %v5791_v30, %v5791_v30 }
 0x1e2   : > { %3464 = vmatpush.bf16.msra.mxu1 %v4745_v58  ;;  %v6061_v58 = vmul.f32 %v5809_v38, %v5809_v38  ;;  %v6074_v30 = vmul.f32 %v5823_v51, %v5823_v51  ;;  %v2595_v38 = vld [vmem:[%s8994_s4] sm:$0x3]  ;;  %v6093_v51 = vmul.f32 %v5841_v62, %v5841_v62 }
 0x1e3   : > { %v6030_v15 = vadd.f32 %v1635_v29, %v1571_v23  ;;  %v6032_v19 = vpop.eup %5153  ;;  %9233 = vst [vmem:[#allocation87_spill] sm:$0xff] %v6044_v34  ;;  %v6046_v54 = vadd.f32 %v1636_v46, %v1572_v32  ;;  %v6054_v29 = vmul.f32 %v5803_v18, %v5803_v18  ;;  %v6065_v46 = vmul.f32 %v5811_v41, %v5811_v41 }
 0x1e4   : > { %v1827_v23 = vmul.f32 %v6032_v19, %v5961_v9  ;;  %9236 = vst [vmem:[#allocation90_spill] sm:$0xff] %v6061_v58  ;;  %v6069_v32 = vmul.f32 %v5821_v6, %v5821_v6  ;;  %v2596_v41 = vstv %s5980_s25  ;;  %v6085_v6 = vmul.f32 %v5829_v57, %v5829_v57 }
 0x1e5   : > { %9235 = vst [vmem:[#allocation89_spill] sm:$0xff] %v6054_v29  ;;  %5155 = vrsqrt.f32 %v6030_v15  ;;  %v1403_v21 = vpop.f32.mrf.mxu2  ;;  %v1228_v11 = vpop.f32.mrf.mxu0  ;;  %vm1833_vm0 = vweird.f32 %v6032_v19  ;;  %vm1842_vm6 = vweird.f32 %v6030_v15  ;;  %vm1763_vm7 = vcmp.gt.f32.partialorder %v6030_v15, 0.0 }
 0x1e6   : > { %9237 = vst [vmem:[#allocation91_spill] sm:$0xff] %v6065_v46  ;;  %5157 = vrsqrt.f32 %v6046_v54  ;;  %v1492_v18 = vpop.f32.mrf.mxu3  ;;  %v1828_v56 = vmul.f32 %v6032_v19, %v1827_v23  ;;  %v1317_v46 = vpop.f32.mrf.mxu1  ;;  %vm1834_vm2 = vmor %vm1832_vm1, %vm1833_vm0  ;;  %vm1852_vm9 = vweird.f32 %v6046_v54  ;;  %vm1764_vm10 = vcmp.gt.f32.partialorder %v6046_v54, 0.0 }
 0x1e7   : > { %9238 = vst [vmem:[#allocation92_spill] sm:$0xff] %v6069_v32  ;;  %v6081_v36 = vadd.f32 %v1492_v18, %v1403_v21  ;;  %v6089_v32 = vmul.f32 %v5831_v5, %v5831_v5  ;;  %v6095_v23 = vadd.f32 %v1317_v46, %v1228_v11  ;;  %v6103_v21 = vmul.f32 %v5849_v61, %v5849_v61  ;;  %v9245_v5 = vld [vmem:[#allocation13_spill] sm:$0xff] }
 0x1e8   : > { %9239 = vst [vmem:[#allocation93_spill] sm:$0xff] %v6074_v30  ;;  %v6099_v30 = vmul.f32 %v5843_v1, %v5843_v1  ;;  %v1829_v18 = vmul.f32 0.5, %v1828_v56  ;;  %1267 = vmatmul.bf16.gmra.mxu0 %v9245_v5  ;;  %v2597_v11 = vmul.f32 %v2596_v41, %v2595_v38  ;;  %v9248_v1 = vld [vmem:[#allocation14_spill] sm:$0xff]  ;;  %v9251_v41 = vld [vmem:[#allocation55_spill] sm:$0xff]  ;;  %v6218_v34 = vmul.f32 %v9262_v12, %v9262_v12 }
 0x1e9   : > { %9240 = vst [vmem:[#allocation94_spill] sm:$0xff] %v6085_v6  ;;  %v1637_v57 = vmul.f32 %v6081_v36, %v6081_v36  ;;  %v1638_v46 = vmul.f32 %v6095_v23, %v6095_v23  ;;  %1356 = vmatmul.bf16.gmra.mxu1 %v9248_v1  ;;  %v9249_v56 = vld [vmem:[#allocation54_spill] sm:$0xff]  ;;  %v9258_v6 = vld [vmem:[#allocation60_spill] sm:$0xff] }
 0x1ea   : > { %9241 = vst [vmem:[#allocation95_spill] sm:$0xff] %v6089_v32  ;;  %v9246_v32 = vld [vmem:[#allocation53_spill] sm:$0xff]  ;;  %1445 = vmatmul.bf16.gmra.mxu2 %v9245_v5  ;;  %v6135_v5 = vmul.f32 %v5861_v35, %v5861_v35  ;;  %v6152_v35 = vmul.f32 %v5865_v45, %v5865_v45  ;;  %v6172_v58 = vmul.f32 %v9258_v6, %v9258_v6 }
 0x1eb   : > { %9242 = vst [vmem:[#allocation96_spill] sm:$0xff] %v6093_v51  ;;  %v6110_v62 = vmul.f32 %v9246_v32, %v9246_v32  ;;  %v6116_v61 = vpop.eup %5155  ;;  %v6124_v32 = vadd.f32 %v1637_v57, %v5970_v16  ;;  %1534 = vmatmul.bf16.gmra.mxu3 %v9248_v1  ;;  %v6144_v57 = vmul.f32 %v5863_v63, %v5863_v63 }
 0x1ec   : > { %9243 = vst [vmem:[#allocation97_spill] sm:$0xff] %v6099_v30  ;;  %v1830_v30 = vsub.f32 1.5, %v1829_v18  ;;  %v6127_v38 = vpop.eup %5157  ;;  %v1837_v18 = vmul.f32 %v6116_v61, %v6030_v15  ;;  %vm1843_vm4 = vweird.f32 %v6116_v61 }
 0x1ed   : > { %9244 = vst [vmem:[#allocation98_spill] sm:$0xff] %v6103_v21  ;;  %v6120_v21 = vmul.f32 %v9249_v56, %v9249_v56  ;;  %v6140_v56 = vadd.f32 %v1638_v46, %v5974_v24  ;;  %v1847_v16 = vmul.f32 %v6127_v38, %v6046_v54  ;;  %5159 = vrsqrt.f32 %v6124_v32  ;;  %v1230_v63 = vpop.f32.mrf.mxu0  ;;  %vm1844_vm8 = vmor %vm1842_vm6, %vm1843_vm4 }
 0x1ee   : > { %9247 = vst [vmem:[#allocation13_spill] sm:$0xff] %v6110_v62  ;;  %v6131_v62 = vmul.f32 %v9251_v41, %v9251_v41  ;;  %v1831_v1 = vmul.f32 %v6032_v19, %v1830_v30  ;;  %v1406_v41 = vpop.f32.mrf.mxu2  ;;  %v1838_v24 = vmul.f32 %v6116_v61, %v1837_v18  ;;  %v1495_v46 = vpop.f32.mrf.mxu3  ;;  %v6168_v18 = vmul.f32 %v5867_v20, %v5867_v20 }
 0x1ef   : > { %9250 = vst [vmem:[#allocation14_spill] sm:$0xff] %v6120_v21  ;;  %5161 = vrsqrt.f32 %v6140_v56  ;;  %v6162_v21 = vadd.f32 %v1495_v46, %v1406_v41  ;;  %vm1853_vm5 = vweird.f32 %v6127_v38  ;;  %vm1765_vm12 = vcmp.gt.f32.partialorder %v6124_v32, 0.0 }
 0x1f0   : > { %9252 = vst [vmem:[#allocation99_spill] sm:$0xff] %v6131_v62  ;;  %v1835_v30 = vsel %vm1834_vm2, %v6032_v19, %v1831_v1  ;;  %v1319_v62 = vpop.f32.mrf.mxu1  ;;  %vm1854_vm11 = vmor %vm1852_vm9, %vm1853_vm5  ;;  %vm1862_vm15 = vweird.f32 %v6124_v32  ;;  %vm1766_vm0 = vcmp.gt.f32.partialorder %v6140_v56, 0.0  ;;  %vm1872_vm2 = vweird.f32 %v6140_v56 }
 0x1f1   : > { %9253 = vst [vmem:[#allocation100_spill] sm:$0xff] %v6135_v5  ;;  %v6154_v5 = vperm.slane %v2597_v11, 0  ;;  %v2466_v45 = vsel %vm1762_vm3, %v1835_v30, 0.0  ;;  %v6164_v51 = vadd.f32 %v1319_v62, %v1230_v63  ;;  %v1639_v63 = vmul.f32 %v6162_v21, %v6162_v21 }
 0x1f2   : > { %9254 = vst [vmem:[#allocation101_spill] sm:$0xff] %v6144_v57  ;;  %v1848_v57 = vmul.f32 %v6127_v38, %v1847_v16  ;;  %v2530_v19 = vmul.f32 %v2466_v45, %v5961_v9  ;;  %v9260_v16 = vld [vmem:[#allocation61_spill] sm:$0xff] }
 0x1f3   : > { %9255 = vst [vmem:[#allocation102_spill] sm:$0xff] %v6152_v35  ;;  %v1839_v35 = vmul.f32 0.5, %v1838_v24  ;;  %v6177_v29 = vmul.f32 %v9260_v16, %v9260_v16  ;;  %v1640_v46 = vmul.f32 %v6164_v51, %v6164_v51  ;;  %v6186_v9 = vpop.eup %5159  ;;  %v6193_v30 = vadd.f32 %v1639_v63, %v5978_v60 }
 0x1f4   : > { %9256 = vst [vmem:[#allocation103_spill] sm:$0xff] %v6164_v51  ;;  %v1849_v1 = vmul.f32 0.5, %v1848_v57  ;;  %v2603_v62 = vsub.f32 %v2530_v19, %v6154_v5  ;;  %vm1863_vm13 = vweird.f32 %v6186_v9 }
 0x1f5   : > { %9257 = vst [vmem:[#allocation104_spill] sm:$0xff] %v6168_v18  ;;  %v1840_v24 = vsub.f32 1.5, %v1839_v35  ;;  %v6190_v35 = vperm.slane %v2597_v11, 1  ;;  %v6195_v6 = vpop.eup %5161  ;;  %v1233_v20 = vpop.f32.mrf.mxu0  ;;  %v6211_v18 = vadd.f32 %v1640_v46, %v5986_v59  ;;  %5163 = vrsqrt.f32 %v6193_v30  ;;  %v9266_v46 = vld [vmem:[#allocation18_spill] sm:$0xff]  ;;  %vm1864_vm1 = vmor %vm1862_vm15, %vm1863_vm13 }
 0x1f6   : > { %9259 = vst [vmem:[#allocation105_spill] sm:$0xff] %v6172_v58  ;;  %v1850_v41 = vsub.f32 1.5, %v1849_v1  ;;  %v1857_v1 = vmul.f32 %v6186_v9, %v6124_v32  ;;  %v2667_v16 = vmax.f32 %v2603_v62, 0.0  ;;  %v1867_v60 = vmul.f32 %v6195_v6, %v6140_v56  ;;  %v1497_v63 = vpop.f32.mrf.mxu3 }
 0x1f7   : > { %9261 = vst [vmem:[#allocation106_spill] sm:$0xff] %v6177_v29  ;;  %v1841_v57 = vmul.f32 %v6116_v61, %v1840_v24  ;;  %v1408_v24 = vpop.f32.mrf.mxu2  ;;  %5165 = vrsqrt.f32 %v6211_v18  ;;  %vm1873_vm14 = vweird.f32 %v6195_v6  ;;  %vm1767_vm4 = vcmp.gt.f32.partialorder %v6193_v30, 0.0 }
 0x1f8   : > { %v1851_v19 = vmul.f32 %v6127_v38, %v1850_v41  ;;  %v1858_v58 = vmul.f32 %v6186_v9, %v1857_v1  ;;  %v1322_v62 = vpop.f32.mrf.mxu1  ;;  %v1868_v51 = vmul.f32 %v6195_v6, %v1867_v60  ;;  %9263 = vst [vmem:[#allocation107_spill] sm:$0xff] %v6218_v34  ;;  %1272 = vmatmul.bf16.gmra.mxu0 %v9266_v46  ;;  %v9267_v60 = vld [vmem:[#allocation19_spill] sm:$0xff]  ;;  %vm1874_vm3 = vmor %vm1872_vm2, %vm1873_vm14  ;;  %vm1882_vm5 = vweird.f32 %v6193_v30 }
 0x1f9   : > { %v1845_v11 = vsel %vm1844_vm8, %v6116_v61, %v1841_v57  ;;  %v2731_v1 = vmul.f32 %v2667_v16, %v2466_v45  ;;  %1361 = vmatmul.bf16.gmra.mxu1 %v9267_v60  ;;  %v6235_v45 = vadd.f32 %v1497_v63, %v1408_v24  ;;  %vm1892_vm9 = vweird.f32 %v6211_v18 }
 0x1fa   : > { %v2467_v41 = vsel %vm1763_vm7, %v1845_v11, 0.0  ;;  %v1855_v29 = vsel %vm1854_vm11, %v6127_v38, %v1851_v19  ;;  %v9264_v11 = vld [vmem:[#allocation63_spill] sm:$0xff]  ;;  %v1859_v59 = vmul.f32 0.5, %v1858_v58  ;;  %1450 = vmatmul.bf16.gmra.mxu2 %v9266_v46  ;;  %v6237_v58 = vadd.f32 %v1322_v62, %v1233_v20 }
 0x1fb   : > { %v2531_v61 = vmul.f32 %v2467_v41, %v6030_v15  ;;  %v2468_v57 = vsel %vm1764_vm10, %v1855_v29, 0.0  ;;  %v6222_v38 = vmul.f32 %v9264_v11, %v9264_v11  ;;  %v1869_v29 = vmul.f32 0.5, %v1868_v51  ;;  %1539 = vmatmul.bf16.gmra.mxu3 %v9267_v60  ;;  %9268 = vst [vmem:[#allocation18_spill] sm:$0xff] %v6235_v45 }
 0x1fc   : > { %v2532_v19 = vmul.f32 %v2468_v57, %v6046_v54  ;;  %v1860_v34 = vsub.f32 1.5, %v1859_v59  ;;  %v2795_v59 = vmul.f32 %v2731_v1, %v5703_v28  ;;  %v1641_v62 = vmul.f32 %v6235_v45, %v6235_v45 }
 0x1fd   : > { %9265 = vst [vmem:[#allocation108_spill] sm:$0xff] %v6222_v38  ;;  %v2604_v15 = vsub.f32 %v2531_v61, %v6190_v35  ;;  %v1870_v54 = vsub.f32 1.5, %v1869_v29  ;;  %v2797_v29 = vmul.f32 %v2731_v1, %v5951_v8 }
 0x1fe   : > { %v2605_v12 = vsub.f32 %v2532_v19, %v6154_v5  ;;  %v1861_v16 = vmul.f32 %v6186_v9, %v1860_v34  ;;  %v6244_v19 = vpop.eup %5163  ;;  %v6251_v34 = vpop.f32.mrf.mxu0 }
 0x1ff   : > { %v6242_v61 = vpop.f32.mrf.mxu2  ;;  %v2668_v46 = vmax.f32 %v2604_v15, 0.0  ;;  %v1871_v20 = vmul.f32 %v6195_v6, %v1870_v54  ;;  %v1877_v28 = vmul.f32 %v6244_v19, %v6193_v30  ;;  %v6268_v54 = vpop.eup %5165  ;;  %vm1883_vm6 = vweird.f32 %v6244_v19 }
 0x200   : > { %v2669_v51 = vmax.f32 %v2605_v12, 0.0  ;;  %v1500_v12 = vpop.f32.mrf.mxu3  ;;  %v1865_v63 = vsel %vm1864_vm1, %v6186_v9, %v1861_v16  ;;  %v6260_v15 = vpop.f32.mrf.mxu1  ;;  %v1642_v9 = vmul.f32 %v6237_v58, %v6237_v58  ;;  %vm6312_vm7 = vmor %vm1882_vm5, %vm1883_vm6  ;;  %vm1893_vm8 = vweird.f32 %v6268_v54 }
 0x201   : > { %v2469_v60 = vsel %vm1765_vm12, %v1865_v63, 0.0  ;;  %v2732_v8 = vmul.f32 %v2668_v46, %v2467_v41  ;;  %v1878_v63 = vmul.f32 %v6244_v19, %v1877_v28  ;;  %v4800_v46 = vld [vmem:[#allocation8 + $0x120] sm:$0xf]  ;;  %v5051_v28 = vld [vmem:[#allocation8 + $0x124] sm:$0xf0]  ;;  %vm6401_vm10 = vmor %vm1892_vm9, %vm1893_vm8  ;;  %vm1768_vm12 = vcmp.gt.f32.partialorder %v6211_v18, 0.0 }
 0x202   : > { %v2733_v24 = vmul.f32 %v2669_v51, %v2468_v57  ;;  %v1875_v57 = vsel %vm1874_vm3, %v6195_v6, %v1871_v20  ;;  %v2533_v11 = vmul.f32 %v2469_v60, %v6124_v32  ;;  %v1887_v6 = vmul.f32 %v6268_v54, %v6211_v18 }
 0x203   : > { %v2470_v38 = vsel %vm1766_vm0, %v1875_v57, 0.0 }
 0x204   : > { %v2799_v51 = vmul.f32 %v2733_v24, %v5711_v42  ;;  %v2801_v16 = vmul.f32 %v2733_v24, %v5996_v53  ;;  %v2534_v1 = vmul.f32 %v2470_v38, %v6140_v56  ;;  %v2606_v42 = vsub.f32 %v2533_v11, %v6190_v35  ;;  %v4864_v11 = vld [vmem:[#allocation8 + $0x1a0] sm:$0xf] }
 0x205   : > { %v6285_v53 = vadd.f32 %v1641_v62, %v5990_v52  ;;  %v1879_v24 = vmul.f32 0.5, %v1878_v63  ;;  %v1888_v41 = vmul.f32 %v6268_v54, %v1887_v6  ;;  %v6290_v56 = vadd.f32 %v1642_v9, %v5994_v7  ;;  %v5067_v52 = vld [vmem:[#allocation8 + $0x1a4] sm:$0xf0] }
 0x206   : > { %v6279_v20 = vpack.c.bf16 %v2799_v51, %v2795_v59  ;;  %v6281_v45 = vpack.c.bf16 %v2801_v16, %v2797_v29  ;;  %v2607_v32 = vsub.f32 %v2534_v1, %v6154_v5  ;;  %v2670_v57 = vmax.f32 %v2606_v42, 0.0  ;;  %v1238_v9 = vpop.f32.mrf.mxu0 }
 0x207   : > { %5167 = vrsqrt.f32 %v6285_v53  ;;  %v6295_v59 = vpop.f32.mrf.mxu2  ;;  %v1880_v29 = vsub.f32 1.5, %v1879_v24  ;;  %v1889_v51 = vmul.f32 0.5, %v1888_v41  ;;  %v2796_v16 = vmul.f32 %v2732_v8, %v5709_v40  ;;  %v9281_v40 = vld [vmem:[#allocation68_spill] sm:$0xff] }
 0x208   : > { %9269 = vst [vmem:[#allocation19_spill] sm:$0xff] %v6279_v20  ;;  %v2671_v62 = vmax.f32 %v2607_v32, 0.0  ;;  %v6298_v7 = vpop.f32.mrf.mxu3  ;;  %v2734_v1 = vmul.f32 %v2670_v57, %v2469_v60  ;;  %5169 = vrsqrt.f32 %v6290_v56  ;;  %v4801_v63 = vor.u32 %v5051_v28, %v4800_v46  ;;  %v1327_v6 = vpop.f32.mrf.mxu1  ;;  %v4672_v46 = vld [vmem:[#allocation8 + $0x20] sm:$0xf] }
 0x209   : > { %9270 = vst [vmem:[#allocation109_spill] sm:$0xff] %v6281_v45  ;;  %v2798_v42 = vmul.f32 %v2732_v8, %v5982_v17  ;;  %v1881_v32 = vmul.f32 %v6244_v19, %v1880_v29  ;;  %v4865_v24 = vor.u32 %v5067_v52, %v4864_v11  ;;  %v1890_v60 = vsub.f32 1.5, %v1889_v51  ;;  %v9277_v29 = vld [vmem:[#allocation24_spill] sm:$0xff] }
 0x20a   : > { %v6303_v20 = vmul.f32 %v2671_v62, %v2470_v38  ;;  %v2800_v45 = vmul.f32 %v2734_v1, %v5721_v0  ;;  %v2802_v41 = vmul.f32 %v2734_v1, %v6081_v36  ;;  %3554 = vmatpush.bf16.msra.mxu2 %v4801_v63  ;;  %v6317_v17 = vadd.f32 %v1500_v12, %v6242_v61  ;;  %v5019_v61 = vld [vmem:[#allocation8 + $0x24] sm:$0xf0]  ;;  %v4736_v12 = vld [vmem:[#allocation8 + $0xa0] sm:$0xf] }
 0x20b   : > { %v6321_v38 = vmul.f32 %v5885_v44, %v5885_v44  ;;  %v6325_v0 = vmul.f32 %v5887_v48, %v5887_v48  ;;  %v1885_v8 = vsel %vm6312_vm7, %v6244_v19, %v1881_v32  ;;  %3643 = vmatpush.bf16.msra.mxu3 %v4865_v24  ;;  %v5035_v62 = vld [vmem:[#allocation8 + $0xa4] sm:$0xf0]  ;;  %1277 = vmatmul.bf16.gmra.mxu0 %v9277_v29  ;;  %v9278_v19 = vld [vmem:[#allocation25_spill] sm:$0xff]  ;;  %vm1912_vm13 = vweird.f32 %v6290_v56 }
 0x20c   : > { %v6329_v36 = vmul.f32 %v6303_v20, %v6095_v23  ;;  %v6336_v57 = vpack.c.bf16 %v2800_v45, %v2796_v16  ;;  %v6338_v11 = vpack.c.bf16 %v2802_v41, %v2798_v42  ;;  %v2471_v52 = vsel %vm1767_vm4, %v1885_v8, 0.0  ;;  %1366 = vmatmul.bf16.gmra.mxu1 %v9278_v19  ;;  %1455 = vmatmul.bf16.gmra.mxu2 %v9277_v29 }
 0x20d   : > { %9273 = vst [vmem:[#allocation110_spill] sm:$0xff] %v6321_v38  ;;  %v6334_v28 = vpop.eup %5167  ;;  %v1643_v23 = vmul.f32 %v6317_v17, %v6317_v17  ;;  %v6348_v51 = vmul.f32 %v5889_v50, %v5889_v50  ;;  %v2535_v45 = vmul.f32 %v2471_v52, %v6193_v30  ;;  %1544 = vmatmul.bf16.gmra.mxu3 %v9278_v19  ;;  %vm1770_vm14 = vcmp.gt.f32.partialorder %v6290_v56, 0.0 }
 0x20e   : > { %9274 = vst [vmem:[#allocation111_spill] sm:$0xff] %v6325_v0  ;;  %v1897_v16 = vmul.f32 %v6334_v28, %v6285_v53  ;;  %v5170_v1 = vpop.eup %5169  ;;  %v6357_v63 = vmul.f32 %v5891_v25, %v5891_v25  ;;  %v4673_v32 = vor.u32 %v5019_v61, %v4672_v46  ;;  %v4737_v24 = vor.u32 %v5035_v62, %v4736_v12  ;;  %v1240_v46 = vpop.f32.mrf.mxu0  ;;  %v9283_v12 = vld [vmem:[#allocation69_spill] sm:$0xff]  ;;  %v9285_v62 = vld [vmem:[#allocation70_spill] sm:$0xff] }
 0x20f   : > { %9275 = vst [vmem:[#allocation112_spill] sm:$0xff] %v6336_v57  ;;  %v6360_v42 = vadd.f32 %v1643_v23, %v6000_v3  ;;  %v1416_v41 = vpop.f32.mrf.mxu2  ;;  %v6364_v30 = vmul.f32 %v9281_v40, %v9281_v40  ;;  %v2608_v8 = vsub.f32 %v2535_v45, %v6190_v35  ;;  %v1907_v29 = vmul.f32 %v5170_v1, %v6290_v56  ;;  %v9287_v45 = vld [vmem:[#allocation71_spill] sm:$0xff] }
 0x210   : > { %9276 = vst [vmem:[#allocation113_spill] sm:$0xff] %v6338_v11  ;;  %v6370_v19 = vadd.f32 %v6260_v15, %v6251_v34  ;;  %v1505_v25 = vpop.f32.mrf.mxu3  ;;  %v1891_v50 = vmul.f32 %v6268_v54, %v1890_v60  ;;  %v1898_v3 = vmul.f32 %v6334_v28, %v1897_v16  ;;  %3376 = vmatpush.bf16.msra.mxu0 %v4673_v32  ;;  %v1329_v61 = vpop.f32.mrf.mxu1  ;;  %vm1913_vm11 = vweird.f32 %v5170_v1 }
 0x211   : > { %9279 = vst [vmem:[#allocation24_spill] sm:$0xff] %v6348_v51  ;;  %5171 = vrsqrt.f32 %v6360_v42  ;;  %3465 = vmatpush.bf16.msra.mxu1 %v4737_v24  ;;  %v6378_v23 = vmul.f32 %v9283_v12, %v9283_v12  ;;  %v6382_v34 = vmul.f32 %v9285_v62, %v9285_v62  ;;  %v2672_v15 = vmax.f32 %v2608_v8, 0.0  ;;  %vm1914_vm15 = vmor %vm1912_vm13, %vm1913_vm11 }
 0x212   : > { %9280 = vst [vmem:[#allocation25_spill] sm:$0xff] %v6357_v63  ;;  %v1908_v60 = vmul.f32 %v5170_v1, %v1907_v29  ;;  %v6386_v40 = vmul.f32 %v9287_v45, %v9287_v45  ;;  %v6389_v16 = vadd.f32 %v1327_v6, %v1238_v9  ;;  %v6391_v32 = vadd.f32 %v1505_v25, %v1416_v41 }
 0x213   : > { %9282 = vst [vmem:[#allocation114_spill] sm:$0xff] %v6364_v30  ;;  %v6395_v24 = vmul.f32 %v5909_v43, %v5909_v43  ;;  %v6397_v12 = vmul.f32 %v2672_v15, %v2471_v52  ;;  %v1644_v45 = vmul.f32 %v6370_v19, %v6370_v19  ;;  %v6409_v25 = vmul.f32 %v5911_v2, %v5911_v2 }
 0x214   : > { %9284 = vst [vmem:[#allocation115_spill] sm:$0xff] %v6378_v23  ;;  %v1909_v29 = vmul.f32 0.5, %v1908_v60  ;;  %v1895_v9 = vsel %vm6401_vm10, %v6268_v54, %v1891_v50  ;;  %v1899_v6 = vmul.f32 0.5, %v1898_v3  ;;  %v6416_v52 = vadd.f32 %v6298_v7, %v6295_v59 }
 0x215   : > { %9286 = vst [vmem:[#allocation116_spill] sm:$0xff] %v6382_v34  ;;  %v6420_v41 = vmul.f32 %v6397_v12, %v6162_v21  ;;  %v1646_v60 = vmul.f32 %v6389_v16, %v6389_v16  ;;  %v6428_v8 = vmul.f32 %v5913_v55, %v5913_v55  ;;  %v6432_v50 = vmul.f32 %v5915_v13, %v5915_v13  ;;  %v5065_v34 = vld [vmem:[#allocation8 + $0x194] sm:$0xf0] }
 0x216   : > { %9288 = vst [vmem:[#allocation117_spill] sm:$0xff] %v6386_v40  ;;  %v1910_v15 = vsub.f32 1.5, %v1909_v29  ;;  %v1647_v21 = vmul.f32 %v6391_v32, %v6391_v32  ;;  %v6441_v3 = vadd.f32 %v1644_v45, %v6004_v37  ;;  %v6445_v13 = vmul.f32 %v5921_v47, %v5921_v47  ;;  %v6464_v48 = vpop.f32.mrf.mxu0  ;;  %v4856_v40 = vld [vmem:[#allocation8 + $0x190] sm:$0xf] }
 0x217   : > { %9289 = vst [vmem:[#allocation118_spill] sm:$0xff] %v6395_v24  ;;  %v6424_v43 = vpop.eup %5171  ;;  %v1418_v54 = vpop.f32.mrf.mxu2  ;;  %v6447_v55 = vsel %vm1768_vm12, %v1895_v9, 0.0  ;;  %v1900_v2 = vsub.f32 1.5, %v1899_v6  ;;  %v1645_v44 = vmul.f32 %v6416_v52, %v6416_v52  ;;  %v6455_v37 = vadd.f32 %v1646_v60, %v6014_v22  ;;  %v9298_v60 = vld [vmem:[#allocation31_spill] sm:$0xff] }
 0x218   : > { %9292 = vst [vmem:[#allocation119_spill] sm:$0xff] %v6409_v25  ;;  %v1911_v59 = vmul.f32 %v5170_v1, %v1910_v15  ;;  %v1917_v7 = vmul.f32 %v6424_v43, %v6360_v42  ;;  %v1507_v29 = vpop.f32.mrf.mxu3  ;;  %v6458_v47 = vadd.f32 %v1647_v21, %v6020_v49  ;;  %v6460_v9 = vadd.f32 %v1329_v61, %v1240_v46  ;;  %v9297_v61 = vld [vmem:[#allocation30_spill] sm:$0xff] }
 0x219   : > { %9293 = vst [vmem:[#allocation120_spill] sm:$0xff] %v6428_v8  ;;  %v6462_v6 = vadd.f32 %v1507_v29, %v1418_v54  ;;  %5173 = vrsqrt.f32 %v6441_v3  ;;  %v2536_v49 = vmul.f32 %v6447_v55, %v6211_v18  ;;  %v1901_v46 = vmul.f32 %v6334_v28, %v1900_v2 }
 0x21a   : > { %9294 = vst [vmem:[#allocation121_spill] sm:$0xff] %v6432_v50  ;;  %v1915_v15 = vsel %vm1914_vm15, %v5170_v1, %v1911_v59  ;;  %v1918_v62 = vmul.f32 %v6424_v43, %v1917_v7  ;;  %v6470_v1 = vmul.f32 %v5923_v39, %v5923_v39  ;;  %vm1903_vm0 = vweird.f32 %v6334_v28 }
 0x21b   : > { %9295 = vst [vmem:[#allocation122_spill] sm:$0xff] %v6445_v13  ;;  %v2474_v45 = vsel %vm1770_vm14, %v1915_v15, 0.0  ;;  %v6466_v13 = vpop.f32.mrf.mxu1  ;;  %5175 = vrsqrt.f32 %v6455_v37  ;;  %1282 = vmatmul.bf16.gmra.mxu0 %v9297_v61  ;;  %vm1923_vm1 = vweird.f32 %v6424_v43  ;;  %vm1902_vm2 = vweird.f32 %v6285_v53 }
 0x21c   : > { %9296 = vst [vmem:[#allocation123_spill] sm:$0xff] %v6470_v1  ;;  %v2538_v59 = vmul.f32 %v2474_v45, %v6290_v56  ;;  %v1919_v22 = vmul.f32 0.5, %v1918_v62  ;;  %1371 = vmatmul.bf16.gmra.mxu1 %v9298_v60  ;;  %v6484_v56 = vadd.f32 %v1645_v44, %v6010_v31  ;;  %1460 = vmatmul.bf16.gmra.mxu2 %v9297_v61  ;;  %5177 = vrsqrt.f32 %v6458_v47  ;;  %vm6500_vm3 = vmor %vm1902_vm2, %vm1903_vm0  ;;  %v9305_v31 = vld [vmem:[#allocation80_spill] sm:$0xff] }
 0x21d   : > { %1549 = vmatmul.bf16.gmra.mxu3 %v9298_v60  ;;  %v1648_v2 = vmul.f32 %v6460_v9, %v6460_v9  ;;  %v1649_v18 = vmul.f32 %v6462_v6, %v6462_v6  ;;  %v6496_v7 = vmul.f32 %v5925_v33, %v5925_v33  ;;  %vm1922_vm4 = vweird.f32 %v6360_v42  ;;  %v9309_v33 = vld [vmem:[#allocation82_spill] sm:$0xff] }
 0x21e   : > { %v2611_v21 = vsub.f32 %v2538_v59, %v6154_v5  ;;  %v1920_v54 = vsub.f32 1.5, %v1919_v22  ;;  %v2609_v59 = vsub.f32 %v2536_v49, %v6154_v5  ;;  %v1905_v22 = vsel %vm6500_vm3, %v6334_v28, %v1901_v46  ;;  %vm1924_vm5 = vmor %vm1922_vm4, %vm1923_vm1 }
 0x21f   : > { %v1421_v62 = vpop.f32.mrf.mxu2  ;;  %9299 = vst [vmem:[#allocation30_spill] sm:$0xff] %v6496_v7  ;;  %v6513_v61 = vadd.f32 %v1648_v2, %v6024_v10  ;;  %v6516_v60 = vadd.f32 %v1649_v18, %v6028_v26  ;;  %vm1771_vm6 = vcmp.gt.f32.partialorder %v6360_v42, 0.0  ;;  %5179 = vrsqrt.f32 %v6484_v56 }
 0x220   : > { %v2675_v44 = vmax.f32 %v2611_v21, 0.0  ;;  %v1921_v29 = vmul.f32 %v6424_v43, %v1920_v54  ;;  %v1510_v15 = vpop.f32.mrf.mxu3  ;;  %v6518_v21 = vpop.eup %5173  ;;  %v6529_v46 = vmul.f32 %v5927_v27, %v5927_v27  ;;  %vm1769_vm7 = vcmp.gt.f32.partialorder %v6285_v53, 0.0 }
 0x221   : > { %v6525_v28 = vpop.eup %5175  ;;  %5181 = vrsqrt.f32 %v6513_v61  ;;  %v6533_v26 = vsel %vm1769_vm7, %v1905_v22, 0.0  ;;  %v2673_v22 = vmax.f32 %v2609_v59, 0.0  ;;  %v6554_v27 = vpop.f32.mrf.mxu0  ;;  %v6560_v39 = vmul.f32 %v9309_v33, %v9309_v33  ;;  %v9315_v33 = vld [vmem:[#allocation85_spill] sm:$0xff] }
 0x222   : > { %v6520_v54 = vmul.f32 %v2675_v44, %v2474_v45  ;;  %v1925_v49 = vsel %vm1924_vm5, %v6424_v43, %v1921_v29  ;;  %9303 = vst [vmem:[#allocation124_spill] sm:$0xff] %v6529_v46  ;;  %v1947_v2 = vmul.f32 %v6525_v28, %v6455_v37  ;;  %v6542_v18 = vpop.eup %5177  ;;  %v6546_v44 = vmul.f32 %v9305_v31, %v9305_v31  ;;  %v9307_v29 = vld [vmem:[#allocation81_spill] sm:$0xff] }
 0x223   : > { %v2475_v10 = vsel %vm1771_vm6, %v1925_v49, 0.0  ;;  %v6550_v49 = vmul.f32 %v9307_v29, %v9307_v29  ;;  %9310 = vst [vmem:[#allocation128_spill] sm:$0xff] %v6560_v39  ;;  %v1957_v29 = vmul.f32 %v6542_v18, %v6458_v47  ;;  %v6576_v1 = vmul.f32 %v6533_v26, %v6285_v53 }
 0x224   : > { %9302 = vst [vmem:[#allocation31_spill] sm:$0xff] %v6520_v54  ;;  %v6537_v45 = vmul.f32 %v6520_v54, %v6237_v58  ;;  %v2539_v43 = vmul.f32 %v2475_v10, %v6360_v42  ;;  %v1927_v58 = vmul.f32 %v6518_v21, %v6441_v3  ;;  %v6556_v42 = vpop.f32.mrf.mxu1  ;;  %v1948_v31 = vmul.f32 %v6525_v28, %v1947_v2 }
 0x225   : > { %9306 = vst [vmem:[#allocation126_spill] sm:$0xff] %v6546_v44  ;;  %v9313_v44 = vld [vmem:[#allocation84_spill] sm:$0xff]  ;;  %5183 = vrsqrt.f32 %v6516_v60  ;;  %v6581_v2 = vpop.eup %5179  ;;  %v6585_v39 = vmul.f32 %v9315_v33, %v9315_v33  ;;  %v1958_v50 = vmul.f32 %v6542_v18, %v1957_v29  ;;  %v6593_v53 = vmul.f32 %v2673_v22, %v6447_v55 }
 0x226   : > { %9304 = vst [vmem:[#allocation125_spill] sm:$0xff] %v6537_v45  ;;  %v2612_v46 = vsub.f32 %v2539_v43, %v6190_v35  ;;  %v6572_v7 = vmul.f32 %v9313_v44, %v9313_v44  ;;  %v1928_v8 = vmul.f32 %v6518_v21, %v1927_v58  ;;  %v6598_v25 = vadd.f32 %v6466_v13, %v6464_v48  ;;  %v9320_v58 = vld [vmem:[#allocation37_spill] sm:$0xff]  ;;  %v5015_v45 = vld [vmem:[#allocation8 + $0x4] sm:$0xf0] }
 0x227   : > { %9308 = vst [vmem:[#allocation127_spill] sm:$0xff] %v6550_v49  ;;  %v9311_v49 = vld [vmem:[#allocation83_spill] sm:$0xff]  ;;  %v6579_v43 = vpop.f32.mrf.mxu2  ;;  %v6600_v24 = vadd.f32 %v1510_v15, %v1421_v62  ;;  %vm1953_vm8 = vweird.f32 %v6525_v28  ;;  %vm1774_vm9 = vcmp.gt.f32.partialorder %v6455_v37, 0.0  ;;  %v1937_v62 = vmul.f32 %v6581_v2, %v6484_v56 }
 0x228   : > { %v6568_v59 = vmul.f32 %v9311_v49, %v9311_v49  ;;  %9314 = vst [vmem:[#allocation130_spill] sm:$0xff] %v6572_v7  ;;  %v2676_v49 = vmax.f32 %v2612_v46, 0.0  ;;  %v6588_v44 = vpop.f32.mrf.mxu3  ;;  %v6590_v7 = vpop.eup %5181  ;;  %v1650_v48 = vmul.f32 %v6598_v25, %v6598_v25  ;;  %vm1952_vm10 = vweird.f32 %v6455_v37 }
 0x229   : > { %9316 = vst [vmem:[#allocation131_spill] sm:$0xff] %v6585_v39  ;;  %v1967_v55 = vmul.f32 %v6590_v7, %v6513_v61  ;;  %vm1954_vm11 = vmor %vm1952_vm10, %vm1953_vm8  ;;  %vm1963_vm12 = vweird.f32 %v6542_v18  ;;  %vm1775_vm13 = vcmp.gt.f32.partialorder %v6458_v47, 0.0  ;;  %vm1962_vm14 = vweird.f32 %v6458_v47 }
 0x22a   : > { %9312 = vst [vmem:[#allocation129_spill] sm:$0xff] %v6568_v59  ;;  %v1949_v59 = vmul.f32 0.5, %v1948_v31  ;;  %v6602_v33 = vmul.f32 %v2676_v49, %v2475_v10  ;;  %v1959_v31 = vmul.f32 0.5, %v1958_v50  ;;  %v6625_v22 = vadd.f32 %v1650_v48, %v6036_v4  ;;  %v6641_v48 = vpop.f32.mrf.mxu0  ;;  %vm6649_vm15 = vmor %vm1962_vm14, %vm1963_vm12 }
 0x22b   : > { %v6620_v15 = vpop.eup %5183  ;;  %v1968_v49 = vmul.f32 %v6590_v7, %v1967_v55  ;;  %vm1776_vm0 = vcmp.gt.f32.partialorder %v6513_v61, 0.0  ;;  %vm1973_vm1 = vweird.f32 %v6590_v7  ;;  %vm1972_vm2 = vweird.f32 %v6513_v61 }
 0x22c   : > { %9317 = vst [vmem:[#allocation132_spill] sm:$0xff] %v6602_v33  ;;  %v1950_v46 = vsub.f32 1.5, %v1949_v59  ;;  %v6614_v13 = vmul.f32 %v6602_v33, %v6317_v17  ;;  %v1960_v10 = vsub.f32 1.5, %v1959_v31  ;;  %v9319_v17 = vld [vmem:[#allocation36_spill] sm:$0xff]  ;;  %1376 = vmatmul.bf16.gmra.mxu1 %v9320_v58  ;;  %v6629_v59 = vmul.f32 0.5, %v1928_v8  ;;  %vm1974_vm4 = vmor %vm1972_vm2, %vm1973_vm1 }
 0x22d   : > { %1287 = vmatmul.bf16.gmra.mxu0 %v9319_v17  ;;  %v1977_v31 = vmul.f32 %v6620_v15, %v6516_v60  ;;  %1465 = vmatmul.bf16.gmra.mxu2 %v9319_v17  ;;  %v1969_v8 = vmul.f32 0.5, %v1968_v49  ;;  %v5049_v49 = vld [vmem:[#allocation8 + $0x114] sm:$0xf0]  ;;  %5185 = vrsqrt.f32 %v6625_v22  ;;  %vm1983_vm3 = vweird.f32 %v6620_v15 }
 0x22e   : > { %9318 = vst [vmem:[#allocation133_spill] sm:$0xff] %v6614_v13  ;;  %v1951_v50 = vmul.f32 %v6525_v28, %v1950_v46  ;;  %1554 = vmatmul.bf16.gmra.mxu3 %v9320_v58  ;;  %v1961_v55 = vmul.f32 %v6542_v18, %v1960_v10  ;;  %v4792_v58 = vld [vmem:[#allocation8 + $0x110] sm:$0xf]  ;;  %v4857_v0 = vor.u32 %v5065_v34, %v4856_v40  ;;  %vm1982_vm5 = vweird.f32 %v6516_v60  ;;  %v5033_v40 = vld [vmem:[#allocation8 + $0x94] sm:$0xf0] }
 0x22f   : > { %v1978_v10 = vmul.f32 %v6620_v15, %v1977_v31  ;;  %vm1984_vm6 = vmor %vm1982_vm5, %vm1983_vm3  ;;  %vm1777_vm7 = vcmp.gt.f32.partialorder %v6516_v60, 0.0  ;;  %vm1933_vm8 = vweird.f32 %v6518_v21  ;;  %vm1772_vm10 = vcmp.gt.f32.partialorder %v6441_v3, 0.0  ;;  %v4656_v13 = vld [vmem:[#allocation8] sm:$0xf] }
 0x230   : > { %v1955_v46 = vsel %vm1954_vm11, %v6525_v28, %v1951_v50  ;;  %v6643_v28 = vpop.f32.mrf.mxu1  ;;  %v1938_v50 = vmul.f32 %v6581_v2, %v1937_v62  ;;  %v6657_v39 = vpop.f32.mrf.mxu3  ;;  %v1970_v62 = vsub.f32 1.5, %v1969_v8  ;;  %v4793_v8 = vor.u32 %v5049_v49, %v4792_v58  ;;  %3644 = vmatpush.bf16.msra.mxu3 %v4857_v0 }
 0x231   : > { %v2478_v4 = vsel %vm1774_vm9, %v1955_v46, 0.0  ;;  %v6655_v46 = vpop.f32.mrf.mxu2  ;;  %v1979_v63 = vmul.f32 0.5, %v1978_v10  ;;  %v4664_v10 = vld [vmem:[#allocation8 + $0x10] sm:$0xf]  ;;  %vm1992_vm11 = vweird.f32 %v6625_v22  ;;  %vm1932_vm14 = vweird.f32 %v6441_v3 }
 0x232   : > { %v2542_v29 = vmul.f32 %v2478_v4, %v6455_v37  ;;  %v1965_v37 = vsel %vm6649_vm15, %v6542_v18, %v1961_v55  ;;  %v1971_v17 = vmul.f32 %v6590_v7, %v1970_v62  ;;  %v4728_v62 = vld [vmem:[#allocation8 + $0x90] sm:$0xf]  ;;  %3555 = vmatpush.bf16.msra.mxu2 %v4793_v8  ;;  %vm6795_vm15 = vmor %vm1932_vm14, %vm1933_vm8  ;;  %vm1943_vm1 = vweird.f32 %v6581_v2 }
 0x233   : > { %v2479_v30 = vsel %vm1775_vm13, %v1965_v37, 0.0  ;;  %v1980_v55 = vsub.f32 1.5, %v1979_v63  ;;  %v5017_v37 = vld [vmem:[#allocation8 + $0x14] sm:$0xf0]  ;;  %v6682_v34 = vpop.eup %5185  ;;  %v4729_v49 = vor.u32 %v5033_v40, %v4728_v62  ;;  %vm1778_vm13 = vcmp.gt.f32.partialorder %v6625_v22, 0.0 }
 0x234   : > { %v2615_v31 = vsub.f32 %v2542_v29, %v6154_v5  ;;  %v2543_v51 = vmul.f32 %v2479_v30, %v6458_v47  ;;  %v1975_v29 = vsel %vm1974_vm4, %v6590_v7, %v1971_v17  ;;  %v1651_v47 = vmul.f32 %v6600_v24, %v6600_v24 }
 0x235   : > { %v1981_v63 = vmul.f32 %v6620_v15, %v1980_v55  ;;  %3466 = vmatpush.bf16.msra.mxu1 %v4729_v49  ;;  %vm1993_vm9 = vweird.f32 %v6682_v34  ;;  %vm1942_vm3 = vweird.f32 %v6484_v56 }
 0x236   : > { %v2679_v18 = vmax.f32 %v2615_v31, 0.0  ;;  %v2616_v23 = vsub.f32 %v2543_v51, %v6190_v35  ;;  %v2480_v31 = vsel %vm1776_vm0, %v1975_v29, 0.0  ;;  %v4665_v51 = vor.u32 %v5017_v37, %v4664_v10  ;;  %vm1994_vm12 = vmor %vm1992_vm11, %vm1993_vm9 }
 0x237   : > { %v2544_v58 = vmul.f32 %v2480_v31, %v6513_v61  ;;  %v1985_v0 = vsel %vm1984_vm6, %v6620_v15, %v1981_v63  ;;  %v6701_v61 = vmul.f32 0.5, %v1938_v50  ;;  %v6716_v37 = vadd.f32 %v6556_v42, %v6554_v27  ;;  %vm6837_vm4 = vmor %vm1942_vm3, %vm1943_vm1 }
 0x238   : > { %v6677_v38 = vmul.f32 %v2679_v18, %v2478_v4  ;;  %v2680_v7 = vmax.f32 %v2616_v23, 0.0  ;;  %v6690_v4 = vadd.f32 %v1651_v47, %v6040_v14  ;;  %v1987_v23 = vmul.f32 %v6682_v34, %v6625_v22  ;;  %3377 = vmatpush.bf16.msra.mxu0 %v4665_v51  ;;  %v1339_v8 = vpop.f32.mrf.mxu1  ;;  %v1517_v10 = vpop.f32.mrf.mxu3 }
 0x239   : > { %v2617_v14 = vsub.f32 %v2544_v58, %v6154_v5  ;;  %v2481_v55 = vsel %vm1777_vm7, %v1985_v0, 0.0  ;;  %v1428_v47 = vpop.f32.mrf.mxu2  ;;  %v6725_v51 = vadd.f32 %v6643_v28, %v6641_v48  ;;  %v1652_v27 = vmul.f32 %v6716_v37, %v6716_v37  ;;  %v9329_v28 = vld [vmem:[#allocation43_spill] sm:$0xff]  ;;  %v9332_v0 = vld [vmem:[#allocation88_spill] sm:$0xff] }
 0x23a   : > { %9323 = vst [vmem:[#allocation36_spill] sm:$0xff] %v6677_v38  ;;  %v6694_v17 = vmul.f32 %v6677_v38, %v6389_v16  ;;  %v6703_v18 = vmul.f32 %v2680_v7, %v2479_v30  ;;  %v1250_v16 = vpop.f32.mrf.mxu0  ;;  %v2545_v29 = vmul.f32 %v2481_v55, %v6516_v60  ;;  %v1988_v15 = vmul.f32 %v6682_v34, %v1987_v23  ;;  %v4848_v38 = vld [vmem:[#allocation8 + $0x180] sm:$0xf] }
 0x23b   : > { %5187 = vrsqrt.f32 %v6690_v4  ;;  %v2681_v50 = vmax.f32 %v2617_v14, 0.0  ;;  %v6720_v60 = vadd.f32 %v6588_v44, %v6579_v43  ;;  %v6737_v42 = vadd.f32 %v1339_v8, %v1250_v16  ;;  %v9328_v43 = vld [vmem:[#allocation42_spill] sm:$0xff] }
 0x23c   : > { %9324 = vst [vmem:[#allocation37_spill] sm:$0xff] %v6694_v17  ;;  %v6712_v30 = vmul.f32 %v6703_v18, %v6391_v32  ;;  %v2618_v62 = vsub.f32 %v2545_v29, %v6190_v35  ;;  %v1989_v63 = vmul.f32 0.5, %v1988_v15  ;;  %v6729_v32 = vadd.f32 %v6657_v39, %v6655_v46  ;;  %1381 = vmatmul.bf16.gmra.mxu1 %v9329_v28  ;;  %v9334_v29 = vld [vmem:[#allocation89_spill] sm:$0xff] }
 0x23d   : > { %9325 = vst [vmem:[#allocation134_spill] sm:$0xff] %v6703_v18  ;;  %v6731_v40 = vmul.f32 %v2681_v50, %v2480_v31  ;;  %v1653_v44 = vmul.f32 %v6720_v60, %v6720_v60  ;;  %1292 = vmatmul.bf16.gmra.mxu0 %v9328_v43  ;;  %v1654_v48 = vmul.f32 %v6725_v51, %v6725_v51  ;;  %v9331_v31 = vld [vmem:[#allocation87_spill] sm:$0xff]  ;;  %vm1773_vm0 = vcmp.gt.f32.partialorder %v6484_v56, 0.0 }
 0x23e   : > { %9326 = vst [vmem:[#allocation135_spill] sm:$0xff] %v6712_v30  ;;  %v2682_v7 = vmax.f32 %v2618_v62, 0.0  ;;  %v1990_v58 = vsub.f32 1.5, %v1989_v63  ;;  %v1655_v39 = vmul.f32 %v6729_v32, %v6729_v32  ;;  %1470 = vmatmul.bf16.gmra.mxu2 %v9328_v43  ;;  %v6753_v49 = vadd.f32 %v1652_v27, %v9331_v31  ;;  %1559 = vmatmul.bf16.gmra.mxu3 %v9329_v28 }
 0x23f   : > { %9327 = vst [vmem:[#allocation136_spill] sm:$0xff] %v6731_v40  ;;  %v6749_v46 = vmul.f32 %v6731_v40, %v6460_v9  ;;  %v6756_v23 = vadd.f32 %v1653_v44, %v9332_v0  ;;  %v6765_v15 = vadd.f32 %v1654_v48, %v9334_v29  ;;  %v9335_v9 = vld [vmem:[#allocation90_spill] sm:$0xff]  ;;  %v9336_v62 = vsub.f32 1.5, %v6629_v59 }
 0x240   : > { %v6761_v16 = vmul.f32 %v2682_v7, %v2481_v55  ;;  %v1991_v8 = vmul.f32 %v6682_v34, %v1990_v58  ;;  %v6768_v50 = vadd.f32 %v1655_v39, %v9335_v9  ;;  %v1940_v27 = vsub.f32 1.5, %v6701_v61  ;;  %v1342_v48 = vpop.f32.mrf.mxu1  ;;  %v1520_v0 = vpop.f32.mrf.mxu3 }
 0x241   : > { %9330 = vst [vmem:[#allocation42_spill] sm:$0xff] %v6749_v46  ;;  %v6759_v14 = vpop.eup %5187  ;;  %v1931_v63 = vmul.f32 %v6518_v21, %v9336_v62  ;;  %5189 = vrsqrt.f32 %v6753_v49  ;;  %v1656_v43 = vmul.f32 %v6737_v42, %v6737_v42  ;;  %v1431_v31 = vpop.f32.mrf.mxu2  ;;  %v9341_v62 = vld [vmem:[#allocation91_spill] sm:$0xff]  ;;  %vm2002_vm5 = vweird.f32 %v6690_v4 }
 0x242   : > { %9333 = vst [vmem:[#allocation43_spill] sm:$0xff] %v6761_v16  ;;  %v1997_v55 = vmul.f32 %v6759_v14, %v6690_v4  ;;  %v6781_v44 = vmul.f32 %v6761_v16, %v6462_v6  ;;  %v1995_v59 = vsel %vm1994_vm12, %v6682_v34, %v1991_v8  ;;  %5191 = vrsqrt.f32 %v6756_v23  ;;  %v1253_v58 = vpop.f32.mrf.mxu0 }
 0x243   : > { %v2482_v61 = vsel %vm1778_vm13, %v1995_v59, 0.0  ;;  %v9338_v6 = vsub.f32 %v6576_v1, %v6190_v35  ;;  %5193 = vrsqrt.f32 %v6765_v15  ;;  %v1935_v1 = vsel %vm6795_vm15, %v6518_v21, %v1931_v63  ;;  %v9343_v63 = vld [vmem:[#allocation15_spill] sm:$0xff] }
 0x244   : > { %9337 = vst [vmem:[#allocation87_spill] sm:$0xff] %v6781_v44  ;;  %v1998_v7 = vmul.f32 %v6759_v14, %v1997_v55  ;;  %v2546_v28 = vmul.f32 %v2482_v61, %v6625_v22  ;;  %v1941_v8 = vmul.f32 %v6581_v2, %v1940_v27  ;;  %5195 = vrsqrt.f32 %v6768_v50 }
 0x245   : > { %v2674_v39 = vmax.f32 %v9338_v6, 0.0  ;;  %v6810_v55 = vadd.f32 %v1656_v43, %v9341_v62  ;;  %v6812_v59 = vadd.f32 %v1517_v10, %v1428_v47  ;;  %v6814_v22 = vadd.f32 %v1342_v48, %v1253_v58 }
 0x246   : > { %v1999_v29 = vmul.f32 0.5, %v1998_v7  ;;  %v2619_v9 = vsub.f32 %v2546_v28, %v6154_v5  ;;  %vm2003_vm2 = vweird.f32 %v6759_v14  ;;  %v6819_v21 = vadd.f32 %v1520_v0, %v1431_v31 }
 0x247   : > { %9342 = vst [vmem:[#allocation88_spill] sm:$0xff] %v6812_v59  ;;  %v6816_v6 = vpop.eup %5189  ;;  %v6823_v27 = vmul.f32 %v6303_v20, %v9343_v63  ;;  %v6826_v7 = vmul.f32 %v2674_v39, %v6533_v26  ;;  %v6830_v47 = vsel %vm1772_vm10, %v1935_v1, 0.0  ;;  %5197 = vrsqrt.f32 %v6810_v55  ;;  %vm2004_vm6 = vmor %vm2002_vm5, %vm2003_vm2 }
 0x248   : > { %v2000_v44 = vsub.f32 1.5, %v1999_v29  ;;  %v2683_v10 = vmax.f32 %v2619_v9, 0.0  ;;  %v6833_v43 = vpop.eup %5191  ;;  %v1657_v26 = vmul.f32 %v6812_v59, %v6812_v59  ;;  %v1945_v39 = vsel %vm6837_vm4, %v6581_v2, %v1941_v8  ;;  %v9348_v9 = vld [vmem:[#allocation92_spill] sm:$0xff] }
 0x249   : > { %v6846_v48 = vpop.eup %5193  ;;  %v2017_v28 = vmul.f32 %v6833_v43, %v6756_v23  ;;  %v6863_v0 = vmul.f32 %v6830_v47, %v6441_v3  ;;  %vm1779_vm7 = vcmp.gt.f32.partialorder %v6690_v4, 0.0  ;;  %v6879_v3 = vsel %vm1773_vm0, %v1945_v39, 0.0  ;;  %v6893_v39 = vpop.f32.mrf.mxu2 }
 0x24a   : > { %v2001_v20 = vmul.f32 %v6759_v14, %v2000_v44  ;;  %v6851_v34 = vmul.f32 %v2683_v10, %v2482_v61  ;;  %v2007_v44 = vmul.f32 %v6816_v6, %v6753_v49  ;;  %v6859_v31 = vpop.eup %5195  ;;  %v2027_v61 = vmul.f32 %v6846_v48, %v6765_v15  ;;  %v6885_v58 = vpop.f32.mrf.mxu0 }
 0x24b   : > { %v2018_v29 = vmul.f32 %v6833_v43, %v2017_v28  ;;  %v6875_v62 = vadd.f32 %v1657_v26, %v9348_v9  ;;  %v2037_v10 = vmul.f32 %v6859_v31, %v6768_v50  ;;  %vm1781_vm8 = vcmp.gt.f32.partialorder %v6756_v23, 0.0 }
 0x24c   : > { %9346 = vst [vmem:[#allocation89_spill] sm:$0xff] %v6851_v34  ;;  %v2005_v2 = vsel %vm2004_vm6, %v6759_v14, %v2001_v20  ;;  %v6871_v1 = vmul.f32 %v6851_v34, %v6598_v25  ;;  %v2028_v14 = vmul.f32 %v6846_v48, %v2027_v61  ;;  %v6887_v25 = vpop.f32.mrf.mxu1  ;;  %v9349_v20 = vld [vmem:[#allocation48_spill] sm:$0xff]  ;;  %v2008_v26 = vmul.f32 %v6816_v6, %v2007_v44 }
 0x24d   : > { %v2483_v8 = vsel %vm1779_vm7, %v2005_v2, 0.0  ;;  %1297 = vmatmul.bf16.gmra.mxu0 %v9349_v20  ;;  %v2019_v28 = vmul.f32 0.5, %v2018_v29  ;;  %vm2022_vm9 = vweird.f32 %v6756_v23  ;;  %v9350_v2 = vld [vmem:[#allocation49_spill] sm:$0xff]  ;;  %v6899_v61 = vpop.eup %5197  ;;  %vm2023_vm10 = vweird.f32 %v6833_v43 }
 0x24e   : > { %9347 = vst [vmem:[#allocation90_spill] sm:$0xff] %v6871_v1  ;;  %v2547_v63 = vmul.f32 %v2483_v8, %v6690_v4  ;;  %v6895_v4 = vpop.f32.mrf.mxu3  ;;  %1386 = vmatmul.bf16.gmra.mxu1 %v9350_v2  ;;  %1475 = vmatmul.bf16.gmra.mxu2 %v9349_v20  ;;  %v2029_v44 = vmul.f32 0.5, %v2028_v14  ;;  %v2038_v1 = vmul.f32 %v6859_v31, %v2037_v10  ;;  %vm2033_vm11 = vweird.f32 %v6846_v48  ;;  %vm2024_vm15 = vmor %vm2022_vm9, %vm2023_vm10 }
 0x24f   : > { %1564 = vmatmul.bf16.gmra.mxu3 %v9350_v2  ;;  %v2020_v29 = vsub.f32 1.5, %v2019_v28  ;;  %v2047_v34 = vmul.f32 %v6899_v61, %v6810_v55  ;;  %5199 = vrsqrt.f32 %v6875_v62  ;;  %vm1782_vm12 = vcmp.gt.f32.partialorder %v6765_v15, 0.0 }
 0x250   : > { %v2620_v9 = vsub.f32 %v2547_v63, %v6190_v35  ;;  %v2030_v30 = vsub.f32 1.5, %v2029_v44  ;;  %v2039_v46 = vmul.f32 0.5, %v2038_v1  ;;  %v1658_v63 = vmul.f32 %v6814_v22, %v6814_v22 }
 0x251   : > { %v2021_v14 = vmul.f32 %v6833_v43, %v2020_v29  ;;  %vm2032_vm13 = vweird.f32 %v6765_v15  ;;  %vm2042_vm14 = vweird.f32 %v6768_v50  ;;  %vm2043_vm0 = vweird.f32 %v6859_v31 }
 0x252   : > { %v2684_v20 = vmax.f32 %v2620_v9, 0.0  ;;  %v2031_v1 = vmul.f32 %v6846_v48, %v2030_v30  ;;  %v2040_v28 = vsub.f32 1.5, %v2039_v46  ;;  %v2009_v2 = vmul.f32 0.5, %v2008_v26  ;;  %vm2034_vm1 = vmor %vm2032_vm13, %vm2033_vm11 }
 0x253   : > { %v2025_v9 = vsel %vm2024_vm15, %v6833_v43, %v2021_v14  ;;  %v2048_v44 = vmul.f32 %v6899_v61, %v2047_v34  ;;  %v9354_v14 = vld [vmem:[#allocation86_spill] sm:$0xff]  ;;  %v2613_v34 = vsub.f32 %v6863_v0, %v6154_v5  ;;  %vm2044_vm2 = vmor %vm2042_vm14, %vm2043_vm0  ;;  %vm1783_vm3 = vcmp.gt.f32.partialorder %v6768_v50, 0.0  ;;  %v6958_v0 = vpop.f32.mrf.mxu0 }
 0x254   : > { %v6915_v10 = vmul.f32 %v2684_v20, %v2483_v8  ;;  %v9352_v8 = vld [vmem:[#allocation93_spill] sm:$0xff]  ;;  %v2485_v30 = vsel %vm1781_vm8, %v2025_v9, 0.0  ;;  %v2035_v46 = vsel %vm2034_vm1, %v6846_v48, %v2031_v1  ;;  %v2041_v26 = vmul.f32 %v6859_v31, %v2040_v28  ;;  %v9356_v9 = vld [vmem:[#allocation103_spill] sm:$0xff] }
 0x255   : > { %v6928_v29 = vadd.f32 %v1658_v63, %v9352_v8  ;;  %v6938_v43 = vpop.eup %5199  ;;  %v6942_v17 = vmul.f32 %v9354_v14, %v9354_v14  ;;  %v2549_v63 = vmul.f32 %v2485_v30, %v6756_v23  ;;  %v2541_v48 = vmul.f32 %v6879_v3, %v6484_v56  ;;  %v6960_v23 = vpop.f32.mrf.mxu1 }
 0x256   : > { %9351 = vst [vmem:[#allocation91_spill] sm:$0xff] %v6915_v10  ;;  %v6932_v20 = vmul.f32 %v6915_v10, %v6600_v24  ;;  %v2486_v24 = vsel %vm1782_vm12, %v2035_v46, 0.0  ;;  %v2045_v28 = vsel %vm2044_vm2, %v6859_v31, %v2041_v26  ;;  %v6964_v8 = vmul.f32 %v6593_v53, %v9356_v9  ;;  %v6969_v56 = vpop.f32.mrf.mxu3 }
 0x257   : > { %9355 = vst [vmem:[#allocation92_spill] sm:$0xff] %v6942_v17  ;;  %v2550_v1 = vmul.f32 %v2486_v24, %v6765_v15  ;;  %v2010_v46 = vsub.f32 1.5, %v2009_v2  ;;  %v2622_v14 = vsub.f32 %v2549_v63, %v6190_v35  ;;  %v2487_v17 = vsel %vm1783_vm3, %v2045_v28, 0.0  ;;  %v9357_v15 = vld [vmem:[#allocation18_spill] sm:$0xff]  ;;  %v4784_v63 = vld [vmem:[#allocation8 + $0x100] sm:$0xf] }
 0x258   : > { %9353 = vst [vmem:[#allocation15_spill] sm:$0xff] %v6932_v20  ;;  %v6967_v20 = vpop.f32.mrf.mxu2  ;;  %v6973_v10 = vmul.f32 %v6826_v7, %v9357_v15  ;;  %v2551_v26 = vmul.f32 %v2487_v17, %v6768_v50  ;;  %v2049_v16 = vmul.f32 0.5, %v2048_v44  ;;  %v2057_v2 = vmul.f32 %v6938_v43, %v6875_v62  ;;  %v5047_v28 = vld [vmem:[#allocation8 + $0x104] sm:$0xf0] }
 0x259   : > { %v2623_v31 = vsub.f32 %v2550_v1, %v6154_v5  ;;  %v2686_v18 = vmax.f32 %v2622_v14, 0.0  ;;  %5201 = vrsqrt.f32 %v6928_v29  ;;  %v1659_v9 = vmul.f32 %v6819_v21, %v6819_v21  ;;  %v5063_v50 = vld [vmem:[#allocation8 + $0x184] sm:$0xf0] }
 0x25a   : > { %9358 = vst [vmem:[#allocation48_spill] sm:$0xff] %v6973_v10  ;;  %v2677_v59 = vmax.f32 %v2613_v34, 0.0  ;;  %v2614_v15 = vsub.f32 %v2541_v48, %v6190_v35  ;;  %v2624_v1 = vsub.f32 %v2551_v26, %v6190_v35  ;;  %v2011_v44 = vmul.f32 %v6816_v6, %v2010_v46 }
 0x25b   : > { %v2687_v40 = vmax.f32 %v2623_v31, 0.0  ;;  %vm2013_vm4 = vweird.f32 %v6816_v6  ;;  %v6986_v14 = vmul.f32 %v2686_v18, %v2485_v30  ;;  %v6990_v33 = vadd.f32 %v6887_v25, %v6885_v58  ;;  %v9361_v18 = vld [vmem:[#allocation94_spill] sm:$0xff]  ;;  %v4720_v25 = vld [vmem:[#allocation8 + $0x80] sm:$0xf] }
 0x25c   : > { %v2688_v48 = vmax.f32 %v2624_v1, 0.0  ;;  %v2050_v31 = vsub.f32 1.5, %v2049_v16  ;;  %v4785_v54 = vor.u32 %v5047_v28, %v4784_v63  ;;  %v2058_v46 = vmul.f32 %v6938_v43, %v2057_v2 }
 0x25d   : > { %v6992_v34 = vmul.f32 %v2687_v40, %v2486_v24  ;;  %v6996_v26 = vmul.f32 %v6986_v14, %v6720_v60  ;;  %v4849_v10 = vor.u32 %v5063_v50, %v4848_v38  ;;  %v7000_v30 = vadd.f32 %v1659_v9, %v9361_v18  ;;  %v5031_v24 = vld [vmem:[#allocation8 + $0x84] sm:$0xf0] }
 0x25e   : > { %vm2012_vm5 = vweird.f32 %v6753_v49  ;;  %v7007_v40 = vmul.f32 %v2688_v48, %v2487_v17  ;;  %3556 = vmatpush.bf16.msra.mxu2 %v4785_v54  ;;  %v4657_v16 = vor.u32 %v5015_v45, %v4656_v13  ;;  %v7012_v2 = vmul.f32 %v2677_v59, %v6830_v47  ;;  %v1349_v59 = vpop.f32.mrf.mxu1  ;;  %v1527_v9 = vpop.f32.mrf.mxu3 }
 0x25f   : > { %9359 = vst [vmem:[#allocation49_spill] sm:$0xff] %v6992_v34  ;;  %v7005_v58 = vmul.f32 %v6992_v34, %v6725_v51  ;;  %v7009_v60 = vpop.eup %5201  ;;  %v7014_v38 = vmax.f32 %v2614_v15, 0.0  ;;  %vm7018_vm6 = vmor %vm2012_vm5, %vm2013_vm4  ;;  %vm2053_vm7 = vweird.f32 %v6899_v61  ;;  %3645 = vmatpush.bf16.msra.mxu3 %v4849_v10  ;;  %5203 = vrsqrt.f32 %v7000_v30  ;;  %v1260_v51 = vpop.f32.mrf.mxu0  ;;  %v9367_v15 = vld [vmem:[#allocation109_spill] sm:$0xff] }
 0x260   : > { %9360 = vst [vmem:[#allocation93_spill] sm:$0xff] %v6996_v26  ;;  %v2015_v54 = vsel %vm7018_vm6, %v6816_v6, %v2011_v44  ;;  %v7029_v45 = vmul.f32 %v7007_v40, %v6729_v32  ;;  %v2051_v13 = vmul.f32 %v6899_v61, %v2050_v31  ;;  %v2067_v17 = vmul.f32 %v7009_v60, %v6928_v29  ;;  %v1438_v6 = vpop.f32.mrf.mxu2  ;;  %v9370_v31 = vld [vmem:[#allocation95_spill] sm:$0xff] }
 0x261   : > { %9362 = vst [vmem:[#allocation103_spill] sm:$0xff] %v7005_v58  ;;  %3378 = vmatpush.bf16.msra.mxu0 %v4657_v16  ;;  %vm1780_vm8 = vcmp.gt.f32.partialorder %v6753_v49, 0.0  ;;  %v2059_v47 = vmul.f32 0.5, %v2058_v46  ;;  %v4721_v10 = vor.u32 %v5031_v24, %v4720_v25  ;;  %v1660_v28 = vmul.f32 %v6990_v33, %v6990_v33  ;;  %3557 = vmatmul.bf16.vlgmr.msra.gmra.mxu2 %v9367_v15  ;;  %v9371_v16 = vld [vmem:[#allocation19_spill] sm:$0xff]  ;;  %v4778_v58 = vld [vmem:[#allocation8 + $0xf8] sm:$0xf0] }
 0x262   : > { %9363 = vst [vmem:[#allocation18_spill] sm:$0xff] %v7007_v40  ;;  %vm2052_vm9 = vweird.f32 %v6810_v55  ;;  %v2068_v32 = vmul.f32 %v7009_v60, %v2067_v17  ;;  %v7042_v1 = vadd.f32 %v6895_v4, %v6893_v39  ;;  %v7046_v50 = vadd.f32 %v6960_v23, %v6958_v0  ;;  %3646 = vmatmul.bf16.vlgmr.msra.gmra.mxu3 %v6338_v11 }
 0x263   : > { %9366 = vst [vmem:[#allocation94_spill] sm:$0xff] %v7029_v45  ;;  %v7049_v44 = vsel %vm1780_vm8, %v2015_v54, 0.0  ;;  %vm1784_vm10 = vcmp.gt.f32.partialorder %v6810_v55, 0.0  ;;  %vm7054_vm11 = vmor %vm2052_vm9, %vm2053_vm7  ;;  %3467 = vmatpush.bf16.msra.mxu1 %v4721_v10  ;;  %v7059_v39 = vadd.f32 %v1660_v28, %v9370_v31  ;;  %v7063_v4 = vadd.f32 %v6969_v56, %v6967_v20 }
 0x264   : > { %v2055_v0 = vsel %vm7054_vm11, %v6899_v61, %v2051_v13  ;;  %v2069_v23 = vmul.f32 0.5, %v2068_v32  ;;  %v1661_v46 = vmul.f32 %v7042_v1, %v7042_v1  ;;  %v1662_v18 = vmul.f32 %v7046_v50, %v7046_v50  ;;  %3379 = vmatmul.bf16.vlgmr.msra.gmra.mxu0 %v9371_v16  ;;  %v9372_v13 = vld [vmem:[#allocation96_spill] sm:$0xff] }
 0x265   : > { %v7073_v25 = vpop.eup %5203  ;;  %v2060_v24 = vsub.f32 1.5, %v2059_v47  ;;  %5205 = vrsqrt.f32 %v7059_v39  ;;  %v1663_v20 = vmul.f32 %v7063_v4, %v7063_v4  ;;  %v7078_v56 = vadd.f32 %v1349_v59, %v1260_v51  ;;  %v9373_v47 = vld [vmem:[#allocation97_spill] sm:$0xff]  ;;  %v9374_v59 = vld [vmem:[#allocation98_spill] sm:$0xff] }
 0x266   : > { %vm2062_vm12 = vweird.f32 %v6875_v62  ;;  %v2070_v61 = vsub.f32 1.5, %v2069_v23  ;;  %vm2073_vm13 = vweird.f32 %v7009_v60  ;;  %v2077_v63 = vmul.f32 %v7073_v25, %v7000_v30  ;;  %3468 = vmatmul.bf16.vlgmr.msra.gmra.mxu1 %v6336_v57 }
 0x267   : > { %v7087_v54 = vmul.f32 %v7049_v44, %v6753_v49  ;;  %v7090_v17 = vadd.f32 %v1661_v46, %v9372_v13  ;;  %v7093_v51 = vadd.f32 %v1662_v18, %v9373_v47  ;;  %v7096_v10 = vadd.f32 %v1663_v20, %v9374_v59  ;;  %v1263_v46 = vpop.f32.mrf.mxu0  ;;  %v1352_v18 = vpop.f32.mrf.mxu1 }
 0x268   : > { %v7100_v28 = vsel %vm1784_vm10, %v2055_v0, 0.0  ;;  %v2071_v32 = vmul.f32 %v7009_v60, %v2070_v61  ;;  %vm2072_vm14 = vweird.f32 %v6928_v29  ;;  %v2078_v49 = vmul.f32 %v7073_v25, %v2077_v63  ;;  %v1441_v63 = vpop.f32.mrf.mxu2  ;;  %v1530_v13 = vpop.f32.mrf.mxu3 }
 0x269   : > { %v2061_v48 = vmul.f32 %v6938_v43, %v2060_v24  ;;  %vm2063_vm15 = vweird.f32 %v6938_v43  ;;  %vm2074_vm0 = vmor %vm2072_vm14, %vm2073_vm13  ;;  %5207 = vrsqrt.f32 %v7090_v17  ;;  %v1664_v31 = vmul.f32 %v7078_v56, %v7078_v56 }
 0x26a   : > { %vm1786_vm1 = vcmp.gt.f32.partialorder %v6928_v29, 0.0  ;;  %v2075_v0 = vsel %vm2074_vm0, %v7009_v60, %v2071_v32  ;;  %v2079_v23 = vmul.f32 0.5, %v2078_v49  ;;  %5209 = vrsqrt.f32 %v7093_v51  ;;  %vm7123_vm3 = vmor %vm2062_vm12, %vm2063_vm15  ;;  %v9377_v49 = vld [vmem:[#allocation13_spill] sm:$0xff] }
 0x26b   : > { %v7113_v20 = vpop.eup %5205  ;;  %v2552_v24 = vmul.f32 %v7100_v28, %v6810_v55  ;;  %v2490_v61 = vsel %vm1786_vm1, %v2075_v0, 0.0  ;;  %vm2082_vm2 = vweird.f32 %v7000_v30  ;;  %5211 = vrsqrt.f32 %v7096_v10 }
 0x26c   : > { %v2554_v47 = vmul.f32 %v2490_v61, %v6928_v29  ;;  %v2080_v59 = vsub.f32 1.5, %v2079_v23  ;;  %vm2083_vm4 = vweird.f32 %v7073_v25  ;;  %v2087_v55 = vmul.f32 %v7113_v20, %v7059_v39 }
 0x26d   : > { %v2065_v32 = vsel %vm7123_vm3, %v6938_v43, %v2061_v48  ;;  %v7135_v0 = vadd.f32 %v1664_v31, %v9377_v49  ;;  %v7137_v11 = vadd.f32 %v1527_v9, %v1438_v6  ;;  %v7139_v15 = vadd.f32 %v1352_v18, %v1263_v46  ;;  %vm2084_vm6 = vmor %vm2082_vm2, %vm2083_vm4 }
 0x26e   : > { %v2627_v57 = vsub.f32 %v2554_v47, %v6154_v5  ;;  %v2081_v29 = vmul.f32 %v7073_v25, %v2080_v59  ;;  %v2088_v23 = vmul.f32 %v7113_v20, %v2087_v55  ;;  %v7144_v16 = vadd.f32 %v1530_v13, %v1441_v63 }
 0x26f   : > { %v7146_v45 = vpop.eup %5207  ;;  %v2621_v43 = vsub.f32 %v7087_v54, %v6154_v5  ;;  %v2625_v48 = vsub.f32 %v2552_v24, %v6154_v5  ;;  %vm1785_vm5 = vcmp.gt.f32.partialorder %v6875_v62, 0.0  ;;  %5213 = vrsqrt.f32 %v7135_v0 }
 0x270   : > { %v5210_v6 = vpop.eup %5209  ;;  %v2691_v9 = vmax.f32 %v2627_v57, 0.0  ;;  %vm1787_vm7 = vcmp.gt.f32.partialorder %v7000_v30, 0.0  ;;  %v2085_v31 = vsel %vm2084_vm6, %v7073_v25, %v2081_v29  ;;  %v2097_v46 = vmul.f32 %v7146_v45, %v7090_v17 }
 0x271   : > { %v7159_v18 = vpop.eup %5211  ;;  %v7161_v54 = vsel %vm1785_vm5, %v2065_v32, 0.0  ;;  %v2491_v24 = vsel %vm1787_vm7, %v2085_v31, 0.0  ;;  %v2107_v63 = vmul.f32 %v5210_v6, %v7093_v51  ;;  %v1665_v13 = vmul.f32 %v7137_v11, %v7137_v11  ;;  %v9380_v31 = vld [vmem:[#allocation14_spill] sm:$0xff] }
 0x272   : > { %v7166_v60 = vmul.f32 %v2691_v9, %v2490_v61  ;;  %v2555_v57 = vmul.f32 %v2491_v24, %v7000_v30  ;;  %v2089_v47 = vmul.f32 0.5, %v2088_v23  ;;  %v2098_v25 = vmul.f32 %v7146_v45, %v2097_v46 }
 0x273   : > { %v7172_v59 = vmul.f32 %v7012_v2, %v6370_v19  ;;  %v7176_v55 = vmul.f32 %v7014_v38, %v6879_v3  ;;  %v2108_v32 = vmul.f32 %v5210_v6, %v2107_v63  ;;  %v2117_v49 = vmul.f32 %v7159_v18, %v7096_v10 }
 0x274   : > { %9378 = vst [vmem:[#allocation95_spill] sm:$0xff] %v7166_v60  ;;  %v2685_v29 = vmax.f32 %v2621_v43, 0.0  ;;  %v2689_v61 = vmax.f32 %v2625_v48, 0.0  ;;  %v7182_v30 = vmul.f32 %v7166_v60, %v6814_v22  ;;  %v2628_v23 = vsub.f32 %v2555_v57, %v6190_v35 }
 0x275   : > { %v7185_v9 = vpop.eup %5213  ;;  %v7189_v19 = vmul.f32 %v7161_v54, %v6875_v62  ;;  %v2109_v3 = vmul.f32 0.5, %v2108_v32  ;;  %v2118_v38 = vmul.f32 %v7159_v18, %v2117_v49  ;;  %v7193_v46 = vadd.f32 %v1665_v13, %v9380_v31 }
 0x276   : > { %9379 = vst [vmem:[#allocation96_spill] sm:$0xff] %v7182_v30  ;;  %v2692_v43 = vmax.f32 %v2628_v23, 0.0  ;;  %v2090_v48 = vsub.f32 1.5, %v2089_v47  ;;  %v2099_v63 = vmul.f32 0.5, %v2098_v25  ;;  %vm1790_vm8 = vcmp.gt.f32.partialorder %v7093_v51, 0.0 }
 0x277   : > { %v2110_v22 = vsub.f32 1.5, %v2109_v3  ;;  %vm2113_vm9 = vweird.f32 %v5210_v6  ;;  %v2119_v57 = vmul.f32 0.5, %v2118_v38  ;;  %v2127_v30 = vmul.f32 %v7185_v9, %v7135_v0  ;;  %v9383_v38 = vld [vmem:[#allocation99_spill] sm:$0xff] }
 0x278   : > { %v7198_v60 = vmul.f32 %v2692_v43, %v2491_v24  ;;  %vm2093_vm10 = vweird.f32 %v7113_v20  ;;  %vm2112_vm11 = vweird.f32 %v7093_v51  ;;  %vm2123_vm12 = vweird.f32 %v7159_v18 }
 0x279   : > { %v2111_v62 = vmul.f32 %v5210_v6, %v2110_v22  ;;  %v2120_v13 = vsub.f32 1.5, %v2119_v57  ;;  %5215 = vrsqrt.f32 %v7193_v46  ;;  %v1666_v47 = vmul.f32 %v7139_v15, %v7139_v15  ;;  %vm2114_vm13 = vmor %vm2112_vm11, %vm2113_vm9 }
 0x27a   : > { %9381 = vst [vmem:[#allocation97_spill] sm:$0xff] %v7198_v60  ;;  %v7208_v25 = vmul.f32 %v7198_v60, %v6819_v21  ;;  %v2091_v24 = vmul.f32 %v7113_v20, %v2090_v48  ;;  %v2100_v32 = vsub.f32 1.5, %v2099_v63  ;;  %vm2122_vm14 = vweird.f32 %v7096_v10  ;;  %v5044_v60 = vld [vmem:[#allocation8 + $0xf4] sm:$0xf] }
 0x27b   : > { %v2115_v49 = vsel %vm2114_vm13, %v5210_v6, %v2111_v62  ;;  %v2121_v23 = vmul.f32 %v7159_v18, %v2120_v13  ;;  %v2128_v3 = vmul.f32 %v7185_v9, %v2127_v30  ;;  %v7215_v31 = vadd.f32 %v1666_v47, %v9383_v38  ;;  %vm2124_vm0 = vmor %vm2122_vm14, %vm2123_vm12  ;;  %v7229_v6 = vpop.f32.mrf.mxu0  ;;  %v7231_v30 = vpop.f32.mrf.mxu1 }
 0x27c   : > { %9382 = vst [vmem:[#allocation98_spill] sm:$0xff] %v7208_v25  ;;  %v7219_v43 = vmul.f32 %v7176_v55, %v6416_v52  ;;  %v7222_v21 = vmul.f32 %v2685_v29, %v7049_v44  ;;  %vm2092_vm15 = vweird.f32 %v7059_v39  ;;  %v2494_v48 = vsel %vm1790_vm8, %v2115_v49, 0.0  ;;  %v4842_v49 = vld [vmem:[#allocation8 + $0x178] sm:$0xf0]  ;;  %v5028_v52 = vld [vmem:[#allocation8 + $0x74] sm:$0xf] }
 0x27d   : > { %v7234_v63 = vmul.f32 %v2689_v61, %v7100_v28  ;;  %vm7238_vm1 = vmor %vm2092_vm15, %vm2093_vm10  ;;  %v2558_v44 = vmul.f32 %v2494_v48, %v7093_v51  ;;  %vm1791_vm2 = vcmp.gt.f32.partialorder %v7096_v10, 0.0  ;;  %v2125_v29 = vsel %vm2124_vm0, %v7159_v18, %v2121_v23  ;;  %v5060_v18 = vld [vmem:[#allocation8 + $0x174] sm:$0xf]  ;;  %v4714_v25 = vld [vmem:[#allocation8 + $0x78] sm:$0xf0] }
 0x27e   : > { %v2095_v22 = vsel %vm7238_vm1, %v7113_v20, %v2091_v24  ;;  %v2101_v57 = vmul.f32 %v7146_v45, %v2100_v32  ;;  %vm2103_vm3 = vweird.f32 %v7146_v45  ;;  %v2495_v28 = vsel %vm1791_vm2, %v2125_v29, 0.0  ;;  %v5076_v20 = vld [vmem:[#allocation8 + $0x1f4] sm:$0xf]  ;;  %v4906_v24 = vld [vmem:[#allocation8 + $0x1f8] sm:$0xf0] }
 0x27f   : > { %v7250_v61 = vpop.eup %5215  ;;  %v2626_v62 = vsub.f32 %v7189_v19, %v6190_v35  ;;  %v2631_v51 = vsub.f32 %v2558_v44, %v6154_v5  ;;  %v2559_v13 = vmul.f32 %v2495_v28, %v7096_v10  ;;  %v2129_v47 = vmul.f32 0.5, %v2128_v3 }
 0x280   : > { %vm1788_vm4 = vcmp.gt.f32.partialorder %v7059_v39, 0.0  ;;  %vm2102_vm5 = vweird.f32 %v7090_v17  ;;  %5217 = vrsqrt.f32 %v7215_v31  ;;  %v1667_v32 = vmul.f32 %v7144_v16, %v7144_v16 }
 0x281   : > { %v7263_v19 = vmul.f32 %v7222_v21, %v6716_v37  ;;  %v7265_v23 = vsel %vm1788_vm4, %v2095_v22, 0.0  ;;  %vm7269_vm6 = vmor %vm2102_vm5, %vm2103_vm3  ;;  %v2695_v3 = vmax.f32 %v2631_v51, 0.0  ;;  %v2632_v38 = vsub.f32 %v2559_v13, %v6190_v35 }
 0x282   : > { %v7276_v44 = vmul.f32 %v7234_v63, %v6737_v42  ;;  %v2105_v37 = vsel %vm7269_vm6, %v7146_v45, %v2101_v57  ;;  %v2137_v29 = vmul.f32 %v7250_v61, %v7193_v46  ;;  %v4845_v22 = vor.u32 %v5060_v18, %v4842_v49  ;;  %v9388_v45 = vld [vmem:[#allocation100_spill] sm:$0xff]  ;;  %v1443_v18 = vpop.f32.mrf.mxu2  ;;  %v1532_v49 = vpop.f32.mrf.mxu3 }
 0x283   : > { %v7283_v40 = vmul.f32 %v2695_v3, %v2494_v48  ;;  %v2696_v51 = vmax.f32 %v2632_v38, 0.0  ;;  %v2130_v13 = vsub.f32 1.5, %v2129_v47  ;;  %v4909_v34 = vor.u32 %v5076_v20, %v4906_v24  ;;  %v1268_v24 = vpop.f32.mrf.mxu0 }
 0x284   : > { %v7285_v26 = vmax.f32 %v2626_v62, 0.0  ;;  %v7289_v42 = vmul.f32 %v7265_v23, %v7059_v39  ;;  %3905 = vmatpush.bf16.msrb.mxu2 %v4845_v22  ;;  %v7292_v57 = vadd.f32 %v1667_v32, %v9388_v45  ;;  %v4717_v10 = vor.u32 %v5028_v52, %v4714_v25  ;;  %v1357_v32 = vpop.f32.mrf.mxu1 }
 0x285   : > { %vm1789_vm7 = vcmp.gt.f32.partialorder %v7090_v17, 0.0  ;;  %v7297_v48 = vmul.f32 %v7283_v40, %v7046_v50  ;;  %v7299_v47 = vmul.f32 %v2696_v51, %v2495_v28  ;;  %3994 = vmatpush.bf16.msrb.mxu3 %v4909_v34  ;;  %v4781_v62 = vor.u32 %v5044_v60, %v4778_v58 }
 0x286   : > { %v7301_v20 = vpop.eup %5217  ;;  %v7303_v39 = vsel %vm1789_vm7, %v2105_v37, 0.0  ;;  %vm1792_vm8 = vcmp.gt.f32.partialorder %v7135_v0, 0.0  ;;  %v2138_v25 = vmul.f32 %v7250_v61, %v2137_v29  ;;  %5219 = vrsqrt.f32 %v7292_v57  ;;  %3727 = vmatpush.bf16.msrb.mxu0 %v4717_v10  ;;  %v9389_v37 = vld [vmem:[#allocation17_spill] sm:$0xff] }
 0x287   : > { %v7310_v50 = vmul.f32 %v7299_v47, %v7063_v4  ;;  %v2131_v34 = vmul.f32 %v7185_v9, %v2130_v13  ;;  %vm2133_vm9 = vweird.f32 %v7185_v9  ;;  %v2147_v58 = vmul.f32 %v7301_v20, %v7215_v31  ;;  %3816 = vmatpush.bf16.msrb.mxu1 %v4781_v62  ;;  %v9394_v62 = vld [vmem:[#allocation101_spill] sm:$0xff] }
 0x288   : > { %vm2132_vm10 = vweird.f32 %v7135_v0  ;;  %v7321_v28 = vadd.f32 %v7231_v30, %v7229_v6  ;;  %v7323_v3 = vadd.f32 %v1532_v49, %v1443_v18  ;;  %v7327_v4 = vmul.f32 %v7303_v39, %v7090_v17  ;;  %v9392_v17 = vld [vmem:[#allocation16_spill] sm:$0xff] }
 0x289   : > { %v2148_v38 = vmul.f32 %v7301_v20, %v2147_v58  ;;  %v7330_v52 = vadd.f32 %v1357_v32, %v1268_v24  ;;  %v2807_v29 = vmul.f32 %v6593_v53, %v9389_v37  ;;  %vm7334_vm11 = vmor %vm2132_vm10, %vm2133_vm9  ;;  %v2139_v51 = vmul.f32 0.5, %v2138_v25  ;;  %v9395_v24 = vld [vmem:[#allocation102_spill] sm:$0xff]  ;;  %v9396_v32 = vld [vmem:[#allocation20_spill] sm:$0xff] }
 0x28a   : > { %v1668_v6 = vmul.f32 %v7321_v28, %v7321_v28  ;;  %v1669_v30 = vmul.f32 %v7323_v3, %v7323_v3  ;;  %v2804_v13 = vmul.f32 %v6397_v12, %v9392_v17  ;;  %v2135_v45 = vsel %vm7334_vm11, %v7185_v9, %v2131_v34  ;;  %v9400_v17 = vld [vmem:[#allocation48_spill] sm:$0xff] }
 0x28b   : > { %v2149_v10 = vmul.f32 0.5, %v2148_v38  ;;  %v1670_v53 = vmul.f32 %v7330_v52, %v7330_v52  ;;  %v7350_v18 = vpack.c.bf16 %v2807_v29, %v6823_v27  ;;  %vm2142_vm12 = vweird.f32 %v7193_v46 }
 0x28c   : > { %v7352_v49 = vpop.eup %5219  ;;  %v7356_v25 = vadd.f32 %v1668_v6, %v9394_v62  ;;  %v7359_v12 = vadd.f32 %v1669_v30, %v9395_v24  ;;  %v2808_v9 = vmul.f32 %v6826_v7, %v9396_v32  ;;  %v7365_v34 = vpack.c.bf16 %v6964_v8, %v6329_v36  ;;  %v1446_v36 = vpop.f32.mrf.mxu2 }
 0x28d   : > { %9393 = vst [vmem:[#allocation13_spill] sm:$0xff] %v7350_v18  ;;  %vm2143_vm13 = vweird.f32 %v7250_v61  ;;  %v2150_v27 = vsub.f32 1.5, %v2149_v10  ;;  %vm2153_vm14 = vweird.f32 %v7301_v20  ;;  %v2157_v58 = vmul.f32 %v7352_v49, %v7292_v57  ;;  %3384 = vmatmul.bf16.gmra.mxu0 %v7350_v18  ;;  %v1535_v8 = vpop.f32.mrf.mxu3 }
 0x28e   : > { %9397 = vst [vmem:[#allocation14_spill] sm:$0xff] %v7365_v34  ;;  %v7376_v7 = vsel %vm1792_vm8, %v2135_v45, 0.0  ;;  %v2140_v37 = vsub.f32 1.5, %v2139_v51  ;;  %5221 = vrsqrt.f32 %v7356_v25  ;;  %3562 = vmatmul.bf16.gmra.mxu2 %v7365_v34  ;;  %vm2152_vm15 = vweird.f32 %v7215_v31  ;;  %v9398_v51 = vld [vmem:[#allocation104_spill] sm:$0xff]  ;;  %vm7431_vm5 = vmor %vm2142_vm12, %vm2143_vm13 }
 0x28f   : > { %v2151_v29 = vmul.f32 %v7301_v20, %v2150_v27  ;;  %v2158_v22 = vmul.f32 %v7352_v49, %v2157_v58  ;;  %5223 = vrsqrt.f32 %v7359_v12  ;;  %vm1793_vm0 = vcmp.gt.f32.partialorder %v7193_v46, 0.0  ;;  %vm2154_vm2 = vmor %vm2152_vm15, %vm2153_vm14 }
 0x290   : > { %vm1794_vm1 = vcmp.gt.f32.partialorder %v7215_v31, 0.0  ;;  %v7389_v6 = vadd.f32 %v1670_v53, %v9398_v51  ;;  %v7391_v30 = vpack.c.bf16 %v2808_v9, %v2804_v13  ;;  %v7395_v45 = vpack.c.bf16 %v9400_v17, %v6420_v41  ;;  %v9402_v13 = vld [vmem:[#allocation21_spill] sm:$0xff]  ;;  %v9403_v53 = vld [vmem:[#allocation31_spill] sm:$0xff]  ;;  %v9405_v51 = vld [vmem:[#allocation22_spill] sm:$0xff] }
 0x291   : > { %v7399_v10 = vmul.f32 %v7376_v7, %v7135_v0  ;;  %v2155_v62 = vsel %vm2154_vm2, %v7301_v20, %v2151_v29  ;;  %v2159_v24 = vmul.f32 0.5, %v2158_v22  ;;  %v7402_v32 = vadd.f32 %v1535_v8, %v1446_v36  ;;  %v1359_v8 = vpop.f32.mrf.mxu1  ;;  %v9404_v29 = vld [vmem:[#allocation23_spill] sm:$0xff]  ;;  %v9406_v17 = vld [vmem:[#allocation132_spill] sm:$0xff] }
 0x292   : > { %9399 = vst [vmem:[#allocation99_spill] sm:$0xff] %v7391_v30  ;;  %v2141_v27 = vmul.f32 %v7250_v61, %v2140_v37  ;;  %v2498_v58 = vsel %vm1794_vm1, %v2155_v62, 0.0  ;;  %vm2163_vm3 = vweird.f32 %v7352_v49  ;;  %5225 = vrsqrt.f32 %v7389_v6  ;;  %3473 = vmatmul.bf16.gmra.mxu1 %v7391_v30  ;;  %3651 = vmatmul.bf16.gmra.mxu3 %v7395_v45  ;;  %v1270_v37 = vpop.f32.mrf.mxu0 }
 0x293   : > { %9401 = vst [vmem:[#allocation100_spill] sm:$0xff] %v7395_v45  ;;  %v2562_v41 = vmul.f32 %v2498_v58, %v7215_v31  ;;  %v2160_v0 = vsub.f32 1.5, %v2159_v24  ;;  %v1671_v20 = vmul.f32 %v7402_v32, %v7402_v32  ;;  %v2811_v9 = vmul.f32 %v9403_v53, %v9402_v13  ;;  %v9407_v31 = vld [vmem:[#allocation125_spill] sm:$0xff] }
 0x294   : > { %v7414_v36 = vpop.eup %5221  ;;  %vm1795_vm4 = vcmp.gt.f32.partialorder %v7292_v57, 0.0  ;;  %v2815_v22 = vmul.f32 %v7012_v2, %v9404_v29  ;;  %v2812_v62 = vmul.f32 %v9406_v17, %v9405_v51  ;;  %v7423_v24 = vpack.c.bf16 %v7172_v59, %v9407_v31  ;;  %v9411_v17 = vld [vmem:[#allocation105_spill] sm:$0xff] }
 0x295   : > { %v7425_v38 = vpop.eup %5223  ;;  %v2635_v53 = vsub.f32 %v2562_v41, %v6154_v5  ;;  %v2161_v2 = vmul.f32 %v7352_v49, %v2160_v0  ;;  %vm2162_vm6 = vweird.f32 %v7292_v57  ;;  %v2167_v59 = vmul.f32 %v7414_v36, %v7356_v25 }
 0x296   : > { %9408 = vst [vmem:[#allocation17_spill] sm:$0xff] %v7423_v24  ;;  %v2145_v29 = vsel %vm7431_vm5, %v7250_v61, %v2141_v27  ;;  %vm2164_vm7 = vmor %vm2162_vm6, %vm2163_vm3  ;;  %v2177_v51 = vmul.f32 %v7425_v38, %v7359_v12  ;;  %v7448_v31 = vadd.f32 %v1671_v20, %v9411_v17  ;;  %v7450_v41 = vadd.f32 %v1359_v8, %v1270_v37  ;;  %v9414_v20 = vld [vmem:[#allocation26_spill] sm:$0xff] }
 0x297   : > { %v2699_v0 = vmax.f32 %v2635_v53, 0.0  ;;  %v2165_v60 = vsel %vm2164_vm7, %v7352_v49, %v2161_v2  ;;  %v2168_v45 = vmul.f32 %v7414_v36, %v2167_v59  ;;  %v7454_v34 = vpack.c.bf16 %v2815_v22, %v2811_v9  ;;  %v1537_v53 = vpop.f32.mrf.mxu3 }
 0x298   : > { %v5226_v13 = vpop.eup %5225  ;;  %v9413_v61 = vsub.f32 %v7289_v42, %v6154_v5  ;;  %v2499_v30 = vsel %vm1795_vm4, %v2165_v60, 0.0  ;;  %5227 = vrsqrt.f32 %v7448_v31  ;;  %v2816_v37 = vmul.f32 %v7176_v55, %v9414_v20  ;;  %v1448_v42 = vpop.f32.mrf.mxu2 }
 0x299   : > { %9412 = vst [vmem:[#allocation16_spill] sm:$0xff] %v7454_v34  ;;  %v7466_v49 = vsel %vm1793_vm0, %v2145_v29, 0.0  ;;  %v7468_v8 = vmul.f32 %v2699_v0, %v2498_v58  ;;  %v2563_v9 = vmul.f32 %v2499_v30, %v7292_v57  ;;  %v2187_v22 = vmul.f32 %v5226_v13, %v7389_v6 }
 0x29a   : > { %v2693_v27 = vmax.f32 %v9413_v61, 0.0  ;;  %v9416_v60 = vsub.f32 %v7327_v4, %v6190_v35  ;;  %v2633_v59 = vsub.f32 %v7399_v10, %v6154_v5  ;;  %v2178_v55 = vmul.f32 %v7425_v38, %v2177_v51  ;;  %v9418_v61 = vld [vmem:[#allocation106_spill] sm:$0xff] }
 0x29b   : > { %9415 = vst [vmem:[#allocation101_spill] sm:$0xff] %v7468_v8  ;;  %v1672_v29 = vmul.f32 %v7450_v41, %v7450_v41  ;;  %v7482_v58 = vmul.f32 %v7468_v8, %v7139_v15  ;;  %v2636_v57 = vsub.f32 %v2563_v9, %v6190_v35  ;;  %v2169_v17 = vmul.f32 0.5, %v2168_v45  ;;  %v9420_v45 = vld [vmem:[#allocation133_spill] sm:$0xff] }
 0x29c   : > { %v2694_v2 = vmax.f32 %v9416_v60, 0.0  ;;  %v2188_v0 = vmul.f32 %v5226_v13, %v2187_v22  ;;  %v7487_v4 = vmul.f32 %v7466_v49, %v7193_v46  ;;  %v7492_v10 = vadd.f32 %v1537_v53, %v1448_v42 }
 0x29d   : > { %9417 = vst [vmem:[#allocation102_spill] sm:$0xff] %v7482_v58  ;;  %v7490_v20 = vadd.f32 %v1672_v29, %v9418_v61  ;;  %v7494_v51 = vpack.c.bf16 %v2816_v37, %v2812_v62  ;;  %v7498_v60 = vmul.f32 %v7285_v26, %v7161_v54  ;;  %v2700_v15 = vmax.f32 %v2636_v57, 0.0  ;;  %3389 = vmatmul.bf16.gmra.mxu0 %v7454_v34 }
 0x29e   : > { %v2189_v18 = vmul.f32 0.5, %v2188_v0  ;;  %v7503_v9 = vpack.c.bf16 %v7219_v43, %v9420_v45  ;;  %v7505_v46 = vpop.eup %5227  ;;  %v7508_v22 = vmul.f32 %v2693_v27, %v7265_v23  ;;  %v2179_v42 = vmul.f32 0.5, %v2178_v55  ;;  %3567 = vmatmul.bf16.gmra.mxu2 %v7423_v24  ;;  %v1273_v55 = vpop.f32.mrf.mxu0  ;;  %v9425_v0 = vld [vmem:[#allocation36_spill] sm:$0xff] }
 0x29f   : > { %9419 = vst [vmem:[#allocation20_spill] sm:$0xff] %v7494_v51  ;;  %vm2193_vm8 = vweird.f32 %v5226_v13  ;;  %5229 = vrsqrt.f32 %v7490_v20  ;;  %v7512_v26 = vmul.f32 %v2700_v15, %v2499_v30  ;;  %v2170_v54 = vsub.f32 1.5, %v2169_v17  ;;  %v9424_v17 = vld [vmem:[#allocation27_spill] sm:$0xff]  ;;  %v9426_v15 = vld [vmem:[#allocation29_spill] sm:$0xff]  ;;  %v9427_v45 = vld [vmem:[#allocation136_spill] sm:$0xff]  ;;  %v1540_v23 = vpop.f32.mrf.mxu3 }
 0x2a0   : > { %9421 = vst [vmem:[#allocation104_spill] sm:$0xff] %v7503_v9  ;;  %v2190_v62 = vsub.f32 1.5, %v2189_v18  ;;  %v2197_v37 = vmul.f32 %v7505_v46, %v7448_v31  ;;  %v7517_v43 = vmul.f32 %v2694_v2, %v7303_v39  ;;  %v7519_v53 = vmax.f32 %v2633_v59, 0.0  ;;  %v1362_v39 = vpop.f32.mrf.mxu1 }
 0x2a1   : > { %9422 = vst [vmem:[#allocation48_spill] sm:$0xff] %v7512_v26  ;;  %v1673_v27 = vmul.f32 %v7492_v10, %v7492_v10  ;;  %v7527_v30 = vmul.f32 %v7512_v26, %v7144_v16  ;;  %vm1798_vm9 = vcmp.gt.f32.partialorder %v7389_v6, 0.0  ;;  %vm2192_vm10 = vweird.f32 %v7389_v6 }
 0x2a2   : > { %v2191_v18 = vmul.f32 %v5226_v13, %v2190_v62  ;;  %vm2173_vm11 = vweird.f32 %v7414_v36  ;;  %v2180_v2 = vsub.f32 1.5, %v2179_v42  ;;  %vm2194_vm12 = vmor %vm2192_vm10, %vm2193_vm8  ;;  %v2198_v59 = vmul.f32 %v7505_v46, %v2197_v37  ;;  %3478 = vmatmul.bf16.gmra.mxu1 %v7494_v51  ;;  %3656 = vmatmul.bf16.gmra.mxu3 %v7503_v9  ;;  %v9433_v51 = vld [vmem:[#allocation108_spill] sm:$0xff] }
 0x2a3   : > { %9423 = vst [vmem:[#allocation21_spill] sm:$0xff] %v7527_v30  ;;  %v7534_v29 = vadd.f32 %v1362_v39, %v1273_v55  ;;  %v2171_v16 = vmul.f32 %v7414_v36, %v2170_v54  ;;  %v7541_v61 = vmul.f32 %v9425_v0, %v9424_v17  ;;  %v7545_v42 = vmul.f32 %v9427_v45, %v9426_v15  ;;  %v9428_v54 = vld [vmem:[#allocation107_spill] sm:$0xff]  ;;  %v5058_v15 = vld [vmem:[#allocation8 + $0x164] sm:$0xf]  ;;  %v4834_v45 = vld [vmem:[#allocation8 + $0x168] sm:$0xf0] }
 0x2a4   : > { %v2195_v57 = vsel %vm2194_vm12, %v5226_v13, %v2191_v18  ;;  %vm1796_vm13 = vcmp.gt.f32.partialorder %v7356_v25, 0.0  ;;  %v2199_v55 = vmul.f32 0.5, %v2198_v59  ;;  %v7553_v13 = vadd.f32 %v1673_v27, %v9428_v54  ;;  %v5074_v54 = vld [vmem:[#allocation8 + $0x1e4] sm:$0xf] }
 0x2a5   : > { %v7547_v62 = vpop.eup %5229  ;;  %v2502_v37 = vsel %vm1798_vm9, %v2195_v57, 0.0  ;;  %vm2172_vm14 = vweird.f32 %v7356_v25  ;;  %vm2183_vm15 = vweird.f32 %v7425_v38  ;;  %v2181_v59 = vmul.f32 %v7425_v38, %v2180_v2  ;;  %v1451_v2 = vpop.f32.mrf.mxu2 }
 0x2a6   : > { %v2566_v18 = vmul.f32 %v2502_v37, %v7389_v6  ;;  %v2207_v39 = vmul.f32 %v7547_v62, %v7490_v20  ;;  %vm7562_vm0 = vmor %vm2172_vm14, %vm2173_vm11  ;;  %vm2182_vm1 = vweird.f32 %v7359_v12  ;;  %v2200_v27 = vsub.f32 1.5, %v2199_v55  ;;  %v5042_v55 = vld [vmem:[#allocation8 + $0xe4] sm:$0xf] }
 0x2a7   : > { %vm2203_vm2 = vweird.f32 %v7505_v46  ;;  %v2175_v6 = vsel %vm7562_vm0, %v7414_v36, %v2171_v16  ;;  %vm2202_vm3 = vweird.f32 %v7448_v31  ;;  %v1674_v0 = vmul.f32 %v7534_v29, %v7534_v29  ;;  %vm7578_vm4 = vmor %vm2182_vm1, %vm2183_vm15 }
 0x2a8   : > { %v2639_v57 = vsub.f32 %v2566_v18, %v6154_v5  ;;  %v2201_v36 = vmul.f32 %v7505_v46, %v2200_v27  ;;  %5231 = vrsqrt.f32 %v7553_v13  ;;  %v4837_v16 = vor.u32 %v5058_v15, %v4834_v45  ;;  %v4898_v18 = vld [vmem:[#allocation8 + $0x1e8] sm:$0xf0]  ;;  %vm2204_vm6 = vmor %vm2202_vm3, %vm2203_vm2 }
 0x2a9   : > { %v7584_v17 = vadd.f32 %v1540_v23, %v1451_v2  ;;  %vm1799_vm5 = vcmp.gt.f32.partialorder %v7448_v31, 0.0  ;;  %v2208_v24 = vmul.f32 %v7547_v62, %v2207_v39  ;;  %v7593_v34 = vadd.f32 %v1674_v0, %v9433_v51  ;;  %v5026_v0 = vld [vmem:[#allocation8 + $0x64] sm:$0xf]  ;;  %v9435_v2 = vld [vmem:[#allocation88_spill] sm:$0xff] }
 0x2aa   : > { %v2703_v9 = vmax.f32 %v2639_v57, 0.0  ;;  %v2185_v27 = vsel %vm7578_vm4, %v7425_v38, %v2181_v59  ;;  %v2205_v23 = vsel %vm2204_vm6, %v7505_v46, %v2201_v36  ;;  %3906 = vmatpush.bf16.msrb.mxu2 %v4837_v16  ;;  %v4901_v57 = vor.u32 %v5074_v54, %v4898_v18  ;;  %v9436_v59 = vld [vmem:[#allocation110_spill] sm:$0xff]  ;;  %v1275_v16 = vpop.f32.mrf.mxu0 }
 0x2ab   : > { %v1675_v15 = vmul.f32 %v7584_v17, %v7584_v17  ;;  %v7603_v45 = vsel %vm1796_vm13, %v2175_v6, 0.0  ;;  %vm1797_vm7 = vcmp.gt.f32.partialorder %v7359_v12, 0.0  ;;  %v2503_v51 = vsel %vm1799_vm5, %v2205_v23, 0.0  ;;  %v4706_v6 = vld [vmem:[#allocation8 + $0x68] sm:$0xf0] }
 0x2ac   : > { %v7606_v39 = vmul.f32 %v2703_v9, %v2502_v37  ;;  %v7610_v38 = vmul.f32 %v7498_v60, %v9435_v2  ;;  %v2567_v46 = vmul.f32 %v2503_v51, %v7448_v31  ;;  %5233 = vrsqrt.f32 %v7593_v34  ;;  %3995 = vmatpush.bf16.msrb.mxu3 %v4901_v57  ;;  %v4770_v36 = vld [vmem:[#allocation8 + $0xe8] sm:$0xf0]  ;;  %v1364_v9 = vpop.f32.mrf.mxu1 }
 0x2ad   : > { %v7615_v54 = vadd.f32 %v1675_v15, %v9436_v59  ;;  %v7619_v37 = vmul.f32 %v7508_v22, %v6990_v33  ;;  %v7621_v18 = vsel %vm1797_vm7, %v2185_v27, 0.0  ;;  %v2209_v23 = vmul.f32 0.5, %v2208_v24 }
 0x2ae   : > { %9434 = vst [vmem:[#allocation31_spill] sm:$0xff] %v7606_v39  ;;  %v7625_v31 = vmul.f32 %v7606_v39, %v7330_v52  ;;  %v7627_v57 = vpop.eup %5231  ;;  %v7631_v15 = vmul.f32 %v7517_v43, %v7042_v1  ;;  %v7635_v2 = vmul.f32 %v7519_v53, %v7376_v7  ;;  %v2640_v33 = vsub.f32 %v2567_v46, %v6190_v35  ;;  %v1453_v46 = vpop.f32.mrf.mxu2 }
 0x2af   : > { %5235 = vrsqrt.f32 %v7615_v54  ;;  %v9438_v27 = vsub.f32 %v7487_v4, %v6190_v35  ;;  %v2564_v24 = vmul.f32 %v7603_v45, %v7356_v25  ;;  %v4709_v59 = vor.u32 %v5026_v0, %v4706_v6  ;;  %v1542_v25 = vpop.f32.mrf.mxu3  ;;  %v9440_v0 = vld [vmem:[#allocation28_spill] sm:$0xff]  ;;  %v9441_v6 = vld [vmem:[#allocation134_spill] sm:$0xff] }
 0x2b0   : > { %9437 = vst [vmem:[#allocation23_spill] sm:$0xff] %v7625_v31  ;;  %v4773_v31 = vor.u32 %v5042_v55, %v4770_v36  ;;  %v2565_v1 = vmul.f32 %v7621_v18, %v7359_v12  ;;  %v2704_v39 = vmax.f32 %v2640_v33, 0.0  ;;  %v7646_v30 = vadd.f32 %v1364_v9, %v1275_v16  ;;  %v9442_v36 = vld [vmem:[#allocation32_spill] sm:$0xff]  ;;  %v9443_v12 = vld [vmem:[#allocation43_spill] sm:$0xff] }
 0x2b1   : > { %v2698_v52 = vmax.f32 %v9438_v27, 0.0  ;;  %v7650_v7 = vpack.c.bf16 %v7545_v42, %v7541_v61  ;;  %v2210_v53 = vsub.f32 1.5, %v2209_v23  ;;  %v2217_v4 = vmul.f32 %v7627_v57, %v7553_v13  ;;  %3728 = vmatpush.bf16.msrb.mxu0 %v4709_v59  ;;  %v9446_v23 = vld [vmem:[#allocation42_spill] sm:$0xff] }
 0x2b2   : > { %3817 = vmatpush.bf16.msrb.mxu1 %v4773_v31  ;;  %v2820_v55 = vmul.f32 %v9441_v6, %v9440_v0  ;;  %v2824_v33 = vmul.f32 %v9443_v12, %v9442_v36  ;;  %v7658_v16 = vpop.eup %5233  ;;  %v7660_v9 = vmul.f32 %v2704_v39, %v2503_v51  ;;  %v1676_v61 = vmul.f32 %v7646_v30, %v7646_v30  ;;  %v9445_v31 = vld [vmem:[#allocation37_spill] sm:$0xff]  ;;  %v9449_v36 = vld [vmem:[#allocation111_spill] sm:$0xff] }
 0x2b3   : > { %9439 = vst [vmem:[#allocation22_spill] sm:$0xff] %v7650_v7  ;;  %v7664_v42 = vadd.f32 %v1542_v25, %v1453_v46  ;;  %3394 = vmatmul.bf16.gmra.mxu0 %v7650_v7  ;;  %v7669_v27 = vpack.c.bf16 %v9446_v23, %v9445_v31  ;;  %v7673_v59 = vmul.f32 %v7635_v2, %v7078_v56  ;;  %vm1800_vm8 = vcmp.gt.f32.partialorder %v7490_v20, 0.0 }
 0x2b4   : > { %9444 = vst [vmem:[#allocation132_spill] sm:$0xff] %v7660_v9  ;;  %v7676_v0 = vmul.f32 %v2698_v52, %v7466_v49  ;;  %v2637_v39 = vsub.f32 %v2564_v24, %v6154_v5  ;;  %v2227_v51 = vmul.f32 %v7658_v16, %v7593_v34  ;;  %v2638_v25 = vsub.f32 %v2565_v1, %v6190_v35 }
 0x2b5   : > { %9447 = vst [vmem:[#allocation125_spill] sm:$0xff] %v7669_v27  ;;  %v7681_v46 = vpop.eup %5235  ;;  %v7686_v6 = vmul.f32 %v7660_v9, %v7402_v32  ;;  %v7689_v12 = vadd.f32 %v1676_v61, %v9449_v36  ;;  %v7691_v56 = vpack.c.bf16 %v2824_v33, %v2820_v55  ;;  %3572 = vmatmul.bf16.gmra.mxu2 %v7669_v27  ;;  %vm2213_vm9 = vweird.f32 %v7547_v62  ;;  %v1278_v55 = vpop.f32.mrf.mxu0  ;;  %v9451_v36 = vld [vmem:[#allocation135_spill] sm:$0xff] }
 0x2b6   : > { %v2228_v49 = vmul.f32 %v7658_v16, %v2227_v51  ;;  %v2237_v52 = vmul.f32 %v7681_v46, %v7615_v54  ;;  %v1677_v24 = vmul.f32 %v7664_v42, %v7664_v42  ;;  %v2211_v32 = vmul.f32 %v7547_v62, %v2210_v53  ;;  %v1367_v33 = vpop.f32.mrf.mxu1 }
 0x2b7   : > { %9448 = vst [vmem:[#allocation105_spill] sm:$0xff] %v7686_v6  ;;  %v2218_v1 = vmul.f32 %v7627_v57, %v2217_v4  ;;  %5237 = vrsqrt.f32 %v7689_v12  ;;  %3483 = vmatmul.bf16.gmra.mxu1 %v7691_v56  ;;  %v7705_v61 = vmax.f32 %v2637_v39, 0.0  ;;  %vm2212_vm10 = vweird.f32 %v7490_v20  ;;  %v9452_v4 = vld [vmem:[#allocation87_spill] sm:$0xff] }
 0x2b8   : > { %9450 = vst [vmem:[#allocation26_spill] sm:$0xff] %v7691_v56  ;;  %v2229_v31 = vmul.f32 0.5, %v2228_v49  ;;  %v2238_v23 = vmul.f32 %v7681_v46, %v2237_v52  ;;  %v2702_v51 = vmax.f32 %v2638_v25, 0.0  ;;  %vm1802_vm11 = vcmp.gt.f32.partialorder %v7593_v34, 0.0  ;;  %vm7716_vm12 = vmor %vm2212_vm10, %vm2213_vm9  ;;  %v9456_v49 = vld [vmem:[#allocation24_spill] sm:$0xff]  ;;  %v1456_v25 = vpop.f32.mrf.mxu2  ;;  %v1545_v52 = vpop.f32.mrf.mxu3 }
 0x2b9   : > { %v7710_v53 = vadd.f32 %v1367_v33, %v1278_v55  ;;  %v7714_v27 = vpack.c.bf16 %v9452_v4, %v9451_v36  ;;  %vm2233_vm13 = vweird.f32 %v7658_v16  ;;  %v7722_v6 = vadd.f32 %v1677_v24, %v9456_v49 }
 0x2ba   : > { %v2230_v39 = vsub.f32 1.5, %v2229_v31  ;;  %v2239_v56 = vmul.f32 0.5, %v2238_v23  ;;  %v2215_v55 = vsel %vm7716_vm12, %v7547_v62, %v2211_v32  ;;  %v2219_v33 = vmul.f32 0.5, %v2218_v1  ;;  %v9457_v62 = vld [vmem:[#allocation25_spill] sm:$0xff] }
 0x2bb   : > { %9453 = vst [vmem:[#allocation106_spill] sm:$0xff] %v7714_v27  ;;  %vm2232_vm14 = vweird.f32 %v7593_v34  ;;  %v1678_v36 = vmul.f32 %v7710_v53, %v7710_v53  ;;  %3661 = vmatmul.bf16.gmra.mxu3 %v7714_v27  ;;  %vm2243_vm15 = vweird.f32 %v7681_v46  ;;  %v7733_v24 = vadd.f32 %v1545_v52, %v1456_v25  ;;  %v9458_v32 = vld [vmem:[#allocation33_spill] sm:$0xff]  ;;  %v9460_v27 = vld [vmem:[#allocation34_spill] sm:$0xff] }
 0x2bc   : > { %v2231_v31 = vmul.f32 %v7658_v16, %v2230_v39  ;;  %v2240_v23 = vsub.f32 1.5, %v2239_v56  ;;  %vm2234_vm0 = vmor %vm2232_vm14, %vm2233_vm13  ;;  %vm2242_vm1 = vweird.f32 %v7615_v54  ;;  %v9459_v1 = vld [vmem:[#allocation89_spill] sm:$0xff]  ;;  %v9461_v39 = vld [vmem:[#allocation91_spill] sm:$0xff]  ;;  %5239 = vrsqrt.f32 %v7722_v6 }
 0x2bd   : > { %v7735_v4 = vpop.eup %5237  ;;  %v7741_v7 = vadd.f32 %v1678_v36, %v9457_v62  ;;  %v2827_v49 = vmul.f32 %v9459_v1, %v9458_v32  ;;  %v7747_v56 = vmul.f32 %v9461_v39, %v9460_v27  ;;  %v7756_v36 = vsel %vm1800_vm8, %v2215_v55, 0.0  ;;  %vm2244_vm2 = vmor %vm2242_vm1, %vm2243_vm15  ;;  %v9462_v1 = vld [vmem:[#allocation35_spill] sm:$0xff] }
 0x2be   : > { %v2235_v25 = vsel %vm2234_vm0, %v7658_v16, %v2231_v31  ;;  %v2241_v52 = vmul.f32 %v7681_v46, %v2240_v23  ;;  %v2247_v9 = vmul.f32 %v7735_v4, %v7689_v12  ;;  %v2220_v62 = vsub.f32 1.5, %v2219_v33  ;;  %v1280_v31 = vpop.f32.mrf.mxu0  ;;  %v1369_v23 = vpop.f32.mrf.mxu1 }
 0x2bf   : > { %v2506_v32 = vsel %vm1802_vm11, %v2235_v25, 0.0  ;;  %5241 = vrsqrt.f32 %v7741_v7  ;;  %vm1803_vm3 = vcmp.gt.f32.partialorder %v7615_v54, 0.0  ;;  %v2831_v55 = vmul.f32 %v7222_v21, %v9462_v1 }
 0x2c0   : > { %v2570_v16 = vmul.f32 %v2506_v32, %v7593_v34  ;;  %v2245_v27 = vsel %vm2244_vm2, %v7681_v46, %v2241_v52  ;;  %v2248_v39 = vmul.f32 %v7735_v4, %v2247_v9  ;;  %v1679_v25 = vmul.f32 %v7733_v24, %v7733_v24  ;;  %v9464_v9 = vld [vmem:[#allocation114_spill] sm:$0xff]  ;;  %v1547_v1 = vpop.f32.mrf.mxu3 }
 0x2c1   : > { %v2507_v33 = vsel %vm1803_vm3, %v2245_v27, 0.0  ;;  %v7771_v58 = vadd.f32 %v1369_v23, %v1280_v31  ;;  %v7775_v34 = vmul.f32 %v7676_v0, %v7137_v11  ;;  %v2568_v46 = vmul.f32 %v7756_v36, %v7490_v20 }
 0x2c2   : > { %v2643_v52 = vsub.f32 %v2570_v16, %v6154_v5  ;;  %v2571_v26 = vmul.f32 %v2507_v33, %v7615_v54  ;;  %v2221_v21 = vmul.f32 %v7627_v57, %v2220_v62  ;;  %vm2223_vm4 = vweird.f32 %v7627_v57  ;;  %v7788_v23 = vpop.eup %5239  ;;  %v1458_v16 = vpop.f32.mrf.mxu2 }
 0x2c3   : > { %9463 = vst [vmem:[#allocation133_spill] sm:$0xff] %v7775_v34  ;;  %v7784_v27 = vadd.f32 %v1679_v25, %v9464_v9  ;;  %v1680_v31 = vmul.f32 %v7771_v58, %v7771_v58  ;;  %vm2222_vm5 = vweird.f32 %v7553_v13  ;;  %v7792_v54 = vpack.c.bf16 %v2831_v55, %v2827_v49 }
 0x2c4   : > { %v2707_v11 = vmax.f32 %v2643_v52, 0.0  ;;  %v2644_v20 = vsub.f32 %v2571_v26, %v6190_v35  ;;  %v7796_v8 = vmul.f32 %v7705_v61, %v7603_v45  ;;  %v7799_v25 = vmul.f32 %v2702_v51, %v7621_v18  ;;  %vm7805_vm6 = vmor %vm2222_vm5, %vm2223_vm4  ;;  %v9469_v61 = vld [vmem:[#allocation115_spill] sm:$0xff] }
 0x2c5   : > { %9465 = vst [vmem:[#allocation27_spill] sm:$0xff] %v7792_v54  ;;  %v5242_v62 = vpop.eup %5241  ;;  %v2249_v9 = vmul.f32 0.5, %v2248_v39  ;;  %5243 = vrsqrt.f32 %v7784_v27  ;;  %v2641_v34 = vsub.f32 %v2568_v46, %v6154_v5  ;;  %3399 = vmatmul.bf16.gmra.mxu0 %v7792_v54  ;;  %vm1801_vm7 = vcmp.gt.f32.partialorder %v7553_v13, 0.0 }
 0x2c6   : > { %v7809_v49 = vmul.f32 %v2707_v11, %v2506_v32  ;;  %v2708_v55 = vmax.f32 %v2644_v20, 0.0  ;;  %v2267_v45 = vmul.f32 %v5242_v62, %v7741_v7  ;;  %v2225_v18 = vsel %vm7805_vm6, %v7627_v57, %v2221_v21  ;;  %v1372_v26 = vpop.f32.mrf.mxu1 }
 0x2c7   : > { %v7818_v51 = vadd.f32 %v1680_v31, %v9469_v61  ;;  %v7820_v39 = vadd.f32 %v1547_v1, %v1458_v16  ;;  %v2257_v52 = vmul.f32 %v7788_v23, %v7722_v6  ;;  %v7832_v20 = vmul.f32 %v7796_v8, %v7321_v28  ;;  %v1283_v1 = vpop.f32.mrf.mxu0 }
 0x2c8   : > { %9468 = vst [vmem:[#allocation36_spill] sm:$0xff] %v7809_v49  ;;  %v7824_v32 = vmul.f32 %v7809_v49, %v7534_v29  ;;  %v7826_v46 = vmul.f32 %v2708_v55, %v2507_v33  ;;  %v2268_v11 = vmul.f32 %v5242_v62, %v2267_v45  ;;  %v7836_v57 = vmul.f32 %v7799_v25, %v7323_v3  ;;  %v9485_v49 = vld [vmem:[#allocation93_spill] sm:$0xff] }
 0x2c9   : > { %v2250_v21 = vsub.f32 1.5, %v2249_v9  ;;  %5245 = vrsqrt.f32 %v7818_v51  ;;  %v2705_v31 = vmax.f32 %v2641_v34, 0.0  ;;  %v7839_v29 = vsel %vm1801_vm7, %v2225_v18, 0.0  ;;  %v9474_v9 = vld [vmem:[#allocation38_spill] sm:$0xff] }
 0x2ca   : > { %9470 = vst [vmem:[#allocation29_spill] sm:$0xff] %v7824_v32  ;;  %v7843_v33 = vmul.f32 %v7826_v46, %v7584_v17  ;;  %v2269_v16 = vmul.f32 0.5, %v2268_v11  ;;  %vm2253_vm8 = vweird.f32 %v7735_v4  ;;  %v1681_v28 = vmul.f32 %v7820_v39, %v7820_v39  ;;  %v9475_v11 = vld [vmem:[#allocation116_spill] sm:$0xff] }
 0x2cb   : > { %9471 = vst [vmem:[#allocation136_spill] sm:$0xff] %v7826_v46  ;;  %v7845_v55 = vpop.eup %5243  ;;  %v7850_v3 = vadd.f32 %v1372_v26, %v1283_v1  ;;  %v2832_v34 = vmul.f32 %v6986_v14, %v9474_v9  ;;  %v2258_v45 = vmul.f32 %v7788_v23, %v2257_v52  ;;  %vm2273_vm9 = vweird.f32 %v5242_v62 }
 0x2cc   : > { %9472 = vst [vmem:[#allocation107_spill] sm:$0xff] %v7836_v57  ;;  %v2270_v18 = vsub.f32 1.5, %v2269_v16  ;;  %v2277_v17 = vmul.f32 %v7845_v55, %v7784_v27  ;;  %v2251_v61 = vmul.f32 %v7735_v4, %v2250_v21  ;;  %v7859_v54 = vadd.f32 %v1681_v28, %v9475_v11  ;;  %v5056_v11 = vld [vmem:[#allocation8 + $0x154] sm:$0xf] }
 0x2cd   : > { %9473 = vst [vmem:[#allocation108_spill] sm:$0xff] %v7843_v33  ;;  %v1682_v33 = vmul.f32 %v7850_v3, %v7850_v3  ;;  %v7864_v1 = vpack.c.bf16 %v2832_v34, %v7747_v56  ;;  %vm1804_vm10 = vcmp.gt.f32.partialorder %v7689_v12, 0.0  ;;  %vm2272_vm11 = vweird.f32 %v7741_v7 }
 0x2ce   : > { %v2271_v14 = vmul.f32 %v5242_v62, %v2270_v18  ;;  %v2278_v52 = vmul.f32 %v7845_v55, %v2277_v17  ;;  %v7872_v21 = vmul.f32 %v2705_v31, %v7756_v36  ;;  %v2569_v26 = vmul.f32 %v7839_v29, %v7553_v13  ;;  %vm2274_vm13 = vmor %vm2272_vm11, %vm2273_vm9  ;;  %v9480_v18 = vld [vmem:[#allocation117_spill] sm:$0xff] }
 0x2cf   : > { %9476 = vst [vmem:[#allocation88_spill] sm:$0xff] %v7864_v1  ;;  %v7869_v16 = vpop.eup %5245  ;;  %vm2252_vm12 = vweird.f32 %v7689_v12  ;;  %5247 = vrsqrt.f32 %v7859_v54  ;;  %3488 = vmatmul.bf16.gmra.mxu1 %v7864_v1  ;;  %vm1806_vm15 = vcmp.gt.f32.partialorder %v7741_v7, 0.0  ;;  %v2259_v9 = vmul.f32 0.5, %v2258_v45  ;;  %v4826_v1 = vld [vmem:[#allocation8 + $0x158] sm:$0xf0]  ;;  %v1550_v45 = vpop.f32.mrf.mxu3 }
 0x2d0   : > { %9477 = vst [vmem:[#allocation110_spill] sm:$0xff] %v7872_v21  ;;  %vm7881_vm14 = vmor %vm2252_vm12, %vm2253_vm8  ;;  %v2275_v36 = vsel %vm2274_vm13, %v5242_v62, %v2271_v14  ;;  %v2279_v31 = vmul.f32 0.5, %v2278_v52  ;;  %v2287_v13 = vmul.f32 %v7869_v16, %v7818_v51  ;;  %v7892_v17 = vadd.f32 %v1682_v33, %v9480_v18  ;;  %v5072_v14 = vld [vmem:[#allocation8 + $0x1d4] sm:$0xf]  ;;  %v4890_v52 = vld [vmem:[#allocation8 + $0x1d8] sm:$0xf0]  ;;  %v1461_v33 = vpop.f32.mrf.mxu2 }
 0x2d1   : > { %v2255_v28 = vsel %vm7881_vm14, %v7735_v4, %v2251_v61  ;;  %v2510_v34 = vsel %vm1806_vm15, %v2275_v36, 0.0  ;;  %vm2283_vm0 = vweird.f32 %v7845_v55  ;;  %v7899_v56 = vmul.f32 %v7872_v21, %v7450_v41  ;;  %v9484_v18 = vld [vmem:[#allocation15_spill] sm:$0xff] }
 0x2d2   : > { %v2574_v32 = vmul.f32 %v2510_v34, %v7741_v7  ;;  %v2280_v46 = vsub.f32 1.5, %v2279_v31  ;;  %v2288_v62 = vmul.f32 %v7869_v16, %v2287_v13  ;;  %v2642_v4 = vsub.f32 %v2569_v26, %v6190_v35  ;;  %v9482_v31 = vld [vmem:[#allocation90_spill] sm:$0xff] }
 0x2d3   : > { %9481 = vst [vmem:[#allocation28_spill] sm:$0xff] %v7899_v56  ;;  %vm2282_vm1 = vweird.f32 %v7784_v27  ;;  %5249 = vrsqrt.f32 %v7892_v17  ;;  %v7906_v7 = vsel %vm1804_vm10, %v2255_v28, 0.0  ;;  %v7912_v41 = vpack.c.bf16 %v7263_v19, %v9482_v31 }
 0x2d4   : > { %v2647_v61 = vsub.f32 %v2574_v32, %v6154_v5  ;;  %v2281_v36 = vmul.f32 %v7845_v55, %v2280_v46  ;;  %v2260_v26 = vsub.f32 1.5, %v2259_v9  ;;  %vm2284_vm2 = vmor %vm2282_vm1, %vm2283_vm0  ;;  %v7920_v56 = vpack.c.bf16 %v9485_v49, %v9484_v18 }
 0x2d5   : > { %9483 = vst [vmem:[#allocation134_spill] sm:$0xff] %v7912_v41  ;;  %v7914_v13 = vpop.eup %5247  ;;  %v4829_v28 = vor.u32 %v5056_v11, %v4826_v1  ;;  %v4893_v21 = vor.u32 %v5072_v14, %v4890_v52  ;;  %vm1807_vm3 = vcmp.gt.f32.partialorder %v7784_v27, 0.0  ;;  %v2289_v46 = vmul.f32 0.5, %v2288_v62  ;;  %3577 = vmatmul.bf16.gmra.mxu2 %v7912_v41  ;;  %v5024_v62 = vld [vmem:[#allocation8 + $0x54] sm:$0xf]  ;;  %v1285_v14 = vpop.f32.mrf.mxu0 }
 0x2d6   : > { %9486 = vst [vmem:[#allocation32_spill] sm:$0xff] %v7920_v56  ;;  %v2711_v57 = vmax.f32 %v2647_v61, 0.0  ;;  %v2285_v32 = vsel %vm2284_vm2, %v7845_v55, %v2281_v36  ;;  %v2706_v19 = vmax.f32 %v2642_v4, 0.0  ;;  %v2572_v9 = vmul.f32 %v7906_v7, %v7689_v12  ;;  %3666 = vmatmul.bf16.gmra.mxu3 %v7920_v56  ;;  %v4698_v12 = vld [vmem:[#allocation8 + $0x58] sm:$0xf0]  ;;  %v1374_v52 = vpop.f32.mrf.mxu1  ;;  %v9487_v36 = vld [vmem:[#allocation39_spill] sm:$0xff] }
 0x2d7   : > { %vm1805_vm4 = vcmp.gt.f32.partialorder %v7722_v6, 0.0  ;;  %v2511_v31 = vsel %vm1807_vm3, %v2285_v32, 0.0  ;;  %3907 = vmatpush.bf16.msrb.mxu2 %v4829_v28  ;;  %v7929_v49 = vadd.f32 %v1550_v45, %v1461_v33  ;;  %vm2263_vm5 = vweird.f32 %v7788_v23  ;;  %3996 = vmatpush.bf16.msrb.mxu3 %v4893_v21 }
 0x2d8   : > { %v7932_v1 = vmul.f32 %v2711_v57, %v2510_v34  ;;  %v2575_v55 = vmul.f32 %v2511_v31, %v7784_v27  ;;  %v2297_v11 = vmul.f32 %v7914_v13, %v7859_v54  ;;  %v2261_v61 = vmul.f32 %v7788_v23, %v2260_v26  ;;  %v5040_v57 = vld [vmem:[#allocation8 + $0xd4] sm:$0xf]  ;;  %v4762_v34 = vld [vmem:[#allocation8 + $0xd8] sm:$0xf0]  ;;  %v9488_v27 = vld [vmem:[#allocation49_spill] sm:$0xff] }
 0x2d9   : > { %v7937_v4 = vpop.eup %5249  ;;  %v1683_v33 = vmul.f32 %v7929_v49, %v7929_v49  ;;  %v4701_v45 = vor.u32 %v5024_v62, %v4698_v12  ;;  %v7944_v18 = vmul.f32 %v9488_v27, %v9487_v36  ;;  %v2290_v32 = vsub.f32 1.5, %v2289_v46  ;;  %v9490_v12 = vld [vmem:[#allocation118_spill] sm:$0xff] }
 0x2da   : > { %v7948_v21 = vmul.f32 %v7932_v1, %v7710_v53  ;;  %v2648_v28 = vsub.f32 %v2575_v55, %v6190_v35  ;;  %v7951_v56 = vadd.f32 %v1374_v52, %v1285_v14  ;;  %v2645_v26 = vsub.f32 %v2572_v9, %v6154_v5  ;;  %v9495_v27 = vld [vmem:[#allocation18_spill] sm:$0xff] }
 0x2db   : > { %vm2262_vm6 = vweird.f32 %v7722_v6  ;;  %v2307_v62 = vmul.f32 %v7937_v4, %v7892_v17  ;;  %v7958_v41 = vadd.f32 %v1683_v33, %v9490_v12  ;;  %3729 = vmatpush.bf16.msrb.mxu0 %v4701_v45  ;;  %v7961_v36 = vmul.f32 %v2706_v19, %v7839_v29  ;;  %v1463_v29 = vpop.f32.mrf.mxu2  ;;  %v1552_v19 = vpop.f32.mrf.mxu3  ;;  %v9496_v12 = vld [vmem:[#allocation119_spill] sm:$0xff] }
 0x2dc   : > { %9489 = vst [vmem:[#allocation43_spill] sm:$0xff] %v7951_v56  ;;  %vm7965_vm7 = vmor %vm2262_vm6, %vm2263_vm5  ;;  %v2712_v46 = vmax.f32 %v2648_v28, 0.0  ;;  %v2298_v9 = vmul.f32 %v7914_v13, %v2297_v11  ;;  %v4765_v55 = vor.u32 %v5040_v57, %v4762_v34  ;;  %vm2292_vm8 = vweird.f32 %v7818_v51  ;;  %v9494_v34 = vld [vmem:[#allocation40_spill] sm:$0xff] }
 0x2dd   : > { %v2265_v14 = vsel %vm7965_vm7, %v7788_v23, %v2261_v61  ;;  %v2308_v52 = vmul.f32 %v7937_v4, %v2307_v62  ;;  %5251 = vrsqrt.f32 %v7958_v41  ;;  %v2291_v45 = vmul.f32 %v7869_v16, %v2290_v32 }
 0x2de   : > { %v7976_v33 = vmul.f32 %v2712_v46, %v2511_v31  ;;  %vm2293_vm9 = vweird.f32 %v7869_v16  ;;  %3818 = vmatpush.bf16.msrb.mxu1 %v4765_v55  ;;  %v1684_v11 = vmul.f32 %v7951_v56, %v7951_v56  ;;  %v2709_v57 = vmax.f32 %v2645_v26, 0.0  ;;  %v1288_v46 = vpop.f32.mrf.mxu0  ;;  %v1377_v26 = vpop.f32.mrf.mxu1 }
 0x2df   : > { %v2309_v23 = vmul.f32 0.5, %v2308_v52  ;;  %v7982_v61 = vadd.f32 %v1552_v19, %v1463_v29  ;;  %v2836_v28 = vmul.f32 %v9495_v27, %v9494_v34  ;;  %v7988_v62 = vsel %vm1805_vm4, %v2265_v14, 0.0  ;;  %vm7999_vm10 = vmor %vm2292_vm8, %vm2293_vm9  ;;  %v9500_v27 = vld [vmem:[#allocation41_spill] sm:$0xff] }
 0x2e0   : > { %v7992_v31 = vmul.f32 %v7976_v33, %v7733_v24  ;;  %v2299_v32 = vmul.f32 0.5, %v2298_v9  ;;  %v7995_v53 = vadd.f32 %v1684_v11, %v9496_v12  ;;  %vm2313_vm11 = vweird.f32 %v7937_v4  ;;  %v9499_v11 = vld [vmem:[#allocation120_spill] sm:$0xff] }
 0x2e1   : > { %9493 = vst [vmem:[#allocation37_spill] sm:$0xff] %v7982_v61  ;;  %v2310_v52 = vsub.f32 1.5, %v2309_v23  ;;  %v1685_v14 = vmul.f32 %v7982_v61, %v7982_v61  ;;  %v8006_v24 = vadd.f32 %v1377_v26, %v1288_v46  ;;  %vm1808_vm12 = vcmp.gt.f32.partialorder %v7818_v51, 0.0 }
 0x2e2   : > { %v2295_v9 = vsel %vm7999_vm10, %v7869_v16, %v2291_v45  ;;  %vm2312_vm13 = vweird.f32 %v7892_v17  ;;  %5253 = vrsqrt.f32 %v7995_v53  ;;  %v2839_v12 = vmul.f32 %v7234_v63, %v9500_v27 }
 0x2e3   : > { %v8014_v29 = vpop.eup %5251  ;;  %v2311_v19 = vmul.f32 %v7937_v4, %v2310_v52  ;;  %v8018_v23 = vadd.f32 %v1685_v14, %v9499_v11  ;;  %v1686_v34 = vmul.f32 %v8006_v24, %v8006_v24  ;;  %v8026_v16 = vmul.f32 %v7988_v62, %v7722_v6  ;;  %vm2314_vm15 = vmor %vm2312_vm13, %vm2313_vm11  ;;  %v9501_v52 = vld [vmem:[#allocation121_spill] sm:$0xff]  ;;  %v1466_v11 = vpop.f32.mrf.mxu2 }
 0x2e4   : > { %v2300_v45 = vsub.f32 1.5, %v2299_v32  ;;  %vm2302_vm14 = vweird.f32 %v7859_v54  ;;  %v2317_v46 = vmul.f32 %v8014_v29, %v7958_v41  ;;  %v8034_v26 = vmul.f32 %v2709_v57, %v7906_v7  ;;  %v1555_v27 = vpop.f32.mrf.mxu3  ;;  %v9503_v57 = vld [vmem:[#allocation44_spill] sm:$0xff] }
 0x2e5   : > { %vm1810_vm0 = vcmp.gt.f32.partialorder %v7892_v17, 0.0  ;;  %v2315_v63 = vsel %vm2314_vm15, %v7937_v4, %v2311_v19  ;;  %5255 = vrsqrt.f32 %v8018_v23  ;;  %v8041_v6 = vsel %vm1808_vm12, %v2295_v9, 0.0  ;;  %v9504_v9 = vld [vmem:[#allocation103_spill] sm:$0xff] }
 0x2e6   : > { %v2514_v32 = vsel %vm1810_vm0, %v2315_v63, 0.0  ;;  %v2318_v55 = vmul.f32 %v8014_v29, %v2317_v46  ;;  %v8045_v14 = vadd.f32 %v1686_v34, %v9501_v52  ;;  %vm1809_vm1 = vcmp.gt.f32.partialorder %v7859_v54, 0.0 }
 0x2e7   : > { %v2578_v7 = vmul.f32 %v2514_v32, %v7892_v17  ;;  %v8050_v4 = vpack.c.bf16 %v2839_v12, %v7944_v18  ;;  %v2840_v19 = vmul.f32 %v7498_v60, %v9503_v57  ;;  %v8056_v63 = vpack.c.bf16 %v7276_v44, %v9504_v9 }
 0x2e8   : > { %v8058_v46 = vpop.eup %5253  ;;  %v2301_v34 = vmul.f32 %v7914_v13, %v2300_v45  ;;  %vm2303_vm2 = vweird.f32 %v7914_v13  ;;  %v2319_v52 = vmul.f32 0.5, %v2318_v55  ;;  %5257 = vrsqrt.f32 %v8045_v14  ;;  %v9507_v45 = vld [vmem:[#allocation94_spill] sm:$0xff] }
 0x2e9   : > { %9502 = vst [vmem:[#allocation42_spill] sm:$0xff] %v8050_v4  ;;  %v2576_v17 = vmul.f32 %v8041_v6, %v7818_v51  ;;  %v2651_v18 = vsub.f32 %v2578_v7, %v6154_v5  ;;  %vm1811_vm3 = vcmp.gt.f32.partialorder %v7958_v41, 0.0  ;;  %v2327_v44 = vmul.f32 %v8058_v46, %v7995_v53  ;;  %3404 = vmatmul.bf16.gmra.mxu0 %v8050_v4  ;;  %vm8082_vm5 = vmor %vm2302_vm14, %vm2303_vm2  ;;  %v9516_v7 = vld [vmem:[#allocation97_spill] sm:$0xff] }
 0x2ea   : > { %9505 = vst [vmem:[#allocation111_spill] sm:$0xff] %v8056_v63  ;;  %3582 = vmatmul.bf16.gmra.mxu2 %v8056_v63  ;;  %v2320_v60 = vsub.f32 1.5, %v2319_v52  ;;  %vm2323_vm4 = vweird.f32 %v8014_v29  ;;  %v8072_v12 = vpack.c.bf16 %v2840_v19, %v2836_v28  ;;  %v8076_v55 = vpack.c.bf16 %v7610_v38, %v9507_v45  ;;  %v9511_v63 = vld [vmem:[#allocation45_spill] sm:$0xff]  ;;  %v9512_v28 = vld [vmem:[#allocation95_spill] sm:$0xff] }
 0x2eb   : > { %v8078_v51 = vpop.eup %5255  ;;  %v2715_v57 = vmax.f32 %v2651_v18, 0.0  ;;  %v2328_v9 = vmul.f32 %v8058_v46, %v2327_v44  ;;  %v8087_v52 = vadd.f32 %v1555_v27, %v1466_v11  ;;  %v2843_v19 = vmul.f32 %v9512_v28, %v9511_v63  ;;  %v9513_v18 = vld [vmem:[#allocation47_spill] sm:$0xff]  ;;  %v1290_v63 = vpop.f32.mrf.mxu0 }
 0x2ec   : > { %9506 = vst [vmem:[#allocation135_spill] sm:$0xff] %v8072_v12  ;;  %v2305_v38 = vsel %vm8082_vm5, %v7914_v13, %v2301_v34  ;;  %v2321_v45 = vmul.f32 %v8014_v29, %v2320_v60  ;;  %vm2322_vm6 = vweird.f32 %v7958_v41  ;;  %3493 = vmatmul.bf16.gmra.mxu1 %v8072_v12  ;;  %3671 = vmatmul.bf16.gmra.mxu3 %v8076_v55  ;;  %v1379_v34 = vpop.f32.mrf.mxu1  ;;  %v9515_v60 = vld [vmem:[#allocation46_spill] sm:$0xff]  ;;  %vm2333_vm8 = vweird.f32 %v8058_v46 }
 0x2ed   : > { %9508 = vst [vmem:[#allocation87_spill] sm:$0xff] %v8076_v55  ;;  %v2847_v44 = vmul.f32 %v7508_v22, %v9513_v18  ;;  %v8100_v11 = vmul.f32 %v2715_v57, %v2514_v32  ;;  %vm2324_vm7 = vmor %vm2322_vm6, %vm2323_vm4  ;;  %v2337_v27 = vmul.f32 %v8078_v51, %v8018_v23  ;;  %v1687_v13 = vmul.f32 %v8087_v52, %v8087_v52 }
 0x2ee   : > { %v8110_v28 = vmul.f32 %v9516_v7, %v9515_v60  ;;  %v5258_v55 = vpop.eup %5257  ;;  %v2325_v22 = vsel %vm2324_vm7, %v8014_v29, %v2321_v45  ;;  %v2329_v32 = vmul.f32 0.5, %v2328_v9  ;;  %v8113_v57 = vadd.f32 %v1379_v34, %v1290_v63 }
 0x2ef   : > { %9514 = vst [vmem:[#allocation24_spill] sm:$0xff] %v8100_v11  ;;  %v8115_v18 = vpack.c.bf16 %v2847_v44, %v2843_v19  ;;  %v2646_v12 = vsub.f32 %v8026_v16, %v6190_v35  ;;  %v8121_v4 = vmul.f32 %v8100_v11, %v7850_v3  ;;  %v2515_v61 = vsel %vm1811_vm3, %v2325_v22, 0.0  ;;  %v9520_v19 = vld [vmem:[#allocation122_spill] sm:$0xff]  ;;  %v1468_v16 = vpop.f32.mrf.mxu2  ;;  %v1557_v44 = vpop.f32.mrf.mxu3 }
 0x2f0   : > { %9517 = vst [vmem:[#allocation25_spill] sm:$0xff] %v8113_v57  ;;  %v2347_v60 = vmul.f32 %v5258_v55, %v8045_v14  ;;  %v2649_v7 = vsub.f32 %v2576_v17, %v6154_v5  ;;  %v8129_v29 = vsel %vm1809_vm1, %v2305_v38, 0.0  ;;  %v2579_v9 = vmul.f32 %v2515_v61, %v7958_v41 }
 0x2f1   : > { %9518 = vst [vmem:[#allocation33_spill] sm:$0xff] %v8115_v18  ;;  %v8133_v45 = vadd.f32 %v1687_v13, %v9520_v19  ;;  %v8137_v3 = vmul.f32 %v7961_v36, %v7492_v10  ;;  %v1688_v34 = vmul.f32 %v8113_v57, %v8113_v57  ;;  %v8141_v17 = vadd.f32 %v1557_v44, %v1468_v16  ;;  %v9522_v19 = vld [vmem:[#allocation123_spill] sm:$0xff] }
 0x2f2   : > { %9519 = vst [vmem:[#allocation89_spill] sm:$0xff] %v8121_v4  ;;  %v2348_v63 = vmul.f32 %v5258_v55, %v2347_v60  ;;  %v2652_v38 = vsub.f32 %v2579_v9, %v6190_v35  ;;  %v2330_v22 = vsub.f32 1.5, %v2329_v32  ;;  %v2338_v41 = vmul.f32 %v8078_v51, %v2337_v27 }
 0x2f3   : > { %9521 = vst [vmem:[#allocation34_spill] sm:$0xff] %v8141_v17  ;;  %5259 = vrsqrt.f32 %v8133_v45  ;;  %v8148_v13 = vmul.f32 %v8034_v26, %v7646_v30  ;;  %v2577_v10 = vmul.f32 %v8129_v29, %v7859_v54  ;;  %v8153_v4 = vadd.f32 %v1688_v34, %v9522_v19  ;;  %v1293_v30 = vpop.f32.mrf.mxu0  ;;  %v9524_v34 = vld [vmem:[#allocation30_spill] sm:$0xff] }
 0x2f4   : > { %v2349_v60 = vmul.f32 0.5, %v2348_v63  ;;  %v2710_v16 = vmax.f32 %v2646_v12, 0.0  ;;  %v2713_v44 = vmax.f32 %v2649_v7, 0.0  ;;  %v2716_v57 = vmax.f32 %v2652_v38, 0.0  ;;  %v1382_v9 = vpop.f32.mrf.mxu1 }
 0x2f5   : > { %v1689_v32 = vmul.f32 %v8141_v17, %v8141_v17  ;;  %vm2353_vm9 = vweird.f32 %v5258_v55  ;;  %5261 = vrsqrt.f32 %v8153_v4  ;;  %v2331_v54 = vmul.f32 %v8058_v46, %v2330_v22 }
 0x2f6   : > { %v2350_v27 = vsub.f32 1.5, %v2349_v60  ;;  %v8159_v56 = vmul.f32 %v2716_v57, %v2515_v61  ;;  %v2339_v63 = vmul.f32 0.5, %v2338_v41  ;;  %v2650_v7 = vsub.f32 %v2577_v10, %v6190_v35 }
 0x2f7   : > { %v8163_v12 = vadd.f32 %v1689_v32, %v9524_v34  ;;  %vm2352_vm10 = vweird.f32 %v8045_v14  ;;  %v8167_v19 = vadd.f32 %v1382_v9, %v1293_v30  ;;  %v8172_v17 = vmul.f32 %v2710_v16, %v7988_v62  ;;  %v9528_v30 = vld [vmem:[#allocation50_spill] sm:$0xff] }
 0x2f8   : > { %9523 = vst [vmem:[#allocation91_spill] sm:$0xff] %v8159_v56  ;;  %v2351_v38 = vmul.f32 %v5258_v55, %v2350_v27  ;;  %v8176_v61 = vmul.f32 %v8159_v56, %v7929_v49  ;;  %vm2332_vm11 = vweird.f32 %v7995_v53  ;;  %vm2354_vm12 = vmor %vm2352_vm10, %vm2353_vm9  ;;  %v8182_v57 = vmul.f32 %v2713_v44, %v8041_v6 }
 0x2f9   : > { %v8169_v60 = vpop.eup %5259  ;;  %5263 = vrsqrt.f32 %v8163_v12  ;;  %vm8186_vm13 = vmor %vm2332_vm11, %vm2333_vm8  ;;  %vm1814_vm14 = vcmp.gt.f32.partialorder %v8045_v14, 0.0  ;;  %3409 = vmatmul.bf16.gmra.mxu0 %v8115_v18  ;;  %v2340_v6 = vsub.f32 1.5, %v2339_v63  ;;  %v1690_v16 = vmul.f32 %v8167_v19, %v8167_v19  ;;  %v9531_v18 = vld [vmem:[#allocation96_spill] sm:$0xff] }
 0x2fa   : > { %9525 = vst [vmem:[#allocation35_spill] sm:$0xff] %v8176_v61  ;;  %v2355_v62 = vsel %vm2354_vm12, %v5258_v55, %v2351_v38  ;;  %v2357_v49 = vmul.f32 %v8169_v60, %v8133_v45  ;;  %v2335_v41 = vsel %vm8186_vm13, %v8058_v46, %v2331_v54  ;;  %v2714_v32 = vmax.f32 %v2650_v7, 0.0  ;;  %v9529_v54 = vld [vmem:[#allocation124_spill] sm:$0xff] }
 0x2fb   : > { %v2518_v10 = vsel %vm1814_vm14, %v2355_v62, 0.0  ;;  %v8199_v44 = vpop.eup %5261  ;;  %v2848_v9 = vmul.f32 %v7517_v43, %v9528_v30  ;;  %vm1812_vm15 = vcmp.gt.f32.partialorder %v7995_v53, 0.0  ;;  %vm1813_vm0 = vcmp.gt.f32.partialorder %v8018_v23, 0.0  ;;  %v5054_v62 = vld [vmem:[#allocation8 + $0x144] sm:$0xf]  ;;  %v1560_v30 = vpop.f32.mrf.mxu3 }
 0x2fc   : > { %v2582_v27 = vmul.f32 %v2518_v10, %v8045_v14  ;;  %v2358_v55 = vmul.f32 %v8169_v60, %v2357_v49  ;;  %v2367_v46 = vmul.f32 %v8199_v44, %v8153_v4  ;;  %v8210_v63 = vadd.f32 %v1690_v16, %v9529_v54  ;;  %v4818_v49 = vld [vmem:[#allocation8 + $0x148] sm:$0xf0] }
 0x2fd   : > { %v8212_v34 = vsel %vm1812_vm15, %v2335_v41, 0.0  ;;  %v8216_v38 = vpack.c.bf16 %v2848_v9, %v8110_v28  ;;  %v2341_v43 = vmul.f32 %v8078_v51, %v2340_v6  ;;  %vm2342_vm1 = vweird.f32 %v8018_v23  ;;  %v5070_v28 = vld [vmem:[#allocation8 + $0x1c4] sm:$0xf]  ;;  %v1471_v6 = vpop.f32.mrf.mxu2 }
 0x2fe   : > { %v2655_v7 = vsub.f32 %v2582_v27, %v6154_v5  ;;  %v2359_v14 = vmul.f32 0.5, %v2358_v55  ;;  %vm2343_vm2 = vweird.f32 %v8078_v51  ;;  %5265 = vrsqrt.f32 %v8210_v63  ;;  %v4882_v55 = vld [vmem:[#allocation8 + $0x1c8] sm:$0xf0] }
 0x2ff   : > { %9530 = vst [vmem:[#allocation114_spill] sm:$0xff] %v8216_v38  ;;  %v8218_v22 = vpop.eup %5263  ;;  %v8225_v41 = vmul.f32 %v2714_v32, %v8129_v29  ;;  %vm2363_vm3 = vweird.f32 %v8169_v60  ;;  %3498 = vmatmul.bf16.gmra.mxu1 %v8216_v38  ;;  %v2580_v9 = vmul.f32 %v8212_v34, %v7995_v53  ;;  %vm2362_vm4 = vweird.f32 %v8133_v45  ;;  %vm8241_vm5 = vmor %vm2342_vm1, %vm2343_vm2  ;;  %v4690_v32 = vld [vmem:[#allocation8 + $0x48] sm:$0xf0] }
 0x300   : > { %v2719_v16 = vmax.f32 %v2655_v7, 0.0  ;;  %v2360_v27 = vsub.f32 1.5, %v2359_v14  ;;  %v2368_v54 = vmul.f32 %v8199_v44, %v2367_v46  ;;  %v8235_v29 = vpack.c.bf16 %v7619_v37, %v9531_v18  ;;  %v9536_v46 = vld [vmem:[#allocation98_spill] sm:$0xff]  ;;  %vm8259_vm6 = vmor %vm2362_vm4, %vm2363_vm3 }
 0x301   : > { %v2377_v14 = vmul.f32 %v8218_v22, %v8163_v12  ;;  %v8252_v38 = vpack.c.bf16 %v7631_v15, %v9536_v46  ;;  %v2345_v37 = vsel %vm8241_vm5, %v8078_v51, %v2341_v43  ;;  %vm1815_vm7 = vcmp.gt.f32.partialorder %v8133_v45, 0.0  ;;  %v5022_v43 = vld [vmem:[#allocation8 + $0x44] sm:$0xf]  ;;  %v1295_v46 = vpop.f32.mrf.mxu0 }
 0x302   : > { %9532 = vst [vmem:[#allocation115_spill] sm:$0xff] %v8235_v29  ;;  %v8245_v7 = vmul.f32 %v2719_v16, %v2518_v10  ;;  %v2361_v53 = vmul.f32 %v8169_v60, %v2360_v27  ;;  %3587 = vmatmul.bf16.gmra.mxu2 %v8235_v29  ;;  %v4821_v10 = vor.u32 %v5054_v62, %v4818_v49  ;;  %v1384_v29 = vpop.f32.mrf.mxu1  ;;  %v9541_v62 = vld [vmem:[#allocation51_spill] sm:$0xff]  ;;  %v8283_v18 = vsel %vm1813_vm0, %v2345_v37, 0.0 }
 0x303   : > { %9537 = vst [vmem:[#allocation116_spill] sm:$0xff] %v8252_v38  ;;  %v4885_v16 = vor.u32 %v5070_v28, %v4882_v55  ;;  %v8264_v27 = vadd.f32 %v1560_v30, %v1471_v6  ;;  %3676 = vmatmul.bf16.gmra.mxu3 %v8252_v38  ;;  %v2851_v49 = vmul.f32 %v7283_v40, %v9541_v62  ;;  %vm2373_vm8 = vweird.f32 %v8199_v44 }
 0x304   : > { %9535 = vst [vmem:[#allocation38_spill] sm:$0xff] %v8245_v7  ;;  %v8268_v15 = vmul.f32 %v8245_v7, %v8006_v24  ;;  %v2365_v51 = vsel %vm8259_vm6, %v8169_v60, %v2361_v53  ;;  %v8277_v28 = vpop.eup %5265  ;;  %v2369_v24 = vmul.f32 0.5, %v2368_v54  ;;  %3908 = vmatpush.bf16.msrb.mxu2 %v4821_v10  ;;  %v4693_v30 = vor.u32 %v5022_v43, %v4690_v32  ;;  %v5038_v60 = vld [vmem:[#allocation8 + $0xc4] sm:$0xf]  ;;  %v4754_v53 = vld [vmem:[#allocation8 + $0xc8] sm:$0xf0] }
 0x305   : > { %v2519_v55 = vsel %vm1815_vm7, %v2365_v51, 0.0  ;;  %3997 = vmatpush.bf16.msrb.mxu3 %v4885_v16  ;;  %v1691_v6 = vmul.f32 %v8264_v27, %v8264_v27  ;;  %9542 = vst [vmem:[#allocation90_spill] sm:$0xff] %v8283_v18  ;;  %v2378_v40 = vmul.f32 %v8218_v22, %v2377_v14  ;;  %v2387_v51 = vmul.f32 %v8277_v28, %v8210_v63  ;;  %v9543_v10 = vld [vmem:[#allocation126_spill] sm:$0xff] }
 0x306   : > { %9540 = vst [vmem:[#allocation117_spill] sm:$0xff] %v8268_v15  ;;  %v2583_v38 = vmul.f32 %v2519_v55, %v8133_v45  ;;  %v2653_v54 = vsub.f32 %v2580_v9, %v6154_v5  ;;  %3730 = vmatpush.bf16.msrb.mxu0 %v4693_v30  ;;  %v4757_v43 = vor.u32 %v5038_v60, %v4754_v53  ;;  %v1473_v30 = vpop.f32.mrf.mxu2  ;;  %v1562_v60 = vpop.f32.mrf.mxu3  ;;  %vm2393_vm9 = vweird.f32 %v8277_v28 }
 0x307   : > { %v8291_v16 = vadd.f32 %v1691_v6, %v9543_v10  ;;  %v8293_v32 = vadd.f32 %v1384_v29, %v1295_v46  ;;  %v8297_v37 = vmul.f32 %v8172_v17, %v7664_v42  ;;  %v8301_v45 = vmul.f32 %v8182_v57, %v7771_v58 }
 0x308   : > { %v2656_v14 = vsub.f32 %v2583_v38, %v6190_v35  ;;  %v2388_v62 = vmul.f32 %v8277_v28, %v2387_v51  ;;  %v8307_v9 = vmul.f32 %v8225_v41, %v7820_v39  ;;  %v8311_v29 = vmul.f32 %v8283_v18, %v8018_v23  ;;  %3819 = vmatpush.bf16.msrb.mxu1 %v4757_v43  ;;  %v9544_v51 = vld [vmem:[#allocation53_spill] sm:$0xff] }
 0x309   : > { %v2370_v46 = vsub.f32 1.5, %v2369_v24  ;;  %5267 = vrsqrt.f32 %v8291_v16  ;;  %v2379_v6 = vmul.f32 0.5, %v2378_v40  ;;  %v1692_v38 = vmul.f32 %v8293_v32, %v8293_v32  ;;  %v9546_v40 = vld [vmem:[#allocation127_spill] sm:$0xff] }
 0x30a   : > { %v2720_v42 = vmax.f32 %v2656_v14, 0.0  ;;  %v2389_v58 = vmul.f32 0.5, %v2388_v62  ;;  %v2717_v53 = vmax.f32 %v2653_v54, 0.0  ;;  %v8317_v39 = vadd.f32 %v1562_v60, %v1473_v30  ;;  %v1298_v14 = vpop.f32.mrf.mxu0  ;;  %v1387_v62 = vpop.f32.mrf.mxu1 }
 0x30b   : > { %v2855_v23 = vmul.f32 %v7635_v2, %v9544_v51  ;;  %v8325_v43 = vadd.f32 %v1692_v38, %v9546_v40  ;;  %vm2392_vm10 = vweird.f32 %v8210_v63  ;;  %v8330_v30 = vadd.f32 %v1387_v62, %v1298_v14  ;;  %v9554_v51 = vld [vmem:[#allocation54_spill] sm:$0xff] }
 0x30c   : > { %v8321_v24 = vmul.f32 %v2720_v42, %v2519_v55  ;;  %v2390_v10 = vsub.f32 1.5, %v2389_v58  ;;  %v1693_v54 = vmul.f32 %v8317_v39, %v8317_v39  ;;  %v8339_v55 = vmul.f32 %v8199_v44, %v2370_v46  ;;  %vm2394_vm12 = vmor %vm2392_vm10, %vm2393_vm9 }
 0x30d   : > { %v8332_v60 = vpack.c.bf16 %v2855_v23, %v2851_v49  ;;  %v2380_v42 = vsub.f32 1.5, %v2379_v6  ;;  %vm2372_vm11 = vweird.f32 %v8153_v4  ;;  %5269 = vrsqrt.f32 %v8325_v43 }
 0x30e   : > { %9545 = vst [vmem:[#allocation15_spill] sm:$0xff] %v8321_v24  ;;  %v8336_v2 = vmul.f32 %v8321_v24, %v8087_v52  ;;  %v2391_v58 = vmul.f32 %v8277_v28, %v2390_v10  ;;  %v9549_v52 = vld [vmem:[#allocation128_spill] sm:$0xff]  ;;  %vm2382_vm13 = vweird.f32 %v8163_v12  ;;  %vm1818_vm14 = vcmp.gt.f32.partialorder %v8210_v63, 0.0  ;;  %vm8364_vm15 = vmor %vm2372_vm11, %vm2373_vm8  ;;  %v1476_v62 = vpop.f32.mrf.mxu2  ;;  %v9558_v24 = vld [vmem:[#allocation129_spill] sm:$0xff] }
 0x30f   : > { %9547 = vst [vmem:[#allocation93_spill] sm:$0xff] %v8332_v60  ;;  %v8342_v38 = vpop.eup %5267  ;;  %v8351_v49 = vadd.f32 %v1693_v54, %v9549_v52  ;;  %3414 = vmatmul.bf16.gmra.mxu0 %v8332_v60  ;;  %v8360_v23 = vmul.f32 %v2717_v53, %v8212_v34  ;;  %vm2383_vm0 = vweird.f32 %v8218_v22  ;;  %v8375_v14 = vmul.f32 %v8218_v22, %v2380_v42  ;;  %v1565_v54 = vpop.f32.mrf.mxu3  ;;  %v9553_v52 = vld [vmem:[#allocation52_spill] sm:$0xff] }
 0x310   : > { %9548 = vst [vmem:[#allocation39_spill] sm:$0xff] %v8336_v2  ;;  %v2395_v46 = vsel %vm2394_vm12, %v8277_v28, %v2391_v58  ;;  %v2397_v6 = vmul.f32 %v8342_v38, %v8291_v16  ;;  %v1694_v58 = vmul.f32 %v8330_v30, %v8330_v30  ;;  %v2856_v60 = vmul.f32 %v7676_v0, %v9554_v51  ;;  %v9561_v0 = vld [vmem:[#allocation101_spill] sm:$0xff]  ;;  %vm8411_vm2 = vmor %vm2382_vm13, %vm2383_vm0 }
 0x311   : > { %9550 = vst [vmem:[#allocation49_spill] sm:$0xff] %v8360_v23  ;;  %v2522_v40 = vsel %vm1818_vm14, %v2395_v46, 0.0  ;;  %5271 = vrsqrt.f32 %v8351_v49  ;;  %v2852_v46 = vmul.f32 %v7299_v47, %v9553_v52  ;;  %v8387_v28 = vpack.c.bf16 %v7673_v59, %v7297_v48  ;;  %v9560_v59 = vld [vmem:[#allocation55_spill] sm:$0xff] }
 0x312   : > { %v2586_v34 = vmul.f32 %v2522_v40, %v8210_v63  ;;  %v2398_v53 = vmul.f32 %v8342_v38, %v2397_v6  ;;  %vm1819_vm1 = vcmp.gt.f32.partialorder %v8291_v16, 0.0  ;;  %v9556_v6 = vld [vmem:[#allocation133_spill] sm:$0xff]  ;;  %v8398_v47 = vadd.f32 %v1694_v58, %v9558_v24  ;;  %v1300_v58 = vpop.f32.mrf.mxu0  ;;  %v5020_v23 = vld [vmem:[#allocation8 + $0x34] sm:$0xf] }
 0x313   : > { %9555 = vst [vmem:[#allocation118_spill] sm:$0xff] %v8387_v28  ;;  %v8393_v2 = vpack.c.bf16 %v9556_v6, %v7310_v50  ;;  %v8395_v15 = vpop.eup %5269  ;;  %v8400_v52 = vpack.c.bf16 %v2856_v60, %v2852_v46  ;;  %3592 = vmatmul.bf16.gmra.mxu2 %v8387_v28  ;;  %v8403_v48 = vadd.f32 %v1565_v54, %v1476_v62  ;;  %vm2403_vm3 = vweird.f32 %v8342_v38  ;;  %v1389_v46 = vpop.f32.mrf.mxu1 }
 0x314   : > { %v2659_v42 = vsub.f32 %v2586_v34, %v6154_v5  ;;  %v2399_v63 = vmul.f32 0.5, %v2398_v53  ;;  %v2859_v51 = vmul.f32 %v9561_v0, %v9560_v59  ;;  %v2407_v60 = vmul.f32 %v8395_v15, %v8325_v43  ;;  %v9565_v0 = vld [vmem:[#allocation130_spill] sm:$0xff] }
 0x315   : > { %9557 = vst [vmem:[#allocation40_spill] sm:$0xff] %v8393_v2  ;;  %3681 = vmatmul.bf16.gmra.mxu3 %v8393_v2  ;;  %vm2402_vm4 = vweird.f32 %v8291_v16  ;;  %5273 = vrsqrt.f32 %v8398_v47  ;;  %3503 = vmatmul.bf16.gmra.mxu1 %v8400_v52  ;;  %v1695_v54 = vmul.f32 %v8403_v48, %v8403_v48  ;;  %vm1820_vm5 = vcmp.gt.f32.partialorder %v8325_v43, 0.0 }
 0x316   : > { %9559 = vst [vmem:[#allocation18_spill] sm:$0xff] %v8400_v52  ;;  %v2723_v34 = vmax.f32 %v2659_v42, 0.0  ;;  %v2400_v24 = vsub.f32 1.5, %v2399_v63  ;;  %v2408_v6 = vmul.f32 %v8395_v15, %v2407_v60  ;;  %vm2404_vm6 = vmor %vm2402_vm4, %vm2403_vm3  ;;  %vm2412_vm7 = vweird.f32 %v8325_v43 }
 0x317   : > { %v8419_v53 = vpop.eup %5271  ;;  %v8441_v62 = vadd.f32 %v1695_v54, %v9565_v0  ;;  %v8443_v2 = vadd.f32 %v1389_v46, %v1300_v58  ;;  %vm1821_vm8 = vcmp.gt.f32.partialorder %v8351_v49, 0.0  ;;  %vm2413_vm9 = vweird.f32 %v8395_v15  ;;  %v1478_v46 = vpop.f32.mrf.mxu2 }
 0x318   : > { %v8430_v42 = vmul.f32 %v2723_v34, %v2522_v40  ;;  %v2401_v63 = vmul.f32 %v8342_v38, %v2400_v24  ;;  %v2417_v59 = vmul.f32 %v8419_v53, %v8351_v49  ;;  %v9566_v40 = vld [vmem:[#allocation57_spill] sm:$0xff]  ;;  %v2409_v28 = vmul.f32 0.5, %v2408_v6  ;;  %vm2414_vm11 = vmor %vm2412_vm7, %vm2413_vm9 }
 0x319   : > { %v2863_v34 = vmul.f32 %v7796_v8, %v9566_v40  ;;  %vm2423_vm10 = vweird.f32 %v8419_v53  ;;  %5275 = vrsqrt.f32 %v8441_v62  ;;  %v9570_v40 = vld [vmem:[#allocation56_spill] sm:$0xff]  ;;  %vm2422_vm12 = vweird.f32 %v8351_v49 }
 0x31a   : > { %9564 = vst [vmem:[#allocation119_spill] sm:$0xff] %v8430_v42  ;;  %v8449_v24 = vmul.f32 %v8430_v42, %v8167_v19  ;;  %v2405_v60 = vsel %vm2404_vm6, %v8342_v38, %v2401_v63  ;;  %v2418_v52 = vmul.f32 %v8419_v53, %v2417_v59  ;;  %v2410_v19 = vsub.f32 1.5, %v2409_v28  ;;  %v1567_v63 = vpop.f32.mrf.mxu3  ;;  %v9572_v42 = vld [vmem:[#allocation58_spill] sm:$0xff]  ;;  %vm2424_vm13 = vmor %vm2422_vm12, %vm2423_vm10 }
 0x31b   : > { %v2523_v54 = vsel %vm1819_vm1, %v2405_v60, 0.0  ;;  %v1696_v38 = vmul.f32 %v8443_v2, %v8443_v2  ;;  %v8462_v6 = vpop.eup %5273  ;;  %v8464_v59 = vadd.f32 %v1567_v63, %v1478_v46  ;;  %v8466_v0 = vpack.c.bf16 %v2863_v34, %v2859_v51  ;;  %v9571_v60 = vld [vmem:[#allocation48_spill] sm:$0xff]  ;;  %v9573_v51 = vld [vmem:[#allocation131_spill] sm:$0xff]  ;;  %v3380_v63 = vpop.f32.mrf.mxu0 }
 0x31c   : > { %9567 = vst [vmem:[#allocation120_spill] sm:$0xff] %v8449_v24  ;;  %v2587_v8 = vmul.f32 %v2523_v54, %v8291_v16  ;;  %v2419_v58 = vmul.f32 0.5, %v2418_v52  ;;  %v2860_v24 = vmul.f32 %v9571_v60, %v9570_v40  ;;  %v2864_v7 = vmul.f32 %v7799_v25, %v9572_v42  ;;  %v3469_v40 = vpop.f32.mrf.mxu1 }
 0x31d   : > { %9568 = vst [vmem:[#allocation41_spill] sm:$0xff] %v8464_v59  ;;  %v2411_v28 = vmul.f32 %v8395_v15, %v2410_v19  ;;  %v2427_v61 = vmul.f32 %v8462_v6, %v8398_v47  ;;  %v8482_v34 = vadd.f32 %v1696_v38, %v9573_v51  ;;  %v1697_v25 = vmul.f32 %v8464_v59, %v8464_v59  ;;  %v4682_v59 = vld [vmem:[#allocation8 + $0x38] sm:$0xf0] }
 0x31e   : > { %9569 = vst [vmem:[#allocation121_spill] sm:$0xff] %v8466_v0  ;;  %v2660_v16 = vsub.f32 %v2587_v8, %v6190_v35  ;;  %v2420_v52 = vsub.f32 1.5, %v2419_v58  ;;  %v8487_v42 = vpack.c.bf16 %v2864_v7, %v2860_v24  ;;  %vm1822_vm14 = vcmp.gt.f32.partialorder %v8398_v47, 0.0 }
 0x31f   : > { %3419 = vmatmul.bf16.gmra.mxu0 %v8466_v0  ;;  %v2415_v19 = vsel %vm2414_vm11, %v8395_v15, %v2411_v28  ;;  %v2428_v46 = vmul.f32 %v8462_v6, %v2427_v61  ;;  %v8492_v60 = vpop.eup %5275  ;;  %vm2432_vm0 = vweird.f32 %v8398_v47  ;;  %5277 = vrsqrt.f32 %v8482_v34 }
 0x320   : > { %9574 = vst [vmem:[#allocation44_spill] sm:$0xff] %v8487_v42  ;;  %v2724_v8 = vmax.f32 %v2660_v16, 0.0  ;;  %v2421_v58 = vmul.f32 %v8419_v53, %v2420_v52  ;;  %v2524_v38 = vsel %vm1820_vm5, %v2415_v19, 0.0  ;;  %vm2433_vm1 = vweird.f32 %v8462_v6  ;;  %v9576_v52 = vld [vmem:[#allocation92_spill] sm:$0xff]  ;;  %v5052_v19 = vld [vmem:[#allocation8 + $0x134] sm:$0xf] }
 0x321   : > { %v2588_v61 = vmul.f32 %v2524_v38, %v8325_v43  ;;  %v2429_v24 = vmul.f32 0.5, %v2428_v46  ;;  %v2437_v28 = vmul.f32 %v8492_v60, %v8441_v62  ;;  %v8511_v51 = vadd.f32 %v1697_v25, %v9576_v52  ;;  %v3558_v46 = vpop.f32.mrf.mxu2  ;;  %v4874_v52 = vld [vmem:[#allocation8 + $0x1b8] sm:$0xf0]  ;;  %vm8532_vm6 = vmor %vm2432_vm0, %vm2433_vm1 }
 0x322   : > { %v8501_v7 = vmul.f32 %v2724_v8, %v2523_v54  ;;  %v2425_v15 = vsel %vm2424_vm13, %v8419_v53, %v2421_v58  ;;  %v4810_v58 = vld [vmem:[#allocation8 + $0x138] sm:$0xf0]  ;;  %vm1823_vm3 = vcmp.gt.f32.partialorder %v8441_v62, 0.0  ;;  %vm2442_vm4 = vweird.f32 %v8441_v62 }
 0x323   : > { %v2525_v16 = vsel %vm1821_vm8, %v2425_v15, 0.0  ;;  %v2661_v43 = vsub.f32 %v2588_v61, %v6154_v5  ;;  %v2430_v8 = vsub.f32 1.5, %v2429_v24  ;;  %v3647_v15 = vpop.f32.mrf.mxu3  ;;  %v2438_v0 = vmul.f32 %v8492_v60, %v2437_v28  ;;  %v5068_v24 = vld [vmem:[#allocation8 + $0x1b4] sm:$0xf] }
 0x324   : > { %9575 = vst [vmem:[#allocation103_spill] sm:$0xff] %v8501_v7  ;;  %v8515_v54 = vmul.f32 %v8501_v7, %v8264_v27  ;;  %v2589_v53 = vmul.f32 %v2525_v16, %v8351_v49  ;;  %vm2443_vm5 = vweird.f32 %v8492_v60  ;;  %5279 = vrsqrt.f32 %v8511_v51 }
 0x325   : > { %v2725_v27 = vmax.f32 %v2661_v43, 0.0  ;;  %v2431_v49 = vmul.f32 %v8462_v6, %v2430_v8  ;;  %v3470_v61 = vadd.f32 %v3469_v40, %v3380_v63  ;;  %v2439_v7 = vmul.f32 0.5, %v2438_v0  ;;  %3508 = vmatmul.bf16.gmra.mxu1 %v8487_v42  ;;  %v9580_v43 = vld [vmem:[#allocation102_spill] sm:$0xff]  ;;  %v9581_v63 = vld [vmem:[#allocation21_spill] sm:$0xff]  ;;  %v9582_v40 = vld [vmem:[#allocation107_spill] sm:$0xff] }
 0x326   : > { %9577 = vst [vmem:[#allocation94_spill] sm:$0xff] %v8515_v54  ;;  %v2662_v25 = vsub.f32 %v2589_v53, %v6190_v35  ;;  %v8526_v54 = vpop.eup %5277  ;;  %v8539_v53 = vpack.c.bf16 %v7832_v20, %v9580_v43  ;;  %v8543_v8 = vpack.c.bf16 %v9582_v40, %v9581_v63  ;;  %v4813_v56 = vor.u32 %v5052_v19, %v4810_v58  ;;  %v5036_v20 = vld [vmem:[#allocation8 + $0xb4] sm:$0xf]  ;;  %v4746_v43 = vld [vmem:[#allocation8 + $0xb8] sm:$0xf0]  ;;  %v3382_v63 = vpop.f32.mrf.mxu0  ;;  %vm2444_vm10 = vmor %vm2442_vm4, %vm2443_vm5 }
 0x327   : > { %v8545_v11 = vmul.f32 %v2725_v27, %v2524_v38  ;;  %v2435_v0 = vsel %vm8532_vm6, %v8462_v6, %v2431_v49  ;;  %v2447_v42 = vmul.f32 %v8526_v54, %v8482_v34  ;;  %vm2452_vm7 = vweird.f32 %v8482_v34  ;;  %v3471_v40 = vpop.f32.mrf.mxu1 }
 0x328   : > { %v2726_v18 = vmax.f32 %v2662_v25, 0.0  ;;  %v2526_v19 = vsel %vm1822_vm14, %v2435_v0, 0.0  ;;  %v2440_v58 = vsub.f32 1.5, %v2439_v7  ;;  %vm2453_vm8 = vweird.f32 %v8526_v54  ;;  %3597 = vmatmul.bf16.gmra.mxu2 %v8539_v53  ;;  %3686 = vmatmul.bf16.gmra.mxu3 %v8543_v8 }
 0x329   : > { %v4877_v6 = vor.u32 %v5068_v24, %v4874_v52  ;;  %v8561_v38 = vmul.f32 %v8545_v11, %v8293_v32  ;;  %v2590_v25 = vmul.f32 %v2526_v19, %v8398_v47  ;;  %vm1824_vm9 = vcmp.gt.f32.partialorder %v8482_v34, 0.0  ;;  %3909 = vmatpush.bf16.msrb.mxu2 %v4813_v56  ;;  %vm2454_vm14 = vmor %vm2452_vm7, %vm2453_vm8 }
 0x32a   : > { %v8563_v27 = vmul.f32 %v2726_v18, %v2525_v16  ;;  %v2448_v7 = vmul.f32 %v8526_v54, %v2447_v42  ;;  %v8568_v49 = vpop.eup %5279  ;;  %v2441_v28 = vmul.f32 %v8492_v60, %v2440_v58  ;;  %v3559_v24 = vadd.f32 %v3558_v46, %v3470_v61 }
 0x32b   : > { %3998 = vmatpush.bf16.msrb.mxu3 %v4877_v6  ;;  %v4685_v52 = vor.u32 %v5020_v23, %v4682_v59  ;;  %v4749_v0 = vor.u32 %v5036_v20, %v4746_v43  ;;  %v2663_v18 = vsub.f32 %v2590_v25, %v6154_v5  ;;  %v2457_v47 = vmul.f32 %v8568_v49, %v8511_v51  ;;  %v3560_v23 = vpop.f32.mrf.mxu2  ;;  %v3649_v59 = vpop.f32.mrf.mxu3  ;;  %v9584_v6 = vld [vmem:[#allocation31_spill] sm:$0xff]  ;;  %v9586_v25 = vld [vmem:[#allocation110_spill] sm:$0xff] }
 0x32c   : > { %v8573_v32 = vmul.f32 %v8563_v27, %v8317_v39  ;;  %v2449_v56 = vmul.f32 0.5, %v2448_v7  ;;  %vm2462_vm11 = vweird.f32 %v8511_v51  ;;  %v2445_v42 = vsel %vm2444_vm10, %v8492_v60, %v2441_v28 }
 0x32d   : > { %vm2463_vm12 = vweird.f32 %v8568_v49  ;;  %v3648_v39 = vadd.f32 %v3647_v15, %v3559_v24  ;;  %3731 = vmatpush.bf16.msrb.mxu0 %v4685_v52  ;;  %3820 = vmatpush.bf16.msrb.mxu1 %v4749_v0  ;;  %v3472_v16 = vadd.f32 %v3471_v40, %v3382_v63  ;;  %v2727_v46 = vmax.f32 %v2663_v18, 0.0  ;;  %v9583_v15 = vld [vmem:[#allocation59_spill] sm:$0xff]  ;;  %v9585_v40 = vld [vmem:[#allocation61_spill] sm:$0xff]  ;;  %v9587_v18 = vld [vmem:[#allocation60_spill] sm:$0xff] }
 0x32e   : > { %v2527_v61 = vsel %vm1823_vm3, %v2445_v42, 0.0  ;;  %v2450_v20 = vsub.f32 1.5, %v2449_v56  ;;  %vm1825_vm13 = vcmp.gt.f32.partialorder %v8511_v51, 0.0  ;;  %v2458_v43 = vmul.f32 %v8568_v49, %v2457_v47  ;;  %v3385_v0 = vpop.f32.mrf.mxu0  ;;  %v9588_v56 = vld [vmem:[#allocation132_spill] sm:$0xff]  ;;  %vm2464_vm3 = vmor %vm2462_vm11, %vm2463_vm12 }
 0x32f   : > { %v2591_v58 = vmul.f32 %v2527_v61, %v8441_v62  ;;  %4083 = vst [vmem:[%s8592_s11] sm:$0xff] %v3648_v39  ;;  %v3561_v60 = vadd.f32 %v3560_v23, %v3472_v16  ;;  %v2867_v63 = vmul.f32 %v9584_v6, %v9583_v15  ;;  %v2871_v7 = vmul.f32 %v9586_v25, %v9585_v40  ;;  %v3474_v62 = vpop.f32.mrf.mxu1  ;;  %v9592_v40 = vld [vmem:[#allocation105_spill] sm:$0xff] }
 0x330   : > { %v8599_v28 = vmul.f32 %v2727_v46, %v2526_v19  ;;  %v2451_v24 = vmul.f32 %v8526_v54, %v2450_v20  ;;  %v2459_v52 = vmul.f32 0.5, %v2458_v43  ;;  %v2868_v47 = vmul.f32 %v9588_v56, %v9587_v18  ;;  %v9589_v43 = vld [vmem:[#allocation62_spill] sm:$0xff]  ;;  %v5050_v18 = vld [vmem:[#allocation8 + $0x124] sm:$0xf] }
 0x331   : > { %v2664_v42 = vsub.f32 %v2591_v58, %v6190_v35  ;;  %v3650_v23 = vadd.f32 %v3649_v59, %v3561_v60  ;;  %v3475_v39 = vadd.f32 %v3474_v62, %v3385_v0  ;;  %v8609_v19 = vpack.c.bf16 %v2871_v7, %v2867_v63  ;;  %v9590_v59 = vld [vmem:[#allocation23_spill] sm:$0xff]  ;;  %v9591_v60 = vld [vmem:[#allocation28_spill] sm:$0xff] }
 0x332   : > { %v8613_v16 = vmul.f32 %v8599_v28, %v8330_v30  ;;  %v2455_v46 = vsel %vm2454_vm14, %v8526_v54, %v2451_v24  ;;  %v2460_v20 = vsub.f32 1.5, %v2459_v52  ;;  %v2872_v15 = vmul.f32 %v7961_v36, %v9589_v43  ;;  %v9594_v52 = vld [vmem:[#allocation63_spill] sm:$0xff]  ;;  %v9595_v0 = vld [vmem:[#allocation36_spill] sm:$0xff]  ;;  %v5066_v43 = vld [vmem:[#allocation8 + $0x1a4] sm:$0xf] }
 0x333   : > { %v2728_v58 = vmax.f32 %v2664_v42, 0.0  ;;  %v2528_v6 = vsel %vm1824_vm9, %v2455_v46, 0.0  ;;  %4085 = vst [vmem:[%s8592_s11 + $0x10] sm:$0xff] %v3650_v23  ;;  %3424 = vmatmul.bf16.gmra.mxu0 %v8609_v19  ;;  %v8624_v63 = vpack.c.bf16 %v9591_v60, %v9590_v59  ;;  %v8628_v30 = vpack.c.bf16 %v8137_v3, %v9592_v40  ;;  %v3563_v7 = vpop.f32.mrf.mxu2  ;;  %v3652_v24 = vpop.f32.mrf.mxu3  ;;  %v9597_v42 = vld [vmem:[#allocation64_spill] sm:$0xff]  ;;  %v9600_v60 = vld [vmem:[#allocation29_spill] sm:$0xff] }
 0x334   : > { %vm1816_vm0 = vcmp.gt.f32.partialorder %v8153_v4, 0.0  ;;  %v2592_v54 = vmul.f32 %v2528_v6, %v8482_v34  ;;  %v2461_v36 = vmul.f32 %v8568_v49, %v2460_v20  ;;  %v8633_v25 = vpack.c.bf16 %v2872_v15, %v2868_v47  ;;  %v9596_v34 = vld [vmem:[#allocation65_spill] sm:$0xff]  ;;  %v9598_v23 = vld [vmem:[#allocation136_spill] sm:$0xff]  ;;  %v4802_v20 = vld [vmem:[#allocation8 + $0x128] sm:$0xf0] }
 0x335   : > { %9593 = vst [vmem:[#allocation45_spill] sm:$0xff] %v8628_v30  ;;  %v2875_v62 = vmul.f32 %v9595_v0, %v9594_v52  ;;  %vm1817_vm1 = vcmp.gt.f32.partialorder %v8163_v12, 0.0  ;;  %v8638_v56 = vmul.f32 %v2728_v58, %v2527_v61  ;;  %v3564_v3 = vadd.f32 %v3563_v7, %v3475_v39  ;;  %v9599_v61 = vld [vmem:[#allocation66_spill] sm:$0xff]  ;;  %v5018_v7 = vld [vmem:[#allocation8 + $0x24] sm:$0xf] }
 0x336   : > { %v2879_v47 = vmul.f32 %v8034_v26, %v9596_v34  ;;  %v2876_v46 = vmul.f32 %v9598_v23, %v9597_v42  ;;  %v2665_v15 = vsub.f32 %v2592_v54, %v6154_v5  ;;  %v2465_v59 = vsel %vm2464_vm3, %v8568_v49, %v2461_v36  ;;  %v4866_v39 = vld [vmem:[#allocation8 + $0x1a8] sm:$0xf0]  ;;  %3513 = vmatmul.bf16.gmra.mxu1 %v8633_v25  ;;  %v3387_v42 = vpop.f32.mrf.mxu0 }
 0x337   : > { %v2880_v58 = vmul.f32 %v8172_v17, %v9599_v61  ;;  %v8654_v40 = vpack.c.bf16 %v8148_v13, %v9600_v60  ;;  %v4674_v52 = vld [vmem:[#allocation8 + $0x28] sm:$0xf0]  ;;  %v8658_v26 = vmul.f32 %v8638_v56, %v8403_v48  ;;  %v2529_v54 = vsel %vm1825_vm13, %v2465_v59, 0.0  ;;  %v5034_v17 = vld [vmem:[#allocation8 + $0xa4] sm:$0xf]  ;;  %v3476_v23 = vpop.f32.mrf.mxu1  ;;  %v9601_v60 = vld [vmem:[#allocation108_spill] sm:$0xff] }
 0x338   : > { %v3653_v49 = vadd.f32 %v3652_v24, %v3564_v3  ;;  %v8663_v36 = vpack.c.bf16 %v2879_v47, %v2875_v62  ;;  %v4738_v0 = vld [vmem:[#allocation8 + $0xa8] sm:$0xf0]  ;;  %v2729_v13 = vmax.f32 %v2665_v15, 0.0  ;;  %v2593_v34 = vmul.f32 %v2529_v54, %v8511_v51  ;;  %3602 = vmatmul.bf16.gmra.mxu2 %v8624_v63  ;;  %3691 = vmatmul.bf16.gmra.mxu3 %v8628_v30  ;;  %v9604_v30 = vld [vmem:[#allocation69_spill] sm:$0xff] }
 0x339   : > { %v8666_v61 = vpack.c.bf16 %v2880_v58, %v2876_v46  ;;  %v8670_v48 = vpack.c.bf16 %v8297_v37, %v9601_v60  ;;  %v3477_v24 = vadd.f32 %v3476_v23, %v3387_v42  ;;  %v4805_v62 = vor.u32 %v5050_v18, %v4802_v20  ;;  %v9603_v37 = vld [vmem:[#allocation67_spill] sm:$0xff]  ;;  %v9605_v18 = vld [vmem:[#allocation68_spill] sm:$0xff] }
 0x33a   : > { %4087 = vst [vmem:[%s8592_s11 + $0x20] sm:$0xff] %v3653_v49  ;;  %v4869_v3 = vor.u32 %v5066_v43, %v4866_v39  ;;  %v8675_v47 = vmul.f32 %v2729_v13, %v2528_v6  ;;  %v2666_v51 = vsub.f32 %v2593_v34, %v6190_v35  ;;  %v4677_v15 = vor.u32 %v5018_v7, %v4674_v52  ;;  %v9610_v13 = vld [vmem:[#allocation71_spill] sm:$0xff]  ;;  %v9611_v34 = vld [vmem:[#allocation24_spill] sm:$0xff] }
 0x33b   : > { %v4741_v59 = vor.u32 %v5034_v17, %v4738_v0  ;;  %v9602_v46 = vsub.f32 %v8311_v29, %v6190_v35  ;;  %3910 = vmatpush.bf16.msrb.mxu2 %v4805_v62  ;;  %v2883_v60 = vmul.f32 %v7932_v1, %v9603_v37  ;;  %v2887_v49 = vmul.f32 %v8182_v57, %v9604_v30  ;;  %v3565_v39 = vpop.f32.mrf.mxu2  ;;  %v3654_v7 = vpop.f32.mrf.mxu3  ;;  %v9606_v29 = vld [vmem:[#allocation70_spill] sm:$0xff] }
 0x33c   : > { %3999 = vmatpush.bf16.msrb.mxu3 %v4869_v3  ;;  %v2884_v6 = vmul.f32 %v7976_v33, %v9605_v18  ;;  %v8689_v20 = vmul.f32 %v8675_v47, %v8443_v2  ;;  %v2730_v43 = vmax.f32 %v2666_v51, 0.0  ;;  %3732 = vmatpush.bf16.msrb.mxu0 %v4677_v15  ;;  %v2888_v52 = vmul.f32 %v8225_v41, %v9606_v29  ;;  %v9615_v3 = vld [vmem:[#allocation43_spill] sm:$0xff]  ;;  %v9618_v37 = vld [vmem:[#allocation74_spill] sm:$0xff] }
 0x33d   : > { %v2718_v58 = vmax.f32 %v9602_v46, 0.0  ;;  %3821 = vmatpush.bf16.msrb.mxu1 %v4741_v59  ;;  %v8695_v1 = vpack.c.bf16 %v8301_v45, %v7948_v21  ;;  %v9607_v33 = vsel %vm8364_vm15, %v8199_v44, %v8339_v55  ;;  %v3566_v2 = vadd.f32 %v3565_v39, %v3477_v24  ;;  %v9609_v55 = vld [vmem:[#allocation90_spill] sm:$0xff]  ;;  %v9614_v24 = vld [vmem:[#allocation49_spill] sm:$0xff]  ;;  %v9617_v46 = vld [vmem:[#allocation91_spill] sm:$0xff] }
 0x33e   : > { %v2520_v57 = vsel %vm1816_vm0, %v9607_v33, 0.0  ;;  %v8704_v30 = vpack.c.bf16 %v2887_v49, %v2883_v60  ;;  %v8708_v17 = vpack.c.bf16 %v8307_v9, %v7992_v31  ;;  %v9608_v21 = vsel %vm8411_vm2, %v8218_v22, %v8375_v14  ;;  %v9612_v9 = vld [vmem:[#allocation41_spill] sm:$0xff]  ;;  %v3390_v22 = vpop.f32.mrf.mxu0 }
 0x33f   : > { %v2521_v41 = vsel %vm1817_vm1, %v9608_v21, 0.0  ;;  %v8717_v44 = vmul.f32 %v2730_v43, %v2529_v54  ;;  %v8719_v45 = vpack.c.bf16 %v2888_v52, %v2884_v6  ;;  %v2782_v10 = vmul.f32 %v2718_v58, %v9609_v55  ;;  %v3479_v14 = vpop.f32.mrf.mxu1  ;;  %v9613_v54 = vld [vmem:[#allocation73_spill] sm:$0xff] }
 0x340   : > { %v3655_v0 = vadd.f32 %v3654_v7, %v3566_v2  ;;  %v2891_v42 = vmul.f32 %v9611_v34, %v9610_v13  ;;  %v2584_v31 = vmul.f32 %v2520_v57, %v8153_v4  ;;  %v2585_v23 = vmul.f32 %v2521_v41, %v8163_v12  ;;  %v9616_v4 = vld [vmem:[#allocation72_spill] sm:$0xff]  ;;  %v9619_v6 = vld [vmem:[#allocation37_spill] sm:$0xff]  ;;  %v5048_v13 = vld [vmem:[#allocation8 + $0x114] sm:$0xf] }
 0x341   : > { %v8727_v50 = vmul.f32 %v8717_v44, %v9612_v9  ;;  %v2895_v62 = vmul.f32 %v9614_v24, %v9613_v54  ;;  %v2897_v51 = vmul.f32 %v9614_v24, %v9615_v3  ;;  %v3480_v15 = vadd.f32 %v3479_v14, %v3390_v22  ;;  %v9620_v33 = vld [vmem:[#allocation89_spill] sm:$0xff]  ;;  %v4794_v34 = vld [vmem:[#allocation8 + $0x118] sm:$0xf0]  ;;  %v5016_v22 = vld [vmem:[#allocation8 + $0x14] sm:$0xf] }
 0x342   : > { %4089 = vst [vmem:[%s8592_s11 + $0x30] sm:$0xff] %v3655_v0  ;;  %v2892_v58 = vmul.f32 %v9617_v46, %v9616_v4  ;;  %v2896_v60 = vmul.f32 %v2782_v10, %v9618_v37  ;;  %v2657_v49 = vsub.f32 %v2584_v31, %v6154_v5  ;;  %v2898_v43 = vmul.f32 %v2782_v10, %v9619_v6  ;;  %v9621_v10 = vld [vmem:[#allocation35_spill] sm:$0xff]  ;;  %v4858_v9 = vld [vmem:[#allocation8 + $0x198] sm:$0xf0] }
 0x343   : > { %3429 = vmatmul.bf16.gmra.mxu0 %v8663_v36  ;;  %v8736_v59 = vpack.c.bf16 %v2895_v62, %v2891_v42  ;;  %v3568_v12 = vpop.f32.mrf.mxu2  ;;  %v3657_v18 = vpop.f32.mrf.mxu3  ;;  %v2658_v39 = vsub.f32 %v2585_v23, %v6190_v35  ;;  %v8748_v2 = vpack.c.bf16 %v2897_v51, %v9620_v33  ;;  %v4797_v42 = vor.u32 %v5048_v13, %v4794_v34  ;;  %v5064_v31 = vld [vmem:[#allocation8 + $0x194] sm:$0xf]  ;;  %v4666_v54 = vld [vmem:[#allocation8 + $0x18] sm:$0xf0] }
 0x344   : > { %v3569_v7 = vadd.f32 %v3568_v12, %v3480_v15  ;;  %v8744_v29 = vpack.c.bf16 %v2896_v60, %v2892_v58  ;;  %v2721_v21 = vmax.f32 %v2657_v49, 0.0  ;;  %v8754_v35 = vpack.c.bf16 %v2898_v43, %v9621_v10  ;;  %v5032_v24 = vld [vmem:[#allocation8 + $0x94] sm:$0xf]  ;;  %v4730_v62 = vld [vmem:[#allocation8 + $0x98] sm:$0xf0]  ;;  %v9623_v12 = vld [vmem:[#allocation38_spill] sm:$0xff] }
 0x345   : > { %v2722_v5 = vmax.f32 %v2658_v39, 0.0  ;;  %v4861_v23 = vor.u32 %v5064_v31, %v4858_v9  ;;  %3911 = vmatpush.bf16.msrb.mxu2 %v4797_v42  ;;  %v4669_v15 = vor.u32 %v5016_v22, %v4666_v54  ;;  %v4733_v4 = vor.u32 %v5032_v24, %v4730_v62  ;;  %v9622_v49 = vld [vmem:[#allocation75_spill] sm:$0xff]  ;;  %v9624_v39 = vld [vmem:[#allocation77_spill] sm:$0xff]  ;;  %v9629_v42 = vld [vmem:[#allocation34_spill] sm:$0xff] }
 0x346   : > { %3518 = vmatmul.bf16.gmra.mxu1 %v8666_v61  ;;  %v3658_v52 = vadd.f32 %v3657_v18, %v3569_v7  ;;  %v3392_v55 = vpop.f32.mrf.mxu0  ;;  %v2785_v46 = vmul.f32 %v2721_v21, %v2520_v57  ;;  %v2899_v18 = vmul.f32 %v9623_v12, %v9622_v49  ;;  %v9626_v21 = vld [vmem:[#allocation76_spill] sm:$0xff]  ;;  %v9633_v49 = vld [vmem:[#allocation119_spill] sm:$0xff] }
 0x347   : > { %v3481_v0 = vpop.f32.mrf.mxu1  ;;  %4000 = vmatpush.bf16.msrb.mxu3 %v4861_v23  ;;  %3733 = vmatpush.bf16.msrb.mxu0 %v4669_v15  ;;  %v2786_v37 = vmul.f32 %v2722_v5, %v2521_v41  ;;  %v9628_v5 = vld [vmem:[#allocation78_spill] sm:$0xff]  ;;  %v9630_v23 = vld [vmem:[#allocation117_spill] sm:$0xff] }
 0x348   : > { %3607 = vmatmul.bf16.gmra.mxu2 %v8654_v40  ;;  %3696 = vmatmul.bf16.gmra.mxu3 %v8670_v48  ;;  %4091 = vst [vmem:[%s8592_s11 + $0x40] sm:$0xff] %v3658_v52  ;;  %v3482_v14 = vadd.f32 %v3481_v0, %v3392_v55  ;;  %v2903_v7 = vmul.f32 %v2785_v46, %v9624_v39  ;;  %v9625_v52 = vld [vmem:[#allocation25_spill] sm:$0xff]  ;;  %v9627_v0 = vld [vmem:[#allocation15_spill] sm:$0xff] }
 0x349   : > { %3822 = vmatpush.bf16.msrb.mxu1 %v4733_v4  ;;  %v2905_v33 = vmul.f32 %v2785_v46, %v9625_v52  ;;  %v2900_v41 = vmul.f32 %v9627_v0, %v9626_v21  ;;  %v2904_v10 = vmul.f32 %v2786_v37, %v9628_v5  ;;  %v2906_v31 = vmul.f32 %v2786_v37, %v9629_v42  ;;  %v9637_v0 = vld [vmem:[#allocation82_spill] sm:$0xff]  ;;  %v9638_v42 = vld [vmem:[#allocation120_spill] sm:$0xff] }
 0x34a   : > { %v8762_v57 = vpack.c.bf16 %v2903_v7, %v2899_v18 }
 0x34b   : > { %v3570_v3 = vpop.f32.mrf.mxu2  ;;  %v3659_v51 = vpop.f32.mrf.mxu3  ;;  %v8768_v22 = vpack.c.bf16 %v2904_v10, %v2900_v41  ;;  %v8772_v54 = vpack.c.bf16 %v2905_v33, %v9630_v23  ;;  %v9635_v33 = vld [vmem:[#allocation80_spill] sm:$0xff]  ;;  %v2912_v41 = vmul.f32 %v8563_v27, %v9637_v0  ;;  %v9639_v27 = vld [vmem:[#allocation94_spill] sm:$0xff] }
 0x34c   : > { %v3571_v58 = vadd.f32 %v3570_v3, %v3482_v14  ;;  %v9631_v3 = vld [vmem:[#allocation39_spill] sm:$0xff]  ;;  %v8804_v23 = vpack.c.bf16 %v8573_v32, %v9639_v27 }
 0x34e   : > { %v3660_v60 = vadd.f32 %v3659_v51, %v3571_v58  ;;  %v3395_v6 = vpop.f32.mrf.mxu0  ;;  %v8778_v51 = vpack.c.bf16 %v2906_v31, %v9631_v3  ;;  %v8797_v31 = vpack.c.bf16 %v8561_v38, %v9638_v42  ;;  %v5014_v38 = vld [vmem:[#allocation8 + $0x4] sm:$0xf]  ;;  %v9642_v42 = vld [vmem:[#allocation84_spill] sm:$0xff] }
 0x34f   : > { %v3484_v43 = vpop.f32.mrf.mxu1 }
 0x350   : > { %4093 = vst [vmem:[%s8592_s11 + $0x50] sm:$0xff] %v3660_v60  ;;  %v3485_v55 = vadd.f32 %v3484_v43, %v3395_v6  ;;  %v9632_v60 = vld [vmem:[#allocation79_spill] sm:$0xff]  ;;  %v9634_v43 = vld [vmem:[#allocation81_spill] sm:$0xff] }
 0x351   : > { %v2907_v12 = vmul.f32 %v9633_v49, %v9632_v60  ;;  %v2911_v39 = vmul.f32 %v8545_v11, %v9634_v43  ;;  %v5030_v60 = vld [vmem:[#allocation8 + $0x84] sm:$0xf] }
 0x353   : > { %3434 = vmatmul.bf16.gmra.mxu0 %v8704_v30  ;;  %v3573_v13 = vpop.f32.mrf.mxu2  ;;  %v3662_v34 = vpop.f32.mrf.mxu3  ;;  %v8786_v52 = vpack.c.bf16 %v2911_v39, %v2907_v12 }
 0x354   : > { %v3574_v9 = vadd.f32 %v3573_v13, %v3485_v55  ;;  %v9636_v55 = vld [vmem:[#allocation103_spill] sm:$0xff] }
 0x355   : > { %v2908_v21 = vmul.f32 %v9636_v55, %v9635_v33 }
 0x356   : > { %3523 = vmatmul.bf16.gmra.mxu1 %v8719_v45  ;;  %v3663_v14 = vadd.f32 %v3662_v34, %v3574_v9  ;;  %v3397_v24 = vpop.f32.mrf.mxu0 }
 0x357   : > { %v3486_v62 = vpop.f32.mrf.mxu1  ;;  %v8792_v34 = vpack.c.bf16 %v2912_v41, %v2908_v21 }
 0x358   : > { %3612 = vmatmul.bf16.gmra.mxu2 %v8695_v1  ;;  %3701 = vmatmul.bf16.gmra.mxu3 %v8708_v17  ;;  %4095 = vst [vmem:[%s8592_s11 + $0x60] sm:$0xff] %v3663_v14  ;;  %v3487_v15 = vadd.f32 %v3486_v62, %v3397_v24  ;;  %v5046_v24 = vld [vmem:[#allocation8 + $0x104] sm:$0xf]  ;;  %v4786_v62 = vld [vmem:[#allocation8 + $0x108] sm:$0xf0] }
 0x359   : > { %v4789_v3 = vor.u32 %v5046_v24, %v4786_v62 }
 0x35b   : > { %v3575_v4 = vpop.f32.mrf.mxu2  ;;  %v3664_v46 = vpop.f32.mrf.mxu3  ;;  %3912 = vmatpush.bf16.msrb.mxu2 %v4789_v3  ;;  %v8823_v3 = vpack.c.bf16 %v8689_v20, %v8613_v16 }
 0x35c   : > { %v3576_v58 = vadd.f32 %v3575_v4, %v3487_v15  ;;  %v5062_v15 = vld [vmem:[#allocation8 + $0x184] sm:$0xf]  ;;  %v4850_v4 = vld [vmem:[#allocation8 + $0x188] sm:$0xf0] }
 0x35e   : > { %v3665_v37 = vadd.f32 %v3664_v46, %v3576_v58  ;;  %v3400_v18 = vpop.f32.mrf.mxu0  ;;  %v4853_v58 = vor.u32 %v5062_v15, %v4850_v4 }
 0x35f   : > { %v3489_v6 = vpop.f32.mrf.mxu1 }
 0x360   : > { %4097 = vst [vmem:[%s8592_s11 + $0x70] sm:$0xff] %v3665_v37  ;;  %v3490_v7 = vadd.f32 %v3489_v6, %v3400_v18  ;;  %v4658_v37 = vld [vmem:[#allocation8 + $0x8] sm:$0xf0]  ;;  %4001 = vmatpush.bf16.msrb.mxu3 %v4853_v58 }
 0x361   : > { %v4661_v18 = vor.u32 %v5014_v38, %v4658_v37  ;;  %v4722_v6 = vld [vmem:[#allocation8 + $0x88] sm:$0xf0] }
 0x362   : > { %v4725_v32 = vor.u32 %v5030_v60, %v4722_v6 }
 0x363   : > { %3439 = vmatmul.bf16.gmra.mxu0 %v8736_v59  ;;  %v3578_v5 = vpop.f32.mrf.mxu2  ;;  %v3667_v10 = vpop.f32.mrf.mxu3 }
 0x364   : > { %v3579_v13 = vadd.f32 %v3578_v5, %v3490_v7  ;;  %3734 = vmatpush.bf16.msrb.mxu0 %v4661_v18  ;;  %3823 = vmatpush.bf16.msrb.mxu1 %v4725_v32  ;;  %v9640_v7 = vld [vmem:[#allocation83_spill] sm:$0xff] }
 0x365   : > { %v2915_v33 = vmul.f32 %v8599_v28, %v9640_v7 }
 0x366   : > { %3528 = vmatmul.bf16.gmra.mxu1 %v8744_v29  ;;  %v3668_v11 = vadd.f32 %v3667_v10, %v3579_v13  ;;  %v3402_v9 = vpop.f32.mrf.mxu0  ;;  %v9641_v13 = vld [vmem:[#allocation85_spill] sm:$0xff] }
 0x367   : > { %v3491_v14 = vpop.f32.mrf.mxu1 }
 0x368   : > { %3617 = vmatmul.bf16.gmra.mxu2 %v8748_v2  ;;  %3706 = vmatmul.bf16.gmra.mxu3 %v8754_v35  ;;  %4099 = vst [vmem:[%s8592_s11 + $0x80] sm:$0xff] %v3668_v11  ;;  %v3492_v46 = vadd.f32 %v3491_v14, %v3402_v9  ;;  %v2919_v11 = vmul.f32 %v8675_v47, %v9641_v13  ;;  %v9643_v14 = vld [vmem:[#allocation86_spill] sm:$0xff] }
 0x369   : > { %v2916_v9 = vmul.f32 %v8638_v56, %v9642_v42  ;;  %v2920_v27 = vmul.f32 %v8717_v44, %v9643_v14  ;;  %v8830_v56 = vpack.c.bf16 %v8727_v50, %v8658_v26 }
 0x36a   : > { %v8817_v24 = vpack.c.bf16 %v2919_v11, %v2915_v33 }
 0x36b   : > { %v3580_v49 = vpop.f32.mrf.mxu2  ;;  %v3669_v12 = vpop.f32.mrf.mxu3  ;;  %v8819_v62 = vpack.c.bf16 %v2920_v27, %v2916_v9 }
 0x36c   : > { %v3581_v43 = vadd.f32 %v3580_v49, %v3492_v46 }
 0x36e   : > { %v3670_v39 = vadd.f32 %v3669_v12, %v3581_v43  ;;  %v3405_v55 = vpop.f32.mrf.mxu0 }
 0x36f   : > { %v3494_v21 = vpop.f32.mrf.mxu1 }
 0x370   : > { %4101 = vst [vmem:[%s8592_s11 + $0x90] sm:$0xff] %v3670_v39  ;;  %v3495_v0 = vadd.f32 %v3494_v21, %v3405_v55 }
 0x373   : > { %3444 = vmatmul.bf16.gmra.mxu0 %v8762_v57  ;;  %v3583_v41 = vpop.f32.mrf.mxu2  ;;  %v3672_v5 = vpop.f32.mrf.mxu3 }
 0x374   : > { %v3584_v10 = vadd.f32 %v3583_v41, %v3495_v0 }
 0x376   : > { %3533 = vmatmul.bf16.gmra.mxu1 %v8768_v22  ;;  %v3673_v28 = vadd.f32 %v3672_v5, %v3584_v10  ;;  %v3407_v15 = vpop.f32.mrf.mxu0 }
 0x377   : > { %v3496_v47 = vpop.f32.mrf.mxu1 }
 0x378   : > { %3622 = vmatmul.bf16.gmra.mxu2 %v8772_v54  ;;  %3711 = vmatmul.bf16.gmra.mxu3 %v8778_v51  ;;  %4103 = vst [vmem:[%s8592_s11 + $0xa0] sm:$0xff] %v3673_v28  ;;  %v3497_v44 = vadd.f32 %v3496_v47, %v3407_v15  ;;  %v9644_v47 = vld [vmem:[#allocation19_spill] sm:$0xff] }
 0x37b   : > { %v3585_v4 = vpop.f32.mrf.mxu2  ;;  %v3674_v58 = vpop.f32.mrf.mxu3 }
 0x37c   : > { %v3586_v46 = vadd.f32 %v3585_v4, %v3497_v44  ;;  %v9645_v4 = vld [vmem:[#allocation112_spill] sm:$0xff] }
 0x37e   : > { %v3675_v38 = vadd.f32 %v3674_v58, %v3586_v46  ;;  %v3410_v37 = vpop.f32.mrf.mxu0  ;;  %v9646_v58 = vld [vmem:[#allocation109_spill] sm:$0xff] }
 0x37f   : > { %v3499_v16 = vpop.f32.mrf.mxu1 }
 0x380   : > { %4105 = vst [vmem:[%s8592_s11 + $0xb0] sm:$0xff] %v3675_v38  ;;  %v3500_v20 = vadd.f32 %v3499_v16, %v3410_v37  ;;  %v9647_v38 = vld [vmem:[#allocation113_spill] sm:$0xff] }
 0x383   : > { %3449 = vmatmul.bf16.gmra.mxu0 %v8786_v52 }
 0x385   : > { %v3588_v60 = vpop.f32.mrf.mxu2 }
 0x386   : > { %3538 = vmatmul.bf16.gmra.mxu1 %v8792_v34  ;;  %v3589_v49 = vadd.f32 %v3588_v60, %v3500_v20  ;;  %v3677_v12 = vpop.f32.mrf.mxu3  ;;  %v3412_v26 = vpop.f32.mrf.mxu0 }
 0x387   : > { %v3501_v18 = vpop.f32.mrf.mxu1 }
 0x388   : > { %3627 = vmatmul.bf16.gmra.mxu2 %v8797_v31  ;;  %3716 = vmatmul.bf16.gmra.mxu3 %v8804_v23  ;;  %v3678_v50 = vadd.f32 %v3677_v12, %v3589_v49  ;;  %v3502_v6 = vadd.f32 %v3501_v18, %v3412_v26  ;;  %v9648_v18 = vld [vmem:[#allocation13_spill] sm:$0xff] }
 0x38a   : > { %4107 = vst [vmem:[%s8592_s11 + $0xc0] sm:$0xff] %v3678_v50 }
 0x38d   : > { %v3590_v43 = vpop.f32.mrf.mxu2 }
 0x38e   : > { %v3591_v32 = vadd.f32 %v3590_v43, %v3502_v6  ;;  %v3679_v39 = vpop.f32.mrf.mxu3  ;;  %v3415_v7 = vpop.f32.mrf.mxu0 }
 0x390   : > { %v3680_v33 = vadd.f32 %v3679_v39, %v3591_v32 }
 0x392   : > { %4109 = vst [vmem:[%s8592_s11 + $0xd0] sm:$0xff] %v3680_v33  ;;  %v3504_v55 = vpop.f32.mrf.mxu1  ;;  %v9649_v33 = vld [vmem:[#allocation99_spill] sm:$0xff] }
 0x393   : > { %3454 = vmatmul.bf16.gmra.mxu0 %v8817_v24  ;;  %v3505_v21 = vadd.f32 %v3504_v55, %v3415_v7 }
 0x396   : > { %3543 = vmatmul.bf16.gmra.mxu1 %v8819_v62  ;;  %v3593_v0 = vpop.f32.mrf.mxu2  ;;  %v3417_v41 = vpop.f32.mrf.mxu0 }
 0x397   : > { %v3594_v5 = vadd.f32 %v3593_v0, %v3505_v21  ;;  %v9650_v21 = vld [vmem:[#allocation14_spill] sm:$0xff]  ;;  %v9651_v0 = vld [vmem:[#allocation100_spill] sm:$0xff] }
 0x398   : > { %3632 = vmatmul.bf16.gmra.mxu2 %v8823_v3  ;;  %3721 = vmatmul.bf16.gmra.mxu3 %v8830_v56  ;;  %v3682_v10 = vpop.f32.mrf.mxu3 }
 0x399   : > { %v3683_v13 = vadd.f32 %v3682_v10, %v3594_v5 }
 0x39a   : > { %v3506_v11 = vpop.f32.mrf.mxu1 }
 0x39b   : > { %4111 = vst [vmem:[%s8592_s11 + $0xe0] sm:$0xff] %v3683_v13  ;;  %v3507_v42 = vadd.f32 %v3506_v11, %v3417_v41 }
 0x39e   : > { %v3595_v9 = vpop.f32.mrf.mxu2  ;;  %v3420_v14 = vpop.f32.mrf.mxu0 }
 0x39f   : > { %v3596_v27 = vadd.f32 %v3595_v9, %v3507_v42 }
 0x3a0   : > { %v3684_v28 = vpop.f32.mrf.mxu3 }
 0x3a1   : > { %v3685_v15 = vadd.f32 %v3684_v28, %v3596_v27  ;;  %v9652_v27 = vld [vmem:[#allocation16_spill] sm:$0xff] }
 0x3a2   : > { %v3509_v44 = vpop.f32.mrf.mxu1 }
 0x3a3   : > { %3735 = vmatmul.bf16.vlgmr.msrb.gmra.mxu0 %v9644_v47  ;;  %4113 = vst [vmem:[%s8592_s11 + $0xf0] sm:$0xff] %v3685_v15  ;;  %v3510_v37 = vadd.f32 %v3509_v44, %v3420_v14 }
 0x3a6   : > { %3824 = vmatmul.bf16.vlgmr.msrb.gmra.mxu1 %v9645_v4  ;;  %v3422_v46 = vpop.f32.mrf.mxu0 }
 0x3a8   : > { %3913 = vmatmul.bf16.vlgmr.msrb.gmra.mxu2 %v9646_v58  ;;  %4002 = vmatmul.bf16.vlgmr.msrb.gmra.mxu3 %v9647_v38  ;;  %v9654_v38 = vld [vmem:[#allocation17_spill] sm:$0xff] }
 0x3aa   : > { %v3511_v49 = vpop.f32.mrf.mxu1 }
 0x3ab   : > { %v3598_v16 = vpop.f32.mrf.mxu2  ;;  %v3687_v20 = vpop.f32.mrf.mxu3  ;;  %v3512_v50 = vadd.f32 %v3511_v49, %v3422_v46  ;;  %v9653_v46 = vld [vmem:[#allocation20_spill] sm:$0xff] }
 0x3ac   : > { %v3599_v60 = vadd.f32 %v3598_v16, %v3510_v37  ;;  %v9655_v37 = vld [vmem:[#allocation104_spill] sm:$0xff] }
 0x3ae   : > { %v3688_v12 = vadd.f32 %v3687_v20, %v3599_v60 }
 0x3b0   : > { %v3425_v26 = vpop.f32.mrf.mxu0  ;;  %4115 = vst [vmem:[%s8592_s11 + $0x100] sm:$0xff] %v3688_v12 }
 0x3b3   : > { %3740 = vmatmul.bf16.gmra.mxu0 %v9648_v18  ;;  %v3600_v6 = vpop.f32.mrf.mxu2  ;;  %v3689_v43 = vpop.f32.mrf.mxu3 }
 0x3b4   : > { %v3601_v32 = vadd.f32 %v3600_v6, %v3512_v50  ;;  %v3514_v39 = vpop.f32.mrf.mxu1  ;;  %v9656_v6 = vld [vmem:[#allocation22_spill] sm:$0xff] }
 0x3b5   : > { %v3515_v41 = vadd.f32 %v3514_v39, %v3425_v26 }
 0x3b6   : > { %v3690_v7 = vadd.f32 %v3689_v43, %v3601_v32  ;;  %3829 = vmatmul.bf16.gmra.mxu1 %v9649_v33 }
 0x3b8   : > { %v3427_v55 = vpop.f32.mrf.mxu0  ;;  %4117 = vst [vmem:[%s8592_s11 + $0x110] sm:$0xff] %v3690_v7  ;;  %3918 = vmatmul.bf16.gmra.mxu2 %v9650_v21  ;;  %4007 = vmatmul.bf16.gmra.mxu3 %v9651_v0  ;;  %v9658_v0 = vld [vmem:[#allocation125_spill] sm:$0xff] }
 0x3bb   : > { %v3603_v5 = vpop.f32.mrf.mxu2  ;;  %v3692_v10 = vpop.f32.mrf.mxu3 }
 0x3bc   : > { %v3604_v13 = vadd.f32 %v3603_v5, %v3515_v41  ;;  %v3516_v11 = vpop.f32.mrf.mxu1  ;;  %v9659_v41 = vld [vmem:[#allocation106_spill] sm:$0xff] }
 0x3bd   : > { %v3517_v14 = vadd.f32 %v3516_v11, %v3427_v55  ;;  %v9657_v55 = vld [vmem:[#allocation26_spill] sm:$0xff] }
 0x3be   : > { %v3693_v42 = vadd.f32 %v3692_v10, %v3604_v13 }
 0x3c0   : > { %v3430_v9 = vpop.f32.mrf.mxu0  ;;  %4119 = vst [vmem:[%s8592_s11 + $0x120] sm:$0xff] %v3693_v42 }
 0x3c3   : > { %3745 = vmatmul.bf16.gmra.mxu0 %v9652_v27  ;;  %v3605_v28 = vpop.f32.mrf.mxu2  ;;  %v3694_v15 = vpop.f32.mrf.mxu3 }
 0x3c4   : > { %v3606_v47 = vadd.f32 %v3605_v28, %v3517_v14  ;;  %v3519_v44 = vpop.f32.mrf.mxu1  ;;  %v9660_v28 = vld [vmem:[#allocation27_spill] sm:$0xff] }
 0x3c5   : > { %v3520_v16 = vadd.f32 %v3519_v44, %v3430_v9 }
 0x3c6   : > { %v3695_v4 = vadd.f32 %v3694_v15, %v3606_v47  ;;  %3834 = vmatmul.bf16.gmra.mxu1 %v9653_v46 }
 0x3c8   : > { %v3432_v58 = vpop.f32.mrf.mxu0  ;;  %4121 = vst [vmem:[%s8592_s11 + $0x130] sm:$0xff] %v3695_v4  ;;  %3923 = vmatmul.bf16.gmra.mxu2 %v9654_v38  ;;  %4012 = vmatmul.bf16.gmra.mxu3 %v9655_v37  ;;  %v9662_v37 = vld [vmem:[#allocation134_spill] sm:$0xff] }
 0x3cb   : > { %v3608_v20 = vpop.f32.mrf.mxu2  ;;  %v3697_v60 = vpop.f32.mrf.mxu3 }
 0x3cc   : > { %v3609_v49 = vadd.f32 %v3608_v20, %v3520_v16  ;;  %v3521_v12 = vpop.f32.mrf.mxu1  ;;  %v9663_v16 = vld [vmem:[#allocation32_spill] sm:$0xff] }
 0x3cd   : > { %v3522_v18 = vadd.f32 %v3521_v12, %v3432_v58  ;;  %v9661_v58 = vld [vmem:[#allocation88_spill] sm:$0xff] }
 0x3ce   : > { %v3698_v26 = vadd.f32 %v3697_v60, %v3609_v49 }
 0x3d0   : > { %v3435_v50 = vpop.f32.mrf.mxu0  ;;  %4123 = vst [vmem:[%s8592_s11 + $0x140] sm:$0xff] %v3698_v26 }
 0x3d3   : > { %3750 = vmatmul.bf16.gmra.mxu0 %v9656_v6  ;;  %v3610_v43 = vpop.f32.mrf.mxu2  ;;  %v3699_v32 = vpop.f32.mrf.mxu3 }
 0x3d4   : > { %v3611_v39 = vadd.f32 %v3610_v43, %v3522_v18  ;;  %v3524_v7 = vpop.f32.mrf.mxu1  ;;  %v9664_v43 = vld [vmem:[#allocation42_spill] sm:$0xff] }
 0x3d5   : > { %v3525_v5 = vadd.f32 %v3524_v7, %v3435_v50 }
 0x3d6   : > { %v3700_v33 = vadd.f32 %v3699_v32, %v3611_v39  ;;  %3839 = vmatmul.bf16.gmra.mxu1 %v9657_v55 }
 0x3d8   : > { %v3437_v21 = vpop.f32.mrf.mxu0  ;;  %4125 = vst [vmem:[%s8592_s11 + $0x150] sm:$0xff] %v3700_v33  ;;  %3928 = vmatmul.bf16.gmra.mxu2 %v9658_v0  ;;  %4017 = vmatmul.bf16.gmra.mxu3 %v9659_v41  ;;  %v9666_v41 = vld [vmem:[#allocation111_spill] sm:$0xff] }
 0x3db   : > { %v3613_v10 = vpop.f32.mrf.mxu2  ;;  %v3702_v13 = vpop.f32.mrf.mxu3 }
 0x3dc   : > { %v3614_v11 = vadd.f32 %v3613_v10, %v3525_v5  ;;  %v3526_v42 = vpop.f32.mrf.mxu1  ;;  %v9667_v5 = vld [vmem:[#allocation87_spill] sm:$0xff] }
 0x3dd   : > { %v3527_v27 = vadd.f32 %v3526_v42, %v3437_v21  ;;  %v9665_v21 = vld [vmem:[#allocation135_spill] sm:$0xff] }
 0x3de   : > { %v3703_v9 = vadd.f32 %v3702_v13, %v3614_v11 }
 0x3e0   : > { %v3440_v14 = vpop.f32.mrf.mxu0  ;;  %4127 = vst [vmem:[%s8592_s11 + $0x160] sm:$0xff] %v3703_v9 }
 0x3e3   : > { %3755 = vmatmul.bf16.gmra.mxu0 %v9660_v28  ;;  %v3615_v15 = vpop.f32.mrf.mxu2  ;;  %v3704_v47 = vpop.f32.mrf.mxu3 }
 0x3e4   : > { %v3616_v44 = vadd.f32 %v3615_v15, %v3527_v27  ;;  %v3529_v4 = vpop.f32.mrf.mxu1  ;;  %v9668_v15 = vld [vmem:[#allocation33_spill] sm:$0xff] }
 0x3e5   : > { %v3530_v20 = vadd.f32 %v3529_v4, %v3440_v14 }
 0x3e6   : > { %v3705_v46 = vadd.f32 %v3704_v47, %v3616_v44  ;;  %3844 = vmatmul.bf16.gmra.mxu1 %v9661_v58 }
 0x3e8   : > { %v3442_v38 = vpop.f32.mrf.mxu0  ;;  %4129 = vst [vmem:[%s8592_s11 + $0x170] sm:$0xff] %v3705_v46  ;;  %3933 = vmatmul.bf16.gmra.mxu2 %v9662_v37  ;;  %4022 = vmatmul.bf16.gmra.mxu3 %v9663_v16  ;;  %v9670_v16 = vld [vmem:[#allocation115_spill] sm:$0xff] }
 0x3eb   : > { %v3618_v60 = vpop.f32.mrf.mxu2  ;;  %v3707_v49 = vpop.f32.mrf.mxu3 }
 0x3ec   : > { %v3619_v12 = vadd.f32 %v3618_v60, %v3530_v20  ;;  %v3531_v26 = vpop.f32.mrf.mxu1  ;;  %v9671_v20 = vld [vmem:[#allocation116_spill] sm:$0xff] }
 0x3ed   : > { %v3532_v6 = vadd.f32 %v3531_v26, %v3442_v38  ;;  %v9669_v38 = vld [vmem:[#allocation114_spill] sm:$0xff] }
 0x3ee   : > { %v3708_v50 = vadd.f32 %v3707_v49, %v3619_v12 }
 0x3f0   : > { %v3445_v18 = vpop.f32.mrf.mxu0  ;;  %4131 = vst [vmem:[%s8592_s11 + $0x180] sm:$0xff] %v3708_v50 }
 0x3f3   : > { %3760 = vmatmul.bf16.gmra.mxu0 %v9664_v43  ;;  %v3620_v32 = vpop.f32.mrf.mxu2  ;;  %v3709_v39 = vpop.f32.mrf.mxu3 }
 0x3f4   : > { %v3621_v7 = vadd.f32 %v3620_v32, %v3532_v6  ;;  %v3534_v33 = vpop.f32.mrf.mxu1  ;;  %v9672_v32 = vld [vmem:[#allocation93_spill] sm:$0xff] }
 0x3f5   : > { %v3535_v10 = vadd.f32 %v3534_v33, %v3445_v18 }
 0x3f6   : > { %v3710_v55 = vadd.f32 %v3709_v39, %v3621_v7  ;;  %3849 = vmatmul.bf16.gmra.mxu1 %v9665_v21 }
 0x3f8   : > { %v3447_v0 = vpop.f32.mrf.mxu0  ;;  %4133 = vst [vmem:[%s8592_s11 + $0x190] sm:$0xff] %v3710_v55  ;;  %3938 = vmatmul.bf16.gmra.mxu2 %v9666_v41  ;;  %4027 = vmatmul.bf16.gmra.mxu3 %v9667_v5  ;;  %v9674_v5 = vld [vmem:[#allocation118_spill] sm:$0xff] }
 0x3fb   : > { %v3623_v13 = vpop.f32.mrf.mxu2  ;;  %v3712_v11 = vpop.f32.mrf.mxu3 }
 0x3fc   : > { %v3624_v42 = vadd.f32 %v3623_v13, %v3535_v10  ;;  %v3536_v9 = vpop.f32.mrf.mxu1  ;;  %v9675_v10 = vld [vmem:[#allocation40_spill] sm:$0xff] }
 0x3fd   : > { %v3537_v28 = vadd.f32 %v3536_v9, %v3447_v0  ;;  %v9673_v0 = vld [vmem:[#allocation18_spill] sm:$0xff] }
 0x3fe   : > { %v3713_v14 = vadd.f32 %v3712_v11, %v3624_v42 }
 0x400   : > { %v3450_v27 = vpop.f32.mrf.mxu0  ;;  %4135 = vst [vmem:[%s8592_s11 + $0x1a0] sm:$0xff] %v3713_v14 }
 0x403   : > { %3765 = vmatmul.bf16.gmra.mxu0 %v9668_v15  ;;  %v3625_v47 = vpop.f32.mrf.mxu2  ;;  %v3714_v44 = vpop.f32.mrf.mxu3 }
 0x404   : > { %v3626_v4 = vadd.f32 %v3625_v47, %v3537_v28  ;;  %v3539_v46 = vpop.f32.mrf.mxu1  ;;  %v9676_v47 = vld [vmem:[#allocation121_spill] sm:$0xff] }
 0x405   : > { %v3540_v60 = vadd.f32 %v3539_v46, %v3450_v27 }
 0x406   : > { %v3715_v58 = vadd.f32 %v3714_v44, %v3626_v4  ;;  %3854 = vmatmul.bf16.gmra.mxu1 %v9669_v38 }
 0x408   : > { %v3452_v37 = vpop.f32.mrf.mxu0  ;;  %4137 = vst [vmem:[%s8592_s11 + $0x1b0] sm:$0xff] %v3715_v58  ;;  %3943 = vmatmul.bf16.gmra.mxu2 %v9670_v16  ;;  %4032 = vmatmul.bf16.gmra.mxu3 %v9671_v20 }
 0x40b   : > { %v3628_v49 = vpop.f32.mrf.mxu2  ;;  %v3717_v12 = vpop.f32.mrf.mxu3 }
 0x40c   : > { %v3629_v26 = vadd.f32 %v3628_v49, %v3540_v60  ;;  %v3541_v50 = vpop.f32.mrf.mxu1 }
 0x40d   : > { %v3542_v43 = vadd.f32 %v3541_v50, %v3452_v37  ;;  %v9677_v37 = vld [vmem:[#allocation44_spill] sm:$0xff] }
 0x40e   : > { %v3718_v18 = vadd.f32 %v3717_v12, %v3629_v26 }
 0x410   : > { %v3455_v6 = vpop.f32.mrf.mxu0  ;;  %4139 = vst [vmem:[%s8592_s11 + $0x1c0] sm:$0xff] %v3718_v18 }
 0x413   : > { %3770 = vmatmul.bf16.gmra.mxu0 %v9672_v32  ;;  %v3630_v39 = vpop.f32.mrf.mxu2  ;;  %v3719_v7 = vpop.f32.mrf.mxu3 }
 0x414   : > { %v3631_v33 = vadd.f32 %v3630_v39, %v3542_v43  ;;  %v3544_v55 = vpop.f32.mrf.mxu1 }
 0x415   : > { %v3545_v13 = vadd.f32 %v3544_v55, %v3455_v6 }
 0x416   : > { %v3720_v21 = vadd.f32 %v3719_v7, %v3631_v33  ;;  %3859 = vmatmul.bf16.gmra.mxu1 %v9673_v0  ;;  %v9678_v33 = vld [vmem:[#allocation45_spill] sm:$0xff] }
 0x418   : > { %v3457_v41 = vpop.f32.mrf.mxu0  ;;  %4141 = vst [vmem:[%s8592_s11 + $0x1d0] sm:$0xff] %v3720_v21  ;;  %3948 = vmatmul.bf16.gmra.mxu2 %v9674_v5  ;;  %4037 = vmatmul.bf16.gmra.mxu3 %v9675_v10 }
 0x41b   : > { %v3633_v11 = vpop.f32.mrf.mxu2  ;;  %v3722_v42 = vpop.f32.mrf.mxu3 }
 0x41c   : > { %v3634_v9 = vadd.f32 %v3633_v11, %v3545_v13  ;;  %v3546_v14 = vpop.f32.mrf.mxu1 }
 0x41d   : > { %v3547_v15 = vadd.f32 %v3546_v14, %v3457_v41 }
 0x41e   : > { %v3723_v27 = vadd.f32 %v3722_v42, %v3634_v9 }
 0x420   : > { %v3736_v28 = vpop.f32.mrf.mxu0  ;;  %4143 = vst [vmem:[%s8592_s11 + $0x1e0] sm:$0xff] %v3723_v27 }
 0x423   : > { %3775 = vmatmul.bf16.gmra.mxu0 %v9676_v47  ;;  %v3635_v44 = vpop.f32.mrf.mxu2  ;;  %v3724_v4 = vpop.f32.mrf.mxu3 }
 0x424   : > { %v3636_v46 = vadd.f32 %v3635_v44, %v3547_v15  ;;  %v3825_v58 = vpop.f32.mrf.mxu1 }
 0x425   : > { %v3826_v20 = vadd.f32 %v3825_v58, %v3736_v28 }
 0x426   : > { %v3725_v38 = vadd.f32 %v3724_v4, %v3636_v46  ;;  %3864 = vmatmul.bf16.gmra.mxu1 %v9677_v37 }
 0x428   : > { %v3738_v16 = vpop.f32.mrf.mxu0  ;;  %4145 = vst [vmem:[%s8592_s11 + $0x1f0] sm:$0xff] %v3725_v38  ;;  %3953 = vmatmul.bf16.gmra.mxu2 %v8539_v53  ;;  %4042 = vmatmul.bf16.gmra.mxu3 %v8543_v8 }
 0x42b   : > { %v3914_v60 = vpop.f32.mrf.mxu2  ;;  %v4003_v49 = vpop.f32.mrf.mxu3 }
 0x42c   : > { %v3915_v12 = vadd.f32 %v3914_v60, %v3826_v20  ;;  %v3827_v26 = vpop.f32.mrf.mxu1 }
 0x42d   : > { %v3828_v6 = vadd.f32 %v3827_v26, %v3738_v16 }
 0x42e   : > { %v4004_v50 = vadd.f32 %v4003_v49, %v3915_v12 }
 0x430   : > { %v3741_v18 = vpop.f32.mrf.mxu0  ;;  %4084 = vst [vmem:[%s8592_s11 + $0x8] sm:$0xff] %v4004_v50 }
 0x433   : > { %3780 = vmatmul.bf16.gmra.mxu0 %v8609_v19  ;;  %v3916_v43 = vpop.f32.mrf.mxu2  ;;  %v4005_v32 = vpop.f32.mrf.mxu3 }
 0x434   : > { %v3917_v39 = vadd.f32 %v3916_v43, %v3828_v6  ;;  %v3830_v7 = vpop.f32.mrf.mxu1 }
 0x435   : > { %v3831_v55 = vadd.f32 %v3830_v7, %v3741_v18 }
 0x436   : > { %v4006_v53 = vadd.f32 %v4005_v32, %v3917_v39  ;;  %3869 = vmatmul.bf16.gmra.mxu1 %v8633_v25 }
 0x438   : > { %v3743_v8 = vpop.f32.mrf.mxu0  ;;  %4086 = vst [vmem:[%s8592_s11 + $0x18] sm:$0xff] %v4006_v53  ;;  %3958 = vmatmul.bf16.gmra.mxu2 %v8624_v63  ;;  %4047 = vmatmul.bf16.gmra.mxu3 %v9678_v33 }
 0x43b   : > { %v3919_v21 = vpop.f32.mrf.mxu2  ;;  %v4008_v0 = vpop.f32.mrf.mxu3 }
 0x43c   : > { %v3920_v41 = vadd.f32 %v3919_v21, %v3831_v55  ;;  %v3832_v19 = vpop.f32.mrf.mxu1 }
 0x43d   : > { %v3833_v13 = vadd.f32 %v3832_v19, %v3743_v8 }
 0x43e   : > { %v4009_v5 = vadd.f32 %v4008_v0, %v3920_v41 }
 0x440   : > { %v3746_v10 = vpop.f32.mrf.mxu0  ;;  %4088 = vst [vmem:[%s8592_s11 + $0x28] sm:$0xff] %v4009_v5 }
 0x443   : > { %3785 = vmatmul.bf16.gmra.mxu0 %v8663_v36  ;;  %v3921_v11 = vpop.f32.mrf.mxu2  ;;  %v4010_v25 = vpop.f32.mrf.mxu3 }
 0x444   : > { %v3922_v42 = vadd.f32 %v3921_v11, %v3833_v13  ;;  %v3835_v9 = vpop.f32.mrf.mxu1 }
 0x445   : > { %v3836_v27 = vadd.f32 %v3835_v9, %v3746_v10 }
 0x446   : > { %v4011_v63 = vadd.f32 %v4010_v25, %v3922_v42  ;;  %3874 = vmatmul.bf16.gmra.mxu1 %v8666_v61 }
 0x448   : > { %v3748_v14 = vpop.f32.mrf.mxu0  ;;  %4090 = vst [vmem:[%s8592_s11 + $0x38] sm:$0xff] %v4011_v63  ;;  %3963 = vmatmul.bf16.gmra.mxu2 %v8654_v40  ;;  %4052 = vmatmul.bf16.gmra.mxu3 %v8670_v48 }
 0x44b   : > { %v3924_v28 = vpop.f32.mrf.mxu2  ;;  %v4013_v15 = vpop.f32.mrf.mxu3 }
 0x44c   : > { %v3925_v47 = vadd.f32 %v3924_v28, %v3836_v27  ;;  %v3837_v36 = vpop.f32.mrf.mxu1 }
 0x44d   : > { %v3838_v46 = vadd.f32 %v3837_v36, %v3748_v14 }
 0x44e   : > { %v4014_v44 = vadd.f32 %v4013_v15, %v3925_v47 }
 0x450   : > { %v3751_v4 = vpop.f32.mrf.mxu0  ;;  %4092 = vst [vmem:[%s8592_s11 + $0x48] sm:$0xff] %v4014_v44 }
 0x453   : > { %3790 = vmatmul.bf16.gmra.mxu0 %v8704_v30  ;;  %v3926_v58 = vpop.f32.mrf.mxu2  ;;  %v4015_v61 = vpop.f32.mrf.mxu3 }
 0x454   : > { %v3927_v38 = vadd.f32 %v3926_v58, %v3838_v46  ;;  %v3840_v37 = vpop.f32.mrf.mxu1 }
 0x455   : > { %v3841_v16 = vadd.f32 %v3840_v37, %v3751_v4 }
 0x456   : > { %v4016_v40 = vadd.f32 %v4015_v61, %v3927_v38  ;;  %3879 = vmatmul.bf16.gmra.mxu1 %v8719_v45 }
 0x458   : > { %v3753_v48 = vpop.f32.mrf.mxu0  ;;  %4094 = vst [vmem:[%s8592_s11 + $0x58] sm:$0xff] %v4016_v40  ;;  %3968 = vmatmul.bf16.gmra.mxu2 %v8695_v1  ;;  %4057 = vmatmul.bf16.gmra.mxu3 %v8708_v17 }
 0x45b   : > { %v3929_v20 = vpop.f32.mrf.mxu2  ;;  %v4018_v60 = vpop.f32.mrf.mxu3 }
 0x45c   : > { %v3930_v49 = vadd.f32 %v3929_v20, %v3841_v16  ;;  %v3842_v30 = vpop.f32.mrf.mxu1 }
 0x45d   : > { %v3843_v50 = vadd.f32 %v3842_v30, %v3753_v48 }
 0x45e   : > { %v4019_v12 = vadd.f32 %v4018_v60, %v3930_v49 }
 0x460   : > { %v3756_v26 = vpop.f32.mrf.mxu0  ;;  %4096 = vst [vmem:[%s8592_s11 + $0x68] sm:$0xff] %v4019_v12 }
 0x463   : > { %3795 = vmatmul.bf16.gmra.mxu0 %v8736_v59  ;;  %v3931_v18 = vpop.f32.mrf.mxu2  ;;  %v4020_v45 = vpop.f32.mrf.mxu3 }
 0x464   : > { %v3932_v6 = vadd.f32 %v3931_v18, %v3843_v50  ;;  %v3845_v43 = vpop.f32.mrf.mxu1 }
 0x465   : > { %v3846_v32 = vadd.f32 %v3845_v43, %v3756_v26 }
 0x466   : > { %v4021_v1 = vadd.f32 %v4020_v45, %v3932_v6  ;;  %3884 = vmatmul.bf16.gmra.mxu1 %v8744_v29 }
 0x468   : > { %v3758_v17 = vpop.f32.mrf.mxu0  ;;  %4098 = vst [vmem:[%s8592_s11 + $0x78] sm:$0xff] %v4021_v1  ;;  %3973 = vmatmul.bf16.gmra.mxu2 %v8748_v2  ;;  %4062 = vmatmul.bf16.gmra.mxu3 %v8754_v35 }
 0x46b   : > { %v3934_v39 = vpop.f32.mrf.mxu2  ;;  %v4023_v7 = vpop.f32.mrf.mxu3 }
 0x46c   : > { %v3935_v53 = vadd.f32 %v3934_v39, %v3846_v32  ;;  %v3847_v59 = vpop.f32.mrf.mxu1 }
 0x46d   : > { %v3848_v55 = vadd.f32 %v3847_v59, %v3758_v17 }
 0x46e   : > { %v4024_v8 = vadd.f32 %v4023_v7, %v3935_v53 }
 0x470   : > { %v3761_v33 = vpop.f32.mrf.mxu0  ;;  %4100 = vst [vmem:[%s8592_s11 + $0x88] sm:$0xff] %v4024_v8 }
 0x473   : > { %3800 = vmatmul.bf16.gmra.mxu0 %v8762_v57  ;;  %v3936_v21 = vpop.f32.mrf.mxu2  ;;  %v4025_v29 = vpop.f32.mrf.mxu3 }
 0x474   : > { %v3937_v0 = vadd.f32 %v3936_v21, %v3848_v55  ;;  %v3850_v41 = vpop.f32.mrf.mxu1 }
 0x475   : > { %v3851_v19 = vadd.f32 %v3850_v41, %v3761_v33 }
 0x476   : > { %v4026_v2 = vadd.f32 %v4025_v29, %v3937_v0  ;;  %3889 = vmatmul.bf16.gmra.mxu1 %v8768_v22 }
 0x478   : > { %v3763_v35 = vpop.f32.mrf.mxu0  ;;  %4102 = vst [vmem:[%s8592_s11 + $0x98] sm:$0xff] %v4026_v2  ;;  %3978 = vmatmul.bf16.gmra.mxu2 %v8772_v54  ;;  %4067 = vmatmul.bf16.gmra.mxu3 %v8778_v51 }
 0x47b   : > { %v3939_v5 = vpop.f32.mrf.mxu2  ;;  %v4028_v10 = vpop.f32.mrf.mxu3 }
 0x47c   : > { %v3940_v13 = vadd.f32 %v3939_v5, %v3851_v19  ;;  %v3852_v57 = vpop.f32.mrf.mxu1 }
 0x47d   : > { %v3853_v42 = vadd.f32 %v3852_v57, %v3763_v35 }
 0x47e   : > { %v4029_v11 = vadd.f32 %v4028_v10, %v3940_v13 }
 0x480   : > { %v3766_v25 = vpop.f32.mrf.mxu0  ;;  %4104 = vst [vmem:[%s8592_s11 + $0xa8] sm:$0xff] %v4029_v11 }
 0x483   : > { %3805 = vmatmul.bf16.gmra.mxu0 %v8786_v52  ;;  %v3941_v9 = vpop.f32.mrf.mxu2  ;;  %v4030_v22 = vpop.f32.mrf.mxu3 }
 0x484   : > { %v3942_v63 = vadd.f32 %v3941_v9, %v3853_v42  ;;  %v3855_v14 = vpop.f32.mrf.mxu1 }
 0x485   : > { %v3856_v27 = vadd.f32 %v3855_v14, %v3766_v25 }
 0x486   : > { %v4031_v54 = vadd.f32 %v4030_v22, %v3942_v63  ;;  %3894 = vmatmul.bf16.gmra.mxu1 %v8792_v34 }
 0x488   : > { %v3768_v51 = vpop.f32.mrf.mxu0  ;;  %4106 = vst [vmem:[%s8592_s11 + $0xb8] sm:$0xff] %v4031_v54  ;;  %3983 = vmatmul.bf16.gmra.mxu2 %v8797_v31  ;;  %4072 = vmatmul.bf16.gmra.mxu3 %v8804_v23 }
 0x48b   : > { %v3944_v28 = vpop.f32.mrf.mxu2  ;;  %v4033_v15 = vpop.f32.mrf.mxu3 }
 0x48c   : > { %v3945_v47 = vadd.f32 %v3944_v28, %v3856_v27  ;;  %v3857_v52 = vpop.f32.mrf.mxu1 }
 0x48d   : > { %v3858_v4 = vadd.f32 %v3857_v52, %v3768_v51 }
 0x48e   : > { %v4034_v36 = vadd.f32 %v4033_v15, %v3945_v47 }
 0x490   : > { %v3771_v44 = vpop.f32.mrf.mxu0  ;;  %4108 = vst [vmem:[%s8592_s11 + $0xc8] sm:$0xff] %v4034_v36 }
 0x493   : > { %3810 = vmatmul.bf16.gmra.mxu0 %v8817_v24  ;;  %v3946_v46 = vpop.f32.mrf.mxu2  ;;  %v4035_v34 = vpop.f32.mrf.mxu3 }
 0x494   : > { %v3947_v58 = vadd.f32 %v3946_v46, %v3858_v4  ;;  %v3860_v61 = vpop.f32.mrf.mxu1 }
 0x495   : > { %v3861_v38 = vadd.f32 %v3860_v61, %v3771_v44 }
 0x496   : > { %v4036_v31 = vadd.f32 %v4035_v34, %v3947_v58  ;;  %3899 = vmatmul.bf16.gmra.mxu1 %v8819_v62 }
 0x498   : > { %v3773_v23 = vpop.f32.mrf.mxu0  ;;  %4110 = vst [vmem:[%s8592_s11 + $0xd8] sm:$0xff] %v4036_v31  ;;  %3988 = vmatmul.bf16.gmra.mxu2 %v8823_v3  ;;  %4077 = vmatmul.bf16.gmra.mxu3 %v8830_v56 }
 0x49b   : > { %v3949_v37 = vpop.f32.mrf.mxu2  ;;  %v4038_v40 = vpop.f32.mrf.mxu3 }
 0x49c   : > { %v3950_v48 = vadd.f32 %v3949_v37, %v3861_v38  ;;  %v3862_v24 = vpop.f32.mrf.mxu1 }
 0x49d   : > { %v3863_v60 = vadd.f32 %v3862_v24, %v3773_v23 }
 0x49e   : > { %v4039_v16 = vadd.f32 %v4038_v40, %v3950_v48 }
 0x4a0   : > { %v3776_v20 = vpop.f32.mrf.mxu0  ;;  %4112 = vst [vmem:[%s8592_s11 + $0xe8] sm:$0xff] %v4039_v16 }
 0x4a3   : > { %v3951_v49 = vpop.f32.mrf.mxu2  ;;  %v4040_v30 = vpop.f32.mrf.mxu3 }
 0x4a4   : > { %v3952_v62 = vadd.f32 %v3951_v49, %v3863_v60  ;;  %v3865_v12 = vpop.f32.mrf.mxu1 }
 0x4a5   : > { %v3866_v3 = vadd.f32 %v3865_v12, %v3776_v20 }
 0x4a6   : > { %v4041_v26 = vadd.f32 %v4040_v30, %v3952_v62 }
 0x4a8   : > { %v3778_v50 = vpop.f32.mrf.mxu0  ;;  %4114 = vst [vmem:[%s8592_s11 + $0xf8] sm:$0xff] %v4041_v26 }
 0x4ab   : > { %v3954_v56 = vpop.f32.mrf.mxu2  ;;  %v4043_v18 = vpop.f32.mrf.mxu3 }
 0x4ac   : > { %v3955_v45 = vadd.f32 %v3954_v56, %v3866_v3  ;;  %v3867_v6 = vpop.f32.mrf.mxu1 }
 0x4ad   : > { %v3868_v17 = vadd.f32 %v3867_v6, %v3778_v50 }
 0x4ae   : > { %v4044_v43 = vadd.f32 %v4043_v18, %v3955_v45 }
 0x4b0   : > { %v3781_v1 = vpop.f32.mrf.mxu0  ;;  %4116 = vst [vmem:[%s8592_s11 + $0x108] sm:$0xff] %v4044_v43 }
 0x4b3   : > { %v3956_v32 = vpop.f32.mrf.mxu2  ;;  %v4045_v39 = vpop.f32.mrf.mxu3 }
 0x4b4   : > { %v3957_v7 = vadd.f32 %v3956_v32, %v3868_v17  ;;  %v3870_v53 = vpop.f32.mrf.mxu1 }
 0x4b5   : > { %v3871_v33 = vadd.f32 %v3870_v53, %v3781_v1 }
 0x4b6   : > { %v4046_v59 = vadd.f32 %v4045_v39, %v3957_v7 }
 0x4b8   : > { %v3783_v8 = vpop.f32.mrf.mxu0  ;;  %4118 = vst [vmem:[%s8592_s11 + $0x118] sm:$0xff] %v4046_v59 }
 0x4bb   : > { %v3959_v55 = vpop.f32.mrf.mxu2  ;;  %v4048_v21 = vpop.f32.mrf.mxu3 }
 0x4bc   : > { %v3960_v29 = vadd.f32 %v3959_v55, %v3871_v33  ;;  %v3872_v0 = vpop.f32.mrf.mxu1 }
 0x4bd   : > { %v3873_v35 = vadd.f32 %v3872_v0, %v3783_v8 }
 0x4be   : > { %v4049_v41 = vadd.f32 %v4048_v21, %v3960_v29 }
 0x4c0   : > { %v3786_v2 = vpop.f32.mrf.mxu0  ;;  %4120 = vst [vmem:[%s8592_s11 + $0x128] sm:$0xff] %v4049_v41 }
 0x4c3   : > { %v3961_v19 = vpop.f32.mrf.mxu2  ;;  %v4050_v5 = vpop.f32.mrf.mxu3 }
 0x4c4   : > { %v3962_v10 = vadd.f32 %v3961_v19, %v3873_v35  ;;  %v3875_v13 = vpop.f32.mrf.mxu1 }
 0x4c5   : > { %v3876_v25 = vadd.f32 %v3875_v13, %v3786_v2 }
 0x4c6   : > { %v4051_v57 = vadd.f32 %v4050_v5, %v3962_v10 }
 0x4c8   : > { %v3788_v11 = vpop.f32.mrf.mxu0  ;;  %4122 = vst [vmem:[%s8592_s11 + $0x138] sm:$0xff] %v4051_v57 }
 0x4cb   : > { %v3964_v42 = vpop.f32.mrf.mxu2  ;;  %v4053_v9 = vpop.f32.mrf.mxu3 }
 0x4cc   : > { %v3965_v22 = vadd.f32 %v3964_v42, %v3876_v25  ;;  %v3877_v63 = vpop.f32.mrf.mxu1 }
 0x4cd   : > { %v3878_v51 = vadd.f32 %v3877_v63, %v3788_v11 }
 0x4ce   : > { %v4054_v14 = vadd.f32 %v4053_v9, %v3965_v22 }
 0x4d0   : > { %v3791_v54 = vpop.f32.mrf.mxu0  ;;  %4124 = vst [vmem:[%s8592_s11 + $0x148] sm:$0xff] %v4054_v14 }
 0x4d3   : > { %v3966_v27 = vpop.f32.mrf.mxu2  ;;  %v4055_v28 = vpop.f32.mrf.mxu3 }
 0x4d4   : > { %v3967_v15 = vadd.f32 %v3966_v27, %v3878_v51  ;;  %v3880_v47 = vpop.f32.mrf.mxu1 }
 0x4d5   : > { %v3881_v44 = vadd.f32 %v3880_v47, %v3791_v54 }
 0x4d6   : > { %v4056_v52 = vadd.f32 %v4055_v28, %v3967_v15 }
 0x4d8   : > { %v3793_v36 = vpop.f32.mrf.mxu0  ;;  %4126 = vst [vmem:[%s8592_s11 + $0x158] sm:$0xff] %v4056_v52 }
 0x4db   : > { %v3969_v4 = vpop.f32.mrf.mxu2  ;;  %v4058_v46 = vpop.f32.mrf.mxu3 }
 0x4dc   : > { %v3970_v34 = vadd.f32 %v3969_v4, %v3881_v44  ;;  %v3882_v58 = vpop.f32.mrf.mxu1 }
 0x4dd   : > { %v3883_v23 = vadd.f32 %v3882_v58, %v3793_v36 }
 0x4de   : > { %v4059_v61 = vadd.f32 %v4058_v46, %v3970_v34 }
 0x4e0   : > { %v3796_v31 = vpop.f32.mrf.mxu0  ;;  %4128 = vst [vmem:[%s8592_s11 + $0x168] sm:$0xff] %v4059_v61 }
 0x4e3   : > { %v3971_v38 = vpop.f32.mrf.mxu2  ;;  %v4060_v37 = vpop.f32.mrf.mxu3 }
 0x4e4   : > { %v3972_v40 = vadd.f32 %v3971_v38, %v3883_v23  ;;  %v3885_v48 = vpop.f32.mrf.mxu1 }
 0x4e5   : > { %v3886_v20 = vadd.f32 %v3885_v48, %v3796_v31 }
 0x4e6   : > { %v4061_v24 = vadd.f32 %v4060_v37, %v3972_v40 }
 0x4e8   : > { %v3798_v16 = vpop.f32.mrf.mxu0  ;;  %4130 = vst [vmem:[%s8592_s11 + $0x178] sm:$0xff] %v4061_v24 }
 0x4eb   : > { %v3974_v60 = vpop.f32.mrf.mxu2  ;;  %v4063_v49 = vpop.f32.mrf.mxu3 }
 0x4ec   : > { %v3975_v30 = vadd.f32 %v3974_v60, %v3886_v20  ;;  %v3887_v62 = vpop.f32.mrf.mxu1 }
 0x4ed   : > { %v3888_v50 = vadd.f32 %v3887_v62, %v3798_v16 }
 0x4ee   : > { %v4064_v12 = vadd.f32 %v4063_v49, %v3975_v30 }
 0x4f0   : > { %v3801_v26 = vpop.f32.mrf.mxu0  ;;  %4132 = vst [vmem:[%s8592_s11 + $0x188] sm:$0xff] %v4064_v12 }
 0x4f3   : > { %v3976_v3 = vpop.f32.mrf.mxu2  ;;  %v4065_v56 = vpop.f32.mrf.mxu3 }
 0x4f4   : > { %v3977_v18 = vadd.f32 %v3976_v3, %v3888_v50  ;;  %v3890_v45 = vpop.f32.mrf.mxu1 }
 0x4f5   : > { %v3891_v1 = vadd.f32 %v3890_v45, %v3801_v26 }
 0x4f6   : > { %v4066_v6 = vadd.f32 %v4065_v56, %v3977_v18 }
 0x4f8   : > { %v3803_v43 = vpop.f32.mrf.mxu0  ;;  %4134 = vst [vmem:[%s8592_s11 + $0x198] sm:$0xff] %v4066_v6 }
 0x4fb   : > { %v3979_v17 = vpop.f32.mrf.mxu2  ;;  %v4068_v32 = vpop.f32.mrf.mxu3 }
 0x4fc   : > { %v3980_v39 = vadd.f32 %v3979_v17, %v3891_v1  ;;  %v3892_v7 = vpop.f32.mrf.mxu1 }
 0x4fd   : > { %v3893_v8 = vadd.f32 %v3892_v7, %v3803_v43 }
 0x4fe   : > { %v4069_v53 = vadd.f32 %v4068_v32, %v3980_v39 }
 0x500   : > { %4136 = vst [vmem:[%s8592_s11 + $0x1a8] sm:$0xff] %v4069_v53  ;;  %v3806_v59 = vpop.f32.mrf.mxu0 }
 0x503   : > { %v3981_v33 = vpop.f32.mrf.mxu2  ;;  %v4070_v55 = vpop.f32.mrf.mxu3 }
 0x504   : > { %v3982_v21 = vadd.f32 %v3981_v33, %v3893_v8  ;;  %v3895_v29 = vpop.f32.mrf.mxu1 }
 0x505   : > { %v3896_v41 = vadd.f32 %v3895_v29, %v3806_v59 }
 0x506   : > { %v4071_v0 = vadd.f32 %v4070_v55, %v3982_v21 }
 0x508   : > { %4138 = vst [vmem:[%s8592_s11 + $0x1b8] sm:$0xff] %v4071_v0  ;;  %v3808_v2 = vpop.f32.mrf.mxu0 }
 0x50b   : > { %v3984_v35 = vpop.f32.mrf.mxu2  ;;  %v4073_v19 = vpop.f32.mrf.mxu3 }
 0x50c   : > { %v3985_v5 = vadd.f32 %v3984_v35, %v3896_v41  ;;  %v3897_v10 = vpop.f32.mrf.mxu1 }
 0x50d   : > { %v3898_v57 = vadd.f32 %v3897_v10, %v3808_v2 }
 0x50e   : > { %v4074_v13 = vadd.f32 %v4073_v19, %v3985_v5 }
 0x510   : > { %4140 = vst [vmem:[%s8592_s11 + $0x1c8] sm:$0xff] %v4074_v13  ;;  %v3811_v9 = vpop.f32.mrf.mxu0 }
 0x513   : > { %v3986_v11 = vpop.f32.mrf.mxu2  ;;  %v4075_v25 = vpop.f32.mrf.mxu3 }
 0x514   : > { %v3987_v42 = vadd.f32 %v3986_v11, %v3898_v57  ;;  %v3900_v22 = vpop.f32.mrf.mxu1 }
 0x515   : > { %v3901_v14 = vadd.f32 %v3900_v22, %v3811_v9 }
 0x516   : > { %v4076_v63 = vadd.f32 %v4075_v25, %v3987_v42 }
 0x518   : > { %4142 = vst [vmem:[%s8592_s11 + $0x1d8] sm:$0xff] %v4076_v63  ;;  %v3813_v15 = vpop.f32.mrf.mxu0 }
 0x51b   : > { %v3989_v54 = vpop.f32.mrf.mxu2  ;;  %v4078_v51 = vpop.f32.mrf.mxu3 }
 0x51c   : > { %v3990_v27 = vadd.f32 %v3989_v54, %v3901_v14  ;;  %v3902_v47 = vpop.f32.mrf.mxu1 }
 0x51d   : > { %v3903_v52 = vadd.f32 %v3902_v47, %v3813_v15 }
 0x51e   : > { %v4079_v28 = vadd.f32 %v4078_v51, %v3990_v27 }
 0x520   : > { %4144 = vst [vmem:[%s8592_s11 + $0x1e8] sm:$0xff] %v4079_v28 }
 0x523   : > { %v3991_v36 = vpop.f32.mrf.mxu2  ;;  %v4080_v4 = vpop.f32.mrf.mxu3 }
 0x524   : > { %v3992_v44 = vadd.f32 %v3991_v36, %v3903_v52 }
 0x526   : > { %v4081_v46 = vadd.f32 %v4080_v4, %v3992_v44 }
 0x528   : > { %4146 = vst [vmem:[%s8592_s11 + $0x1f8] sm:$0xff] %v4081_v46 }
 0x529   : > { %5398 = shalt.err (!%p5395_p10)
}
 0x52a   : > { %s5449_s28 = smov 256   ;;  %s5450_s15 = smov 16  }
 0x52b   : > { %5090 = dma.vmem_to_hbm [thread:$0]  (%p5555_p3), %s4162_s29, 8192, %s4164_s7, %s4148_s0, %s5449_s28, %s5449_s28, %s5450_s15  }
 0x52c PF: > { %p5112_p11 = scmp.ge.s32.totalorder %s5441_s23, 2  ;;  %s4178_s16 = sand.u32 1, %s5429_s20  }
 0x52d   : > { %s4179_s11 = scalar_lea.sflag [#allocation5], %s4178_s16 }
 0x52e   : > { %p5104_p12 = pnand %p5112_p11, %p5519_p6 }
 0x530   : > { %p5105_p13 = pneg %p5104_p12 }
 0x532   : > { %5424 = dma.done.wait (%p5105_p13), %s4179_s11, 8192  }
 0x533   : > { %5426 = vsyncadd (%p5105_p13), %s4179_s11, 4294959104  ;;  %p20_p0 = scmp.ge.s32.totalorder %s5542_s17, 5   ;;  %s9679_s20 = smov %s5433_s21 }
 0x534   : > { %s9680_s21 = smov %s5437_s22  ;;  %s9681_s22 = smov %s5551_s24 }
 0x535   : > { %s9682_s23 = smov %s5542_s17  ;;  %22 = sbr.rel (!%p20_p0) target bundleno = 8 (0x8), region = 93 }
 0x53a   :  { %4185 = vsyncpa [#allocation4], 1 }
 0x53b   :  { %4187 = vsyncpa [#allocation4 + $0x1], 1 }
 0x53c   :  { %4188 = vsyncpa [#allocation7], 1 }
 0x53d   :  { %4189 = vsyncpa [#allocation5], 1 }
 0x53e   :  { %4191 = vsyncpa [#allocation5 + $0x1], 1 }

</bundles_post_ra>
